<compile_context>
chip_gen: v7x
topology: tpu7x:2x2x1
jax: 0.10.0
libtpu: 0.0.40
codegen_flags: <defaults>
</compile_context>

<pallas_src>
import math
from functools import partial

import jax
import jax.numpy as jnp
from jax import lax
from jax.experimental import pallas as pl
from jax.experimental.pallas import tpu as pltpu


# ----------------------------- tiling helpers -----------------------------

_LANE_PREFS = (512, 256, 128)                    # last-dim tiles (x128)
_ROW_PREFS = (512, 256, 128, 64, 32, 16, 8)      # sublane-dim tiles (x8)
_VMEM_LIMIT = 48 * 1024 * 1024                   # safe on v5e/v6e/v7x


def _pick(dim, prefs, min_tiles=1):
    """Largest preferred tile dividing `dim` that yields >= min_tiles tiles."""
    for t in prefs:
        if t <= dim and dim % t == 0 and dim // t >= min_tiles:
            return t
    return dim   # fall back to the full extent (always a legal block size)


def _params(semantics):
    return pltpu.CompilerParams(dimension_semantics=semantics,
                                vmem_limit_bytes=_VMEM_LIMIT)


# ----------------------------- attention sublayer -----------------------------
# Fused: LN1 -> qkv matmul -> causal+padded softmax attention (all heads)
#        -> output projection -> residual add.  One grid step per batch element.

def _attn_block_kernel(x_ref, g_ref, beta_ref, wqkv_ref, bqkv_ref,
                       wproj_ref, bproj_ref, mask_ref, o_ref, *,
                       n_head, d_head):
    T, d = x_ref.shape
    x = x_ref[...]                                          # (T, d) f32 residual

    # LayerNorm in f32
    mu = jnp.mean(x, axis=-1, keepdims=True)
    xc = x - mu
    var = jnp.mean(xc * xc, axis=-1, keepdims=True)
    xn = xc * lax.rsqrt(var + 1e-5) * g_ref[...] + beta_ref[...]
    xb = xn.astype(jnp.bfloat16)                            # bf16 MXU operand

    # qkv projection (1/sqrt(d_head) is pre-folded into the q columns of wqkv)
    qkv = jnp.dot(xb, wqkv_ref[...],
                  preferred_element_type=jnp.float32) + bqkv_ref[...]
    qkv_b = qkv.astype(jnp.bfloat16)                        # (T, 3d) bf16

    # combined causal + padding bias, built once for all heads (f32)
    row = lax.broadcasted_iota(jnp.int32, (T, T), 0)
    col = lax.broadcasted_iota(jnp.int32, (T, T), 1)
    bias = jnp.where(col <= row, mask_ref[...], -1e9)       # (T, T)

    # accumulate residual + b_proj + sum_h softmax(q_h k_h^T) v_h @ w_proj[h]
    acc = x + bproj_ref[...]                                # (T, d) f32
    for h in range(n_head):
        q = qkv_b[:, h * d_head:(h + 1) * d_head]
        k = qkv_b[:, d + h * d_head:d + (h + 1) * d_head]
        v = qkv_b[:, 2 * d + h * d_head:2 * d + (h + 1) * d_head]
        s = lax.dot_general(q, k, (((1,), (1,)), ((), ())),
                            preferred_element_type=jnp.float32) + bias
        m = jnp.max(s, axis=-1, keepdims=True)
        p = jnp.exp(s - m)
        p = p / jnp.sum(p, axis=-1, keepdims=True)          # exact divide (parity)
        out_h = jnp.dot(p.astype(jnp.bfloat16), v,
                        preferred_element_type=jnp.float32)  # (T, d_head)
        acc = acc + jnp.dot(out_h.astype(jnp.bfloat16),
                            wproj_ref[h * d_head:(h + 1) * d_head, :],
                            preferred_element_type=jnp.float32)
    o_ref[...] = acc


def attention_block(x, blk, mask_bias, *, n_head):
    B, T, d = x.shape
    d_head = d // n_head
    return pl.pallas_call(
        partial(_attn_block_kernel, n_head=n_head, d_head=d_head),
        out_shape=jax.ShapeDtypeStruct((B, T, d), jnp.float32),
        grid=(B,),
        in_specs=[
            pl.BlockSpec((pl.Squeezed(), T, d), lambda b: (b, 0, 0)),
            pl.BlockSpec((1, d), lambda b: (0, 0)),
            pl.BlockSpec((1, d), lambda b: (0, 0)),
            pl.BlockSpec((d, 3 * d), lambda b: (0, 0)),
            pl.BlockSpec((1, 3 * d), lambda b: (0, 0)),
            pl.BlockSpec((d, d), lambda b: (0, 0)),
            pl.BlockSpec((1, d), lambda b: (0, 0)),
            pl.BlockSpec((pl.Squeezed(), 1, T), lambda b: (b, 0, 0)),
        ],
        out_specs=pl.BlockSpec((pl.Squeezed(), T, d), lambda b: (b, 0, 0)),
        compiler_params=_params(("parallel",)),
    )(x, blk["ln1_g"].reshape(1, d), blk["ln1_b"].reshape(1, d),
      blk["w_attn"], blk["b_attn"].reshape(1, 3 * d),
      blk["w_proj"], blk["b_proj"].reshape(1, d), mask_bias)


# ----------------------------- MLP sublayer -----------------------------
# Fused: LN2 -> fc matmul -> GELU -> proj matmul -> residual add.

def _mlp_block_kernel(x_ref, g_ref, beta_ref, wfc_ref, bfc_ref,
                      wpr_ref, bpr_ref, o_ref):
    x = x_ref[...]                                          # (tm, d) f32
    mu = jnp.mean(x, axis=-1, keepdims=True)
    xc = x - mu
    var = jnp.mean(xc * xc, axis=-1, keepdims=True)
    xn = xc * lax.rsqrt(var + 1e-5) * g_ref[...] + beta_ref[...]

    h = jnp.dot(xn.astype(jnp.bfloat16), wfc_ref[...],
                preferred_element_type=jnp.float32) + bfc_ref[...]
    c = math.sqrt(2.0 / math.pi)                            # GPT-2 "gelu_new", f32
    h = 0.5 * h * (1.0 + jnp.tanh(c * (h + 0.044715 * h * h * h)))

    y = jnp.dot(h.astype(jnp.bfloat16), wpr_ref[...],
                preferred_element_type=jnp.float32) + bpr_ref[...]
    o_ref[...] = x + y                                      # fused residual


def mlp_block(x, blk):
    M, d = x.shape
    d_ff = blk["w_fc"].shape[1]
    tm = _pick(M, _ROW_PREFS, min_tiles=2)                  # >=2 tiles -> both TCs on v7x
    return pl.pallas_call(
        _mlp_block_kernel,
        out_shape=jax.ShapeDtypeStruct((M, d), jnp.float32),
        grid=(M // tm,),
        in_specs=[
            pl.BlockSpec((tm, d), lambda i: (i, 0)),
            pl.BlockSpec((1, d), lambda i: (0, 0)),
            pl.BlockSpec((1, d), lambda i: (0, 0)),
            pl.BlockSpec((d, d_ff), lambda i: (0, 0)),
            pl.BlockSpec((1, d_ff), lambda i: (0, 0)),
            pl.BlockSpec((d_ff, d), lambda i: (0, 0)),
            pl.BlockSpec((1, d), lambda i: (0, 0)),
        ],
        out_specs=pl.BlockSpec((tm, d), lambda i: (i, 0)),
        compiler_params=_params(("parallel",)),
    )(x, blk["ln2_g"].reshape(1, d), blk["ln2_b"].reshape(1, d),
      blk["w_fc"], blk["b_fc"].reshape(1, d_ff),
      blk["w_mproj"], blk["b_mproj"].reshape(1, d))


# ----------------------------- LM head + cross entropy -----------------------------
# Fused: final LN (once per row tile) -> tied LM head (vocab-tiled, contract on d)
#        -> online log-sum-exp + target-logit gather -> per-row weighted NLL.

def _lm_head_loss_kernel(x_ref, g_ref, beta_ref, wte_ref, lab_ref, wgt_ref,
                         logits_ref, loss_ref, xn_s, m_s, l_s, t_s):
    j = pl.program_id(1)

    @pl.when(j == 0)
    def _():
        # LayerNorm once per row tile, reused for every vocab tile
        x = x_ref[...]
        mu = jnp.mean(x, axis=-1, keepdims=True)
        xc = x - mu
        var = jnp.mean(xc * xc, axis=-1, keepdims=True)
        xn = xc * lax.rsqrt(var + 1e-5) * g_ref[...] + beta_ref[...]
        xn_s[...] = xn.astype(jnp.bfloat16)
        m_s[...] = jnp.full_like(m_s, -jnp.inf)
        l_s[...] = jnp.zeros_like(l_s)
        t_s[...] = jnp.zeros_like(t_s)
        loss_ref[...] = jnp.zeros_like(loss_ref)

    # tied LM head: contract on d against this vocab tile of wte (no wte.T)
    logits = lax.dot_general(xn_s[...], wte_ref[...], (((1,), (1,)), ((), ())),
                             preferred_element_type=jnp.float32)   # (tm, tv)
    logits_ref[...] = logits                                       # required output

    # online log-sum-exp over vocab tiles
    m_new = jnp.maximum(m_s[...], jnp.max(logits, axis=-1, keepdims=True))
    l_s[...] = l_s[...] * jnp.exp(m_s[...] - m_new) + jnp.sum(
        jnp.exp(logits - m_new), axis=-1, keepdims=True)
    m_s[...] = m_new

    # target logit for labels that fall inside this vocab tile
    tv = logits.shape[1]
    col = lax.broadcasted_iota(jnp.int32, logits.shape, 1) + j * tv
    t_s[...] += jnp.sum(jnp.where(col == lab_ref[...], logits, 0.0),
                        axis=-1, keepdims=True)

    @pl.when(j == pl.num_programs(1) - 1)
    def _():
        lse = m_s[...] + jnp.log(l_s[...])
        loss_ref[...] = wgt_ref[...] * (lse - t_s[...])            # (tm, 1)


def lm_head_loss(x, ln_g, ln_b, wte, labels, weights):
    M, d = x.shape
    V = wte.shape[0]
    tm = _pick(M, _ROW_PREFS, min_tiles=2)
    tv = _pick(V, _LANE_PREFS, min_tiles=2)
    logits, loss_rows = pl.pallas_call(
        _lm_head_loss_kernel,
        out_shape=(jax.ShapeDtypeStruct((M, V), jnp.float32),
                   jax.ShapeDtypeStruct((M, 1), jnp.float32)),
        grid=(M // tm, V // tv),
        in_specs=[
            pl.BlockSpec((tm, d), lambda i, j: (i, 0)),
            pl.BlockSpec((1, d), lambda i, j: (0, 0)),
            pl.BlockSpec((1, d), lambda i, j: (0, 0)),
            pl.BlockSpec((tv, d), lambda i, j: (j, 0)),
            pl.BlockSpec((tm, 1), lambda i, j: (i, 0)),
            pl.BlockSpec((tm, 1), lambda i, j: (i, 0)),
        ],
        out_specs=(pl.BlockSpec((tm, tv), lambda i, j: (i, j)),
                   pl.BlockSpec((tm, 1), lambda i, j: (i, 0))),
        scratch_shapes=[pltpu.VMEM((tm, d), jnp.bfloat16),
                        pltpu.VMEM((tm, 1), jnp.float32),
                        pltpu.VMEM((tm, 1), jnp.float32),
                        pltpu.VMEM((tm, 1), jnp.float32)],
        compiler_params=_params(("parallel", "arbitrary")),
    )(x, ln_g.reshape(1, d), ln_b.reshape(1, d), wte,
      labels, weights)
    return logits, loss_rows


# ----------------------------- model glue -----------------------------

CFG = dict(vocab=256, n_ctx=16, d=128, n_head=4, n_layer=2)


def init_params(key, cfg):
    d, v, H = cfg["d"], cfg["vocab"], cfg["n_head"]
    d_head = d // H
    scale = 1.0 / math.sqrt(d_head)
    n_keys = 2 + 4 * cfg["n_layer"]
    ks = jax.random.split(key, n_keys)

    def nrm(k, shape):
        return 0.02 * jax.random.normal(k, shape, jnp.float32)

    params = {
        "wte": nrm(ks[0], (v, d)).astype(jnp.bfloat16),
        "wpe": nrm(ks[1], (cfg["n_ctx"], d)).astype(jnp.bfloat16),
        "ln_f_g": jnp.ones((d,), jnp.float32),
        "ln_f_b": jnp.zeros((d,), jnp.float32),
        "blocks": [],
    }
    ki = 2
    for _ in range(cfg["n_layer"]):
        # fold 1/sqrt(d_head) into the q columns/bias (zero runtime cost)
        w_attn = nrm(ks[ki + 0], (d, 3 * d))
        w_attn = w_attn.at[:, :d].multiply(scale)
        b_attn = jnp.zeros((3 * d,), jnp.float32).at[:d].multiply(scale)
        blk = {
            "ln1_g": jnp.ones((d,), jnp.float32),
            "ln1_b": jnp.zeros((d,), jnp.float32),
            "w_attn": w_attn.astype(jnp.bfloat16),
            "b_attn": b_attn,
            "w_proj": nrm(ks[ki + 1], (d, d)).astype(jnp.bfloat16),
            "b_proj": jnp.zeros((d,), jnp.float32),
            "ln2_g": jnp.ones((d,), jnp.float32),
            "ln2_b": jnp.zeros((d,), jnp.float32),
            "w_fc": nrm(ks[ki + 2], (d, 4 * d)).astype(jnp.bfloat16),
            "b_fc": jnp.zeros((4 * d,), jnp.float32),
            "w_mproj": nrm(ks[ki + 3], (4 * d, d)).astype(jnp.bfloat16),
            "b_mproj": jnp.zeros((d,), jnp.float32),
        }
        ki += 4
        params["blocks"].append(blk)
    return params


def gpt2_forward(params, inputs, masks, cfg):
    """Mirrors GPT2LMHeadModel(inputs, labels=inputs, attention_mask=masks).

    Returns (loss, logits), the main fields of the HF output.
    """
    B, T = inputs.shape
    d, H, V = cfg["d"], cfg["n_head"], cfg["vocab"]
    M = B * T

    # embeddings (gather is glue); residual stream kept in f32
    x = (params["wte"][inputs].astype(jnp.float32)
         + params["wpe"][:T].astype(jnp.float32)[None, :, :])      # (B, T, d)

    # HF-style additive attention-mask bias: 0 where attend, -1e9 where padded
    mask_bias = ((1.0 - masks.astype(jnp.float32)) * -1e9).reshape(B, 1, T)

    for blk in params["blocks"]:
        x = attention_block(x, blk, mask_bias, n_head=H)           # (B, T, d)
        x = mlp_block(x.reshape(M, d), blk).reshape(B, T, d)

    # shifted labels (labels = inputs, as in GPT2LMHeadModel); the last position
    # of each sequence gets weight 0 so no logits slice/copy is needed.
    shift_labels = jnp.concatenate(
        [inputs[:, 1:], jnp.zeros((B, 1), jnp.int32)], axis=1).reshape(M, 1)
    valid = jnp.concatenate(
        [jnp.ones((B, T - 1), jnp.float32), jnp.zeros((B, 1), jnp.float32)],
        axis=1)
    weights = (valid / float(B * (T - 1))).reshape(M, 1)

    logits_flat, loss_rows = lm_head_loss(
        x.reshape(M, d), params["ln_f_g"], params["ln_f_b"], params["wte"],
        shift_labels, weights)
    logits = logits_flat.reshape(B, T, V)
    loss = jnp.sum(loss_rows)
    return loss, logits


if __name__ == "__main__":
    cfg = CFG
    key = jax.random.PRNGKey(0)
    pkey, ikey = jax.random.split(key)
    params = init_params(pkey, cfg)

    B, T = 2, 16
    inputs = jax.random.randint(ikey, (B, T), 0, cfg["vocab"], dtype=jnp.int32)
    masks = jnp.ones((B, T), jnp.float32).at[1, 12:].set(0.0)  # pad tail of seq 1

    fwd = jax.jit(partial(gpt2_forward, cfg=cfg))
    loss, logits = fwd(params, inputs, masks)
    jax.block_until_ready((loss, logits))
    assert logits.shape == (B, T, cfg["vocab"]) and loss.shape == ()
    assert bool(jnp.isfinite(loss))
    print("KERNEL_OK")
</pallas_src>

<mosaic_0001>
module attributes {stable_mosaic.version = 11 : i64} {
  func.func @_attn_block_kernel(%arg0: i32, %arg1: memref<1x16x128xf32, #tpu.memory_space<vmem>>, %arg2: memref<1x128xf32, #tpu.memory_space<vmem>>, %arg3: memref<1x128xf32, #tpu.memory_space<vmem>>, %arg4: memref<128x384xbf16, #tpu.memory_space<vmem>>, %arg5: memref<1x384xf32, #tpu.memory_space<vmem>>, %arg6: memref<128x128xbf16, #tpu.memory_space<vmem>>, %arg7: memref<1x128xf32, #tpu.memory_space<vmem>>, %arg8: memref<1x1x16xf32, #tpu.memory_space<vmem>>, %arg9: memref<1x16x128xf32, #tpu.memory_space<vmem>>) attributes {dimension_semantics = [#tpu.dimension_semantics<parallel>], iteration_bounds = array<i64: 2>, scalar_prefetch = 0 : i64, scratch_operands = 0 : i64, tpu.core_type = #tpu.core_type<tc>, window_params = [{transform_indices = @transform_0, window_bounds = array<i64: 1, 16, 128>}, {pipeline_mode = #tpu.pipeline_mode<synchronous>, transform_indices = @transform_1, window_bounds = array<i64: 1, 128>}, {pipeline_mode = #tpu.pipeline_mode<synchronous>, transform_indices = @transform_2, window_bounds = array<i64: 1, 128>}, {pipeline_mode = #tpu.pipeline_mode<synchronous>, transform_indices = @transform_3, window_bounds = array<i64: 128, 384>}, {pipeline_mode = #tpu.pipeline_mode<synchronous>, transform_indices = @transform_4, window_bounds = array<i64: 1, 384>}, {pipeline_mode = #tpu.pipeline_mode<synchronous>, transform_indices = @transform_5, window_bounds = array<i64: 128, 128>}, {pipeline_mode = #tpu.pipeline_mode<synchronous>, transform_indices = @transform_6, window_bounds = array<i64: 1, 128>}, {transform_indices = @transform_7, window_bounds = array<i64: 1, 1, 16>}, {transform_indices = @transform_8, window_bounds = array<i64: 1, 16, 128>}]} {
    %c0 = arith.constant 0 : index
    %c0_0 = arith.constant 0 : index
    %c0_1 = arith.constant 0 : index
    %0 = vector.load %arg1[%c0, %c0_0, %c0_1] : memref<1x16x128xf32, #tpu.memory_space<vmem>>, vector<1x16x128xf32>
    %1 = vector.shape_cast %0 : vector<1x16x128xf32> to vector<16x128xf32>
    %cst = arith.constant dense<0.000000e+00> : vector<16xf32>
    %2 = vector.multi_reduction <add>, %1, %cst [1] : vector<16x128xf32> to vector<16xf32>
    %3 = vector.shape_cast %2 : vector<16xf32> to vector<16x1xf32>
    %cst_2 = arith.constant 1.280000e+02 : f32
    %4 = vector.broadcast %cst_2 : f32 to vector<16x1xf32>
    %5 = arith.divf %3, %4 : vector<16x1xf32>
    %6 = vector.broadcast %5 : vector<16x1xf32> to vector<16x128xf32>
    %7 = arith.subf %1, %6 : vector<16x128xf32>
    %8 = arith.mulf %7, %7 : vector<16x128xf32>
    %cst_3 = arith.constant dense<0.000000e+00> : vector<16xf32>
    %9 = vector.multi_reduction <add>, %8, %cst_3 [1] : vector<16x128xf32> to vector<16xf32>
    %10 = vector.shape_cast %9 : vector<16xf32> to vector<16x1xf32>
    %cst_4 = arith.constant 1.280000e+02 : f32
    %11 = vector.broadcast %cst_4 : f32 to vector<16x1xf32>
    %12 = arith.divf %10, %11 : vector<16x1xf32>
    %cst_5 = arith.constant 9.99999974E-6 : f32
    %13 = vector.broadcast %cst_5 : f32 to vector<16x1xf32>
    %14 = arith.addf %12, %13 : vector<16x1xf32>
    %15 = math.rsqrt %14 : vector<16x1xf32>
    %16 = vector.broadcast %15 : vector<16x1xf32> to vector<16x128xf32>
    %17 = arith.mulf %7, %16 : vector<16x128xf32>
    %c0_6 = arith.constant 0 : index
    %c0_7 = arith.constant 0 : index
    %18 = vector.load %arg2[%c0_6, %c0_7] : memref<1x128xf32, #tpu.memory_space<vmem>>, vector<1x128xf32>
    %19 = vector.broadcast %18 : vector<1x128xf32> to vector<16x128xf32>
    %20 = arith.mulf %17, %19 : vector<16x128xf32>
    %c0_8 = arith.constant 0 : index
    %c0_9 = arith.constant 0 : index
    %21 = vector.load %arg3[%c0_8, %c0_9] : memref<1x128xf32, #tpu.memory_space<vmem>>, vector<1x128xf32>
    %22 = vector.broadcast %21 : vector<1x128xf32> to vector<16x128xf32>
    %23 = arith.addf %20, %22 : vector<16x128xf32>
    %24 = arith.truncf %23 : vector<16x128xf32> to vector<16x128xbf16>
    %c0_10 = arith.constant 0 : index
    %c0_11 = arith.constant 0 : index
    %25 = vector.load %arg4[%c0_10, %c0_11] : memref<128x384xbf16, #tpu.memory_space<vmem>>, vector<128x384xbf16>
    %cst_12 = arith.constant dense<0.000000e+00> : vector<16x384xf32>
    %26 = tpu.matmul %24, %25, %cst_12 {dimension_numbers = #tpu.dot_dimension_numbers<[1], [0], [0], [1], [0, 0, 1, 1], [], []>} : vector<16x128xbf16>, vector<128x384xbf16>, vector<16x384xf32> -> vector<16x384xf32>
    %c0_13 = arith.constant 0 : index
    %c0_14 = arith.constant 0 : index
    %27 = vector.load %arg5[%c0_13, %c0_14] : memref<1x384xf32, #tpu.memory_space<vmem>>, vector<1x384xf32>
    %28 = vector.broadcast %27 : vector<1x384xf32> to vector<16x384xf32>
    %29 = arith.addf %26, %28 : vector<16x384xf32>
    %30 = arith.truncf %29 : vector<16x384xf32> to vector<16x384xbf16>
    %31 = tpu.iota {dimensions = array<i32: 0>} : vector<16x16xi32>
    %32 = tpu.iota {dimensions = array<i32: 1>} : vector<16x16xi32>
    %33 = arith.cmpi sle, %32, %31 : vector<16x16xi32>
    %c0_15 = arith.constant 0 : index
    %c0_16 = arith.constant 0 : index
    %c0_17 = arith.constant 0 : index
    %34 = vector.load %arg8[%c0_15, %c0_16, %c0_17] : memref<1x1x16xf32, #tpu.memory_space<vmem>>, vector<1x1x16xf32>
    %35 = vector.shape_cast %34 : vector<1x1x16xf32> to vector<1x16xf32>
    %cst_18 = arith.constant -1.000000e+09 : f32
    %36 = vector.shape_cast %35 : vector<1x16xf32> to vector<1x16xf32>
    %37 = vector.broadcast %36 : vector<1x16xf32> to vector<16x16xf32>
    %38 = vector.broadcast %cst_18 : f32 to vector<16x16xf32>
    %39 = arith.select %33, %37, %38 : vector<16x16xi1>, vector<16x16xf32>
    %c0_19 = arith.constant 0 : index
    %c0_20 = arith.constant 0 : index
    %40 = vector.load %arg7[%c0_19, %c0_20] : memref<1x128xf32, #tpu.memory_space<vmem>>, vector<1x128xf32>
    %41 = vector.broadcast %40 : vector<1x128xf32> to vector<16x128xf32>
    %42 = arith.addf %1, %41 : vector<16x128xf32>
    %43 = vector.extract_strided_slice %30 {offsets = [0, 0], sizes = [16, 32], strides = [1, 1]} : vector<16x384xbf16> to vector<16x32xbf16>
    %44 = vector.extract_strided_slice %30 {offsets = [0, 128], sizes = [16, 32], strides = [1, 1]} : vector<16x384xbf16> to vector<16x32xbf16>
    %45 = vector.extract_strided_slice %30 {offsets = [0, 256], sizes = [16, 32], strides = [1, 1]} : vector<16x384xbf16> to vector<16x32xbf16>
    %cst_21 = arith.constant dense<0.000000e+00> : vector<16x16xf32>
    %46 = tpu.matmul %43, %44, %cst_21 {dimension_numbers = #tpu.dot_dimension_numbers<[1], [1], [0], [0], [0, 0, 1, 0], [], []>} : vector<16x32xbf16>, vector<16x32xbf16>, vector<16x16xf32> -> vector<16x16xf32>
    %47 = arith.addf %46, %39 : vector<16x16xf32>
    %cst_22 = arith.constant dense<0xFF800000> : vector<16xf32>
    %48 = vector.multi_reduction <maximumf>, %47, %cst_22 [1] : vector<16x16xf32> to vector<16xf32>
    %49 = vector.shape_cast %48 : vector<16xf32> to vector<16x1xf32>
    %50 = vector.broadcast %49 : vector<16x1xf32> to vector<16x16xf32>
    %51 = arith.subf %47, %50 : vector<16x16xf32>
    %52 = math.exp %51 : vector<16x16xf32>
    %cst_23 = arith.constant dense<0.000000e+00> : vector<16xf32>
    %53 = vector.multi_reduction <add>, %52, %cst_23 [1] : vector<16x16xf32> to vector<16xf32>
    %54 = vector.shape_cast %53 : vector<16xf32> to vector<16x1xf32>
    %55 = vector.broadcast %54 : vector<16x1xf32> to vector<16x16xf32>
    %56 = arith.divf %52, %55 : vector<16x16xf32>
    %57 = arith.truncf %56 : vector<16x16xf32> to vector<16x16xbf16>
    %cst_24 = arith.constant dense<0.000000e+00> : vector<16x32xf32>
    %58 = tpu.matmul %57, %45, %cst_24 {dimension_numbers = #tpu.dot_dimension_numbers<[1], [0], [0], [1], [0, 0, 1, 1], [], []>} : vector<16x16xbf16>, vector<16x32xbf16>, vector<16x32xf32> -> vector<16x32xf32>
    %59 = arith.truncf %58 : vector<16x32xf32> to vector<16x32xbf16>
    %c0_25 = arith.constant 0 : index
    %c0_26 = arith.constant 0 : index
    %60 = vector.load %arg6[%c0_25, %c0_26] : memref<128x128xbf16, #tpu.memory_space<vmem>>, vector<32x128xbf16>
    %cst_27 = arith.constant dense<0.000000e+00> : vector<16x128xf32>
    %61 = tpu.matmul %59, %60, %cst_27 {dimension_numbers = #tpu.dot_dimension_numbers<[1], [0], [0], [1], [0, 0, 1, 1], [], []>} : vector<16x32xbf16>, vector<32x128xbf16>, vector<16x128xf32> -> vector<16x128xf32>
    %62 = arith.addf %42, %61 : vector<16x128xf32>
    %63 = vector.extract_strided_slice %30 {offsets = [0, 32], sizes = [16, 32], strides = [1, 1]} : vector<16x384xbf16> to vector<16x32xbf16>
    %64 = vector.extract_strided_slice %30 {offsets = [0, 160], sizes = [16, 32], strides = [1, 1]} : vector<16x384xbf16> to vector<16x32xbf16>
    %65 = vector.extract_strided_slice %30 {offsets = [0, 288], sizes = [16, 32], strides = [1, 1]} : vector<16x384xbf16> to vector<16x32xbf16>
    %cst_28 = arith.constant dense<0.000000e+00> : vector<16x16xf32>
    %66 = tpu.matmul %63, %64, %cst_28 {dimension_numbers = #tpu.dot_dimension_numbers<[1], [1], [0], [0], [0, 0, 1, 0], [], []>} : vector<16x32xbf16>, vector<16x32xbf16>, vector<16x16xf32> -> vector<16x16xf32>
    %67 = arith.addf %66, %39 : vector<16x16xf32>
    %cst_29 = arith.constant dense<0xFF800000> : vector<16xf32>
    %68 = vector.multi_reduction <maximumf>, %67, %cst_29 [1] : vector<16x16xf32> to vector<16xf32>
    %69 = vector.shape_cast %68 : vector<16xf32> to vector<16x1xf32>
    %70 = vector.broadcast %69 : vector<16x1xf32> to vector<16x16xf32>
    %71 = arith.subf %67, %70 : vector<16x16xf32>
    %72 = math.exp %71 : vector<16x16xf32>
    %cst_30 = arith.constant dense<0.000000e+00> : vector<16xf32>
    %73 = vector.multi_reduction <add>, %72, %cst_30 [1] : vector<16x16xf32> to vector<16xf32>
    %74 = vector.shape_cast %73 : vector<16xf32> to vector<16x1xf32>
    %75 = vector.broadcast %74 : vector<16x1xf32> to vector<16x16xf32>
    %76 = arith.divf %72, %75 : vector<16x16xf32>
    %77 = arith.truncf %76 : vector<16x16xf32> to vector<16x16xbf16>
    %cst_31 = arith.constant dense<0.000000e+00> : vector<16x32xf32>
    %78 = tpu.matmul %77, %65, %cst_31 {dimension_numbers = #tpu.dot_dimension_numbers<[1], [0], [0], [1], [0, 0, 1, 1], [], []>} : vector<16x16xbf16>, vector<16x32xbf16>, vector<16x32xf32> -> vector<16x32xf32>
    %79 = arith.truncf %78 : vector<16x32xf32> to vector<16x32xbf16>
    %c32 = arith.constant 32 : index
    %c0_32 = arith.constant 0 : index
    %80 = vector.load %arg6[%c32, %c0_32] : memref<128x128xbf16, #tpu.memory_space<vmem>>, vector<32x128xbf16>
    %cst_33 = arith.constant dense<0.000000e+00> : vector<16x128xf32>
    %81 = tpu.matmul %79, %80, %cst_33 {dimension_numbers = #tpu.dot_dimension_numbers<[1], [0], [0], [1], [0, 0, 1, 1], [], []>} : vector<16x32xbf16>, vector<32x128xbf16>, vector<16x128xf32> -> vector<16x128xf32>
    %82 = arith.addf %62, %81 : vector<16x128xf32>
    %83 = vector.extract_strided_slice %30 {offsets = [0, 64], sizes = [16, 32], strides = [1, 1]} : vector<16x384xbf16> to vector<16x32xbf16>
    %84 = vector.extract_strided_slice %30 {offsets = [0, 192], sizes = [16, 32], strides = [1, 1]} : vector<16x384xbf16> to vector<16x32xbf16>
    %85 = vector.extract_strided_slice %30 {offsets = [0, 320], sizes = [16, 32], strides = [1, 1]} : vector<16x384xbf16> to vector<16x32xbf16>
    %cst_34 = arith.constant dense<0.000000e+00> : vector<16x16xf32>
    %86 = tpu.matmul %83, %84, %cst_34 {dimension_numbers = #tpu.dot_dimension_numbers<[1], [1], [0], [0], [0, 0, 1, 0], [], []>} : vector<16x32xbf16>, vector<16x32xbf16>, vector<16x16xf32> -> vector<16x16xf32>
    %87 = arith.addf %86, %39 : vector<16x16xf32>
    %cst_35 = arith.constant dense<0xFF800000> : vector<16xf32>
    %88 = vector.multi_reduction <maximumf>, %87, %cst_35 [1] : vector<16x16xf32> to vector<16xf32>
    %89 = vector.shape_cast %88 : vector<16xf32> to vector<16x1xf32>
    %90 = vector.broadcast %89 : vector<16x1xf32> to vector<16x16xf32>
    %91 = arith.subf %87, %90 : vector<16x16xf32>
    %92 = math.exp %91 : vector<16x16xf32>
    %cst_36 = arith.constant dense<0.000000e+00> : vector<16xf32>
    %93 = vector.multi_reduction <add>, %92, %cst_36 [1] : vector<16x16xf32> to vector<16xf32>
    %94 = vector.shape_cast %93 : vector<16xf32> to vector<16x1xf32>
    %95 = vector.broadcast %94 : vector<16x1xf32> to vector<16x16xf32>
    %96 = arith.divf %92, %95 : vector<16x16xf32>
    %97 = arith.truncf %96 : vector<16x16xf32> to vector<16x16xbf16>
    %cst_37 = arith.constant dense<0.000000e+00> : vector<16x32xf32>
    %98 = tpu.matmul %97, %85, %cst_37 {dimension_numbers = #tpu.dot_dimension_numbers<[1], [0], [0], [1], [0, 0, 1, 1], [], []>} : vector<16x16xbf16>, vector<16x32xbf16>, vector<16x32xf32> -> vector<16x32xf32>
    %99 = arith.truncf %98 : vector<16x32xf32> to vector<16x32xbf16>
    %c64 = arith.constant 64 : index
    %c0_38 = arith.constant 0 : index
    %100 = vector.load %arg6[%c64, %c0_38] : memref<128x128xbf16, #tpu.memory_space<vmem>>, vector<32x128xbf16>
    %cst_39 = arith.constant dense<0.000000e+00> : vector<16x128xf32>
    %101 = tpu.matmul %99, %100, %cst_39 {dimension_numbers = #tpu.dot_dimension_numbers<[1], [0], [0], [1], [0, 0, 1, 1], [], []>} : vector<16x32xbf16>, vector<32x128xbf16>, vector<16x128xf32> -> vector<16x128xf32>
    %102 = arith.addf %82, %101 : vector<16x128xf32>
    %103 = vector.extract_strided_slice %30 {offsets = [0, 96], sizes = [16, 32], strides = [1, 1]} : vector<16x384xbf16> to vector<16x32xbf16>
    %104 = vector.extract_strided_slice %30 {offsets = [0, 224], sizes = [16, 32], strides = [1, 1]} : vector<16x384xbf16> to vector<16x32xbf16>
    %105 = vector.extract_strided_slice %30 {offsets = [0, 352], sizes = [16, 32], strides = [1, 1]} : vector<16x384xbf16> to vector<16x32xbf16>
    %cst_40 = arith.constant dense<0.000000e+00> : vector<16x16xf32>
    %106 = tpu.matmul %103, %104, %cst_40 {dimension_numbers = #tpu.dot_dimension_numbers<[1], [1], [0], [0], [0, 0, 1, 0], [], []>} : vector<16x32xbf16>, vector<16x32xbf16>, vector<16x16xf32> -> vector<16x16xf32>
    %107 = arith.addf %106, %39 : vector<16x16xf32>
    %cst_41 = arith.constant dense<0xFF800000> : vector<16xf32>
    %108 = vector.multi_reduction <maximumf>, %107, %cst_41 [1] : vector<16x16xf32> to vector<16xf32>
    %109 = vector.shape_cast %108 : vector<16xf32> to vector<16x1xf32>
    %110 = vector.broadcast %109 : vector<16x1xf32> to vector<16x16xf32>
    %111 = arith.subf %107, %110 : vector<16x16xf32>
    %112 = math.exp %111 : vector<16x16xf32>
    %cst_42 = arith.constant dense<0.000000e+00> : vector<16xf32>
    %113 = vector.multi_reduction <add>, %112, %cst_42 [1] : vector<16x16xf32> to vector<16xf32>
    %114 = vector.shape_cast %113 : vector<16xf32> to vector<16x1xf32>
    %115 = vector.broadcast %114 : vector<16x1xf32> to vector<16x16xf32>
    %116 = arith.divf %112, %115 : vector<16x16xf32>
    %117 = arith.truncf %116 : vector<16x16xf32> to vector<16x16xbf16>
    %cst_43 = arith.constant dense<0.000000e+00> : vector<16x32xf32>
    %118 = tpu.matmul %117, %105, %cst_43 {dimension_numbers = #tpu.dot_dimension_numbers<[1], [0], [0], [1], [0, 0, 1, 1], [], []>} : vector<16x16xbf16>, vector<16x32xbf16>, vector<16x32xf32> -> vector<16x32xf32>
    %119 = arith.truncf %118 : vector<16x32xf32> to vector<16x32xbf16>
    %c96 = arith.constant 96 : index
    %c0_44 = arith.constant 0 : index
    %120 = vector.load %arg6[%c96, %c0_44] : memref<128x128xbf16, #tpu.memory_space<vmem>>, vector<32x128xbf16>
    %cst_45 = arith.constant dense<0.000000e+00> : vector<16x128xf32>
    %121 = tpu.matmul %119, %120, %cst_45 {dimension_numbers = #tpu.dot_dimension_numbers<[1], [0], [0], [1], [0, 0, 1, 1], [], []>} : vector<16x32xbf16>, vector<32x128xbf16>, vector<16x128xf32> -> vector<16x128xf32>
    %122 = arith.addf %102, %121 : vector<16x128xf32>
    %c0_46 = arith.constant 0 : index
    %c0_47 = arith.constant 0 : index
    %c0_48 = arith.constant 0 : index
    %123 = vector.load %arg9[%c0_46, %c0_47, %c0_48] : memref<1x16x128xf32, #tpu.memory_space<vmem>>, vector<1x16x128xf32>
    %124 = vector.shape_cast %123 : vector<1x16x128xf32> to vector<16x128xf32>
    %125 = vector.shape_cast %122 : vector<16x128xf32> to vector<1x16x128xf32>
    tpu.vector_store %arg9[%c0_46, %c0_47, %c0_48], %125 {strides = array<i32>} : memref<1x16x128xf32, #tpu.memory_space<vmem>>, vector<1x16x128xf32>,
    return
  }
  func.func @transform_0(%arg0: i32) -> (i32, i32, i32) {
    %c0_i32 = arith.constant 0 : i32
    %c0_i32_0 = arith.constant 0 : i32
    %c0_i32_1 = arith.constant 0 : i32
    return %arg0, %c0_i32, %c0_i32_0 : i32, i32, i32
  }
  func.func @transform_1(%arg0: i32) -> (i32, i32) {
    %c0_i32 = arith.constant 0 : i32
    %c0_i32_0 = arith.constant 0 : i32
    %c0_i32_1 = arith.constant 0 : i32
    return %c0_i32, %c0_i32_0 : i32, i32
  }
  func.func @transform_2(%arg0: i32) -> (i32, i32) {
    %c0_i32 = arith.constant 0 : i32
    %c0_i32_0 = arith.constant 0 : i32
    %c0_i32_1 = arith.constant 0 : i32
    return %c0_i32, %c0_i32_0 : i32, i32
  }
  func.func @transform_3(%arg0: i32) -> (i32, i32) {
    %c0_i32 = arith.constant 0 : i32
    %c0_i32_0 = arith.constant 0 : i32
    %c0_i32_1 = arith.constant 0 : i32
    return %c0_i32, %c0_i32_0 : i32, i32
  }
  func.func @transform_4(%arg0: i32) -> (i32, i32) {
    %c0_i32 = arith.constant 0 : i32
    %c0_i32_0 = arith.constant 0 : i32
    %c0_i32_1 = arith.constant 0 : i32
    return %c0_i32, %c0_i32_0 : i32, i32
  }
  func.func @transform_5(%arg0: i32) -> (i32, i32) {
    %c0_i32 = arith.constant 0 : i32
    %c0_i32_0 = arith.constant 0 : i32
    %c0_i32_1 = arith.constant 0 : i32
    return %c0_i32, %c0_i32_0 : i32, i32
  }
  func.func @transform_6(%arg0: i32) -> (i32, i32) {
    %c0_i32 = arith.constant 0 : i32
    %c0_i32_0 = arith.constant 0 : i32
    %c0_i32_1 = arith.constant 0 : i32
    return %c0_i32, %c0_i32_0 : i32, i32
  }
  func.func @transform_7(%arg0: i32) -> (i32, i32, i32) {
    %c0_i32 = arith.constant 0 : i32
    %c0_i32_0 = arith.constant 0 : i32
    %c0_i32_1 = arith.constant 0 : i32
    return %arg0, %c0_i32, %c0_i32_0 : i32, i32, i32
  }
  func.func @transform_8(%arg0: i32) -> (i32, i32, i32) {
    %c0_i32 = arith.constant 0 : i32
    %c0_i32_0 = arith.constant 0 : i32
    %c0_i32_1 = arith.constant 0 : i32
    return %arg0, %c0_i32, %c0_i32_0 : i32, i32, i32
  }
}

module attributes {stable_mosaic.version = 11 : i64} {
  func.func @_mlp_block_kernel(%arg0: i32, %arg1: memref<16x128xf32, #tpu.memory_space<vmem>>, %arg2: memref<1x128xf32, #tpu.memory_space<vmem>>, %arg3: memref<1x128xf32, #tpu.memory_space<vmem>>, %arg4: memref<128x512xbf16, #tpu.memory_space<vmem>>, %arg5: memref<1x512xf32, #tpu.memory_space<vmem>>, %arg6: memref<512x128xbf16, #tpu.memory_space<vmem>>, %arg7: memref<1x128xf32, #tpu.memory_space<vmem>>, %arg8: memref<16x128xf32, #tpu.memory_space<vmem>>) attributes {dimension_semantics = [#tpu.dimension_semantics<parallel>], iteration_bounds = array<i64: 2>, scalar_prefetch = 0 : i64, scratch_operands = 0 : i64, tpu.core_type = #tpu.core_type<tc>, window_params = [{transform_indices = @transform_0, window_bounds = array<i64: 16, 128>}, {pipeline_mode = #tpu.pipeline_mode<synchronous>, transform_indices = @transform_1, window_bounds = array<i64: 1, 128>}, {pipeline_mode = #tpu.pipeline_mode<synchronous>, transform_indices = @transform_2, window_bounds = array<i64: 1, 128>}, {pipeline_mode = #tpu.pipeline_mode<synchronous>, transform_indices = @transform_3, window_bounds = array<i64: 128, 512>}, {pipeline_mode = #tpu.pipeline_mode<synchronous>, transform_indices = @transform_4, window_bounds = array<i64: 1, 512>}, {pipeline_mode = #tpu.pipeline_mode<synchronous>, transform_indices = @transform_5, window_bounds = array<i64: 512, 128>}, {pipeline_mode = #tpu.pipeline_mode<synchronous>, transform_indices = @transform_6, window_bounds = array<i64: 1, 128>}, {transform_indices = @transform_7, window_bounds = array<i64: 16, 128>}]} {
    %c0 = arith.constant 0 : index
    %c0_0 = arith.constant 0 : index
    %0 = vector.load %arg1[%c0, %c0_0] : memref<16x128xf32, #tpu.memory_space<vmem>>, vector<16x128xf32>
    %cst = arith.constant dense<0.000000e+00> : vector<16xf32>
    %1 = vector.multi_reduction <add>, %0, %cst [1] : vector<16x128xf32> to vector<16xf32>
    %2 = vector.shape_cast %1 : vector<16xf32> to vector<16x1xf32>
    %cst_1 = arith.constant 1.280000e+02 : f32
    %3 = vector.broadcast %cst_1 : f32 to vector<16x1xf32>
    %4 = arith.divf %2, %3 : vector<16x1xf32>
    %5 = vector.broadcast %4 : vector<16x1xf32> to vector<16x128xf32>
    %6 = arith.subf %0, %5 : vector<16x128xf32>
    %7 = arith.mulf %6, %6 : vector<16x128xf32>
    %cst_2 = arith.constant dense<0.000000e+00> : vector<16xf32>
    %8 = vector.multi_reduction <add>, %7, %cst_2 [1] : vector<16x128xf32> to vector<16xf32>
    %9 = vector.shape_cast %8 : vector<16xf32> to vector<16x1xf32>
    %cst_3 = arith.constant 1.280000e+02 : f32
    %10 = vector.broadcast %cst_3 : f32 to vector<16x1xf32>
    %11 = arith.divf %9, %10 : vector<16x1xf32>
    %cst_4 = arith.constant 9.99999974E-6 : f32
    %12 = vector.broadcast %cst_4 : f32 to vector<16x1xf32>
    %13 = arith.addf %11, %12 : vector<16x1xf32>
    %14 = math.rsqrt %13 : vector<16x1xf32>
    %15 = vector.broadcast %14 : vector<16x1xf32> to vector<16x128xf32>
    %16 = arith.mulf %6, %15 : vector<16x128xf32>
    %c0_5 = arith.constant 0 : index
    %c0_6 = arith.constant 0 : index
    %17 = vector.load %arg2[%c0_5, %c0_6] : memref<1x128xf32, #tpu.memory_space<vmem>>, vector<1x128xf32>
    %18 = vector.broadcast %17 : vector<1x128xf32> to vector<16x128xf32>
    %19 = arith.mulf %16, %18 : vector<16x128xf32>
    %c0_7 = arith.constant 0 : index
    %c0_8 = arith.constant 0 : index
    %20 = vector.load %arg3[%c0_7, %c0_8] : memref<1x128xf32, #tpu.memory_space<vmem>>, vector<1x128xf32>
    %21 = vector.broadcast %20 : vector<1x128xf32> to vector<16x128xf32>
    %22 = arith.addf %19, %21 : vector<16x128xf32>
    %23 = arith.truncf %22 : vector<16x128xf32> to vector<16x128xbf16>
    %c0_9 = arith.constant 0 : index
    %c0_10 = arith.constant 0 : index
    %24 = vector.load %arg4[%c0_9, %c0_10] : memref<128x512xbf16, #tpu.memory_space<vmem>>, vector<128x512xbf16>
    %cst_11 = arith.constant dense<0.000000e+00> : vector<16x512xf32>
    %25 = tpu.matmul %23, %24, %cst_11 {dimension_numbers = #tpu.dot_dimension_numbers<[1], [0], [0], [1], [0, 0, 1, 1], [], []>} : vector<16x128xbf16>, vector<128x512xbf16>, vector<16x512xf32> -> vector<16x512xf32>
    %c0_12 = arith.constant 0 : index
    %c0_13 = arith.constant 0 : index
    %26 = vector.load %arg5[%c0_12, %c0_13] : memref<1x512xf32, #tpu.memory_space<vmem>>, vector<1x512xf32>
    %27 = vector.broadcast %26 : vector<1x512xf32> to vector<16x512xf32>
    %28 = arith.addf %25, %27 : vector<16x512xf32>
    %cst_14 = arith.constant 5.000000e-01 : f32
    %29 = vector.broadcast %cst_14 : f32 to vector<16x512xf32>
    %30 = arith.mulf %29, %28 : vector<16x512xf32>
    %cst_15 = arith.constant 4.471500e-02 : f32
    %31 = vector.broadcast %cst_15 : f32 to vector<16x512xf32>
    %32 = arith.mulf %31, %28 : vector<16x512xf32>
    %33 = arith.mulf %32, %28 : vector<16x512xf32>
    %34 = arith.mulf %33, %28 : vector<16x512xf32>
    %35 = arith.addf %28, %34 : vector<16x512xf32>
    %cst_16 = arith.constant 0.797884583 : f32
    %36 = vector.broadcast %cst_16 : f32 to vector<16x512xf32>
    %37 = arith.mulf %36, %35 : vector<16x512xf32>
    %38 = math.tanh %37 : vector<16x512xf32>
    %cst_17 = arith.constant 1.000000e+00 : f32
    %39 = vector.broadcast %cst_17 : f32 to vector<16x512xf32>
    %40 = arith.addf %39, %38 : vector<16x512xf32>
    %41 = arith.mulf %30, %40 : vector<16x512xf32>
    %42 = arith.truncf %41 : vector<16x512xf32> to vector<16x512xbf16>
    %c0_18 = arith.constant 0 : index
    %c0_19 = arith.constant 0 : index
    %43 = vector.load %arg6[%c0_18, %c0_19] : memref<512x128xbf16, #tpu.memory_space<vmem>>, vector<512x128xbf16>
    %cst_20 = arith.constant dense<0.000000e+00> : vector<16x128xf32>
    %44 = tpu.matmul %42, %43, %cst_20 {dimension_numbers = #tpu.dot_dimension_numbers<[1], [0], [0], [1], [0, 0, 1, 1], [], []>} : vector<16x512xbf16>, vector<512x128xbf16>, vector<16x128xf32> -> vector<16x128xf32>
    %c0_21 = arith.constant 0 : index
    %c0_22 = arith.constant 0 : index
    %45 = vector.load %arg7[%c0_21, %c0_22] : memref<1x128xf32, #tpu.memory_space<vmem>>, vector<1x128xf32>
    %46 = vector.broadcast %45 : vector<1x128xf32> to vector<16x128xf32>
    %47 = arith.addf %44, %46 : vector<16x128xf32>
    %48 = arith.addf %0, %47 : vector<16x128xf32>
    %c0_23 = arith.constant 0 : index
    %c0_24 = arith.constant 0 : index
    %49 = vector.load %arg8[%c0_23, %c0_24] : memref<16x128xf32, #tpu.memory_space<vmem>>, vector<16x128xf32>
    tpu.vector_store %arg8[%c0_23, %c0_24], %48 {strides = array<i32>} : memref<16x128xf32, #tpu.memory_space<vmem>>, vector<16x128xf32>,
    return
  }
  func.func @transform_0(%arg0: i32) -> (i32, i32) {
    %c0_i32 = arith.constant 0 : i32
    %c0_i32_0 = arith.constant 0 : i32
    return %arg0, %c0_i32 : i32, i32
  }
  func.func @transform_1(%arg0: i32) -> (i32, i32) {
    %c0_i32 = arith.constant 0 : i32
    %c0_i32_0 = arith.constant 0 : i32
    %c0_i32_1 = arith.constant 0 : i32
    return %c0_i32, %c0_i32_0 : i32, i32
  }
  func.func @transform_2(%arg0: i32) -> (i32, i32) {
    %c0_i32 = arith.constant 0 : i32
    %c0_i32_0 = arith.constant 0 : i32
    %c0_i32_1 = arith.constant 0 : i32
    return %c0_i32, %c0_i32_0 : i32, i32
  }
  func.func @transform_3(%arg0: i32) -> (i32, i32) {
    %c0_i32 = arith.constant 0 : i32
    %c0_i32_0 = arith.constant 0 : i32
    %c0_i32_1 = arith.constant 0 : i32
    return %c0_i32, %c0_i32_0 : i32, i32
  }
  func.func @transform_4(%arg0: i32) -> (i32, i32) {
    %c0_i32 = arith.constant 0 : i32
    %c0_i32_0 = arith.constant 0 : i32
    %c0_i32_1 = arith.constant 0 : i32
    return %c0_i32, %c0_i32_0 : i32, i32
  }
  func.func @transform_5(%arg0: i32) -> (i32, i32) {
    %c0_i32 = arith.constant 0 : i32
    %c0_i32_0 = arith.constant 0 : i32
    %c0_i32_1 = arith.constant 0 : i32
    return %c0_i32, %c0_i32_0 : i32, i32
  }
  func.func @transform_6(%arg0: i32) -> (i32, i32) {
    %c0_i32 = arith.constant 0 : i32
    %c0_i32_0 = arith.constant 0 : i32
    %c0_i32_1 = arith.constant 0 : i32
    return %c0_i32, %c0_i32_0 : i32, i32
  }
  func.func @transform_7(%arg0: i32) -> (i32, i32) {
    %c0_i32 = arith.constant 0 : i32
    %c0_i32_0 = arith.constant 0 : i32
    return %arg0, %c0_i32 : i32, i32
  }
}

module attributes {stable_mosaic.version = 11 : i64} {
  func.func @_attn_block_kernel(%arg0: i32, %arg1: memref<1x16x128xf32, #tpu.memory_space<vmem>>, %arg2: memref<1x128xf32, #tpu.memory_space<vmem>>, %arg3: memref<1x128xf32, #tpu.memory_space<vmem>>, %arg4: memref<128x384xbf16, #tpu.memory_space<vmem>>, %arg5: memref<1x384xf32, #tpu.memory_space<vmem>>, %arg6: memref<128x128xbf16, #tpu.memory_space<vmem>>, %arg7: memref<1x128xf32, #tpu.memory_space<vmem>>, %arg8: memref<1x1x16xf32, #tpu.memory_space<vmem>>, %arg9: memref<1x16x128xf32, #tpu.memory_space<vmem>>) attributes {dimension_semantics = [#tpu.dimension_semantics<parallel>], iteration_bounds = array<i64: 2>, scalar_prefetch = 0 : i64, scratch_operands = 0 : i64, tpu.core_type = #tpu.core_type<tc>, window_params = [{transform_indices = @transform_0, window_bounds = array<i64: 1, 16, 128>}, {pipeline_mode = #tpu.pipeline_mode<synchronous>, transform_indices = @transform_1, window_bounds = array<i64: 1, 128>}, {pipeline_mode = #tpu.pipeline_mode<synchronous>, transform_indices = @transform_2, window_bounds = array<i64: 1, 128>}, {pipeline_mode = #tpu.pipeline_mode<synchronous>, transform_indices = @transform_3, window_bounds = array<i64: 128, 384>}, {pipeline_mode = #tpu.pipeline_mode<synchronous>, transform_indices = @transform_4, window_bounds = array<i64: 1, 384>}, {pipeline_mode = #tpu.pipeline_mode<synchronous>, transform_indices = @transform_5, window_bounds = array<i64: 128, 128>}, {pipeline_mode = #tpu.pipeline_mode<synchronous>, transform_indices = @transform_6, window_bounds = array<i64: 1, 128>}, {transform_indices = @transform_7, window_bounds = array<i64: 1, 1, 16>}, {transform_indices = @transform_8, window_bounds = array<i64: 1, 16, 128>}]} {
    %c0 = arith.constant 0 : index
    %c0_0 = arith.constant 0 : index
    %c0_1 = arith.constant 0 : index
    %0 = vector.load %arg1[%c0, %c0_0, %c0_1] : memref<1x16x128xf32, #tpu.memory_space<vmem>>, vector<1x16x128xf32>
    %1 = vector.shape_cast %0 : vector<1x16x128xf32> to vector<16x128xf32>
    %cst = arith.constant dense<0.000000e+00> : vector<16xf32>
    %2 = vector.multi_reduction <add>, %1, %cst [1] : vector<16x128xf32> to vector<16xf32>
    %3 = vector.shape_cast %2 : vector<16xf32> to vector<16x1xf32>
    %cst_2 = arith.constant 1.280000e+02 : f32
    %4 = vector.broadcast %cst_2 : f32 to vector<16x1xf32>
    %5 = arith.divf %3, %4 : vector<16x1xf32>
    %6 = vector.broadcast %5 : vector<16x1xf32> to vector<16x128xf32>
    %7 = arith.subf %1, %6 : vector<16x128xf32>
    %8 = arith.mulf %7, %7 : vector<16x128xf32>
    %cst_3 = arith.constant dense<0.000000e+00> : vector<16xf32>
    %9 = vector.multi_reduction <add>, %8, %cst_3 [1] : vector<16x128xf32> to vector<16xf32>
    %10 = vector.shape_cast %9 : vector<16xf32> to vector<16x1xf32>
    %cst_4 = arith.constant 1.280000e+02 : f32
    %11 = vector.broadcast %cst_4 : f32 to vector<16x1xf32>
    %12 = arith.divf %10, %11 : vector<16x1xf32>
    %cst_5 = arith.constant 9.99999974E-6 : f32
    %13 = vector.broadcast %cst_5 : f32 to vector<16x1xf32>
    %14 = arith.addf %12, %13 : vector<16x1xf32>
    %15 = math.rsqrt %14 : vector<16x1xf32>
    %16 = vector.broadcast %15 : vector<16x1xf32> to vector<16x128xf32>
    %17 = arith.mulf %7, %16 : vector<16x128xf32>
    %c0_6 = arith.constant 0 : index
    %c0_7 = arith.constant 0 : index
    %18 = vector.load %arg2[%c0_6, %c0_7] : memref<1x128xf32, #tpu.memory_space<vmem>>, vector<1x128xf32>
    %19 = vector.broadcast %18 : vector<1x128xf32> to vector<16x128xf32>
    %20 = arith.mulf %17, %19 : vector<16x128xf32>
    %c0_8 = arith.constant 0 : index
    %c0_9 = arith.constant 0 : index
    %21 = vector.load %arg3[%c0_8, %c0_9] : memref<1x128xf32, #tpu.memory_space<vmem>>, vector<1x128xf32>
    %22 = vector.broadcast %21 : vector<1x128xf32> to vector<16x128xf32>
    %23 = arith.addf %20, %22 : vector<16x128xf32>
    %24 = arith.truncf %23 : vector<16x128xf32> to vector<16x128xbf16>
    %c0_10 = arith.constant 0 : index
    %c0_11 = arith.constant 0 : index
    %25 = vector.load %arg4[%c0_10, %c0_11] : memref<128x384xbf16, #tpu.memory_space<vmem>>, vector<128x384xbf16>
    %cst_12 = arith.constant dense<0.000000e+00> : vector<16x384xf32>
    %26 = tpu.matmul %24, %25, %cst_12 {dimension_numbers = #tpu.dot_dimension_numbers<[1], [0], [0], [1], [0, 0, 1, 1], [], []>} : vector<16x128xbf16>, vector<128x384xbf16>, vector<16x384xf32> -> vector<16x384xf32>
    %c0_13 = arith.constant 0 : index
    %c0_14 = arith.constant 0 : index
    %27 = vector.load %arg5[%c0_13, %c0_14] : memref<1x384xf32, #tpu.memory_space<vmem>>, vector<1x384xf32>
    %28 = vector.broadcast %27 : vector<1x384xf32> to vector<16x384xf32>
    %29 = arith.addf %26, %28 : vector<16x384xf32>
    %30 = arith.truncf %29 : vector<16x384xf32> to vector<16x384xbf16>
    %31 = tpu.iota {dimensions = array<i32: 0>} : vector<16x16xi32>
    %32 = tpu.iota {dimensions = array<i32: 1>} : vector<16x16xi32>
    %33 = arith.cmpi sle, %32, %31 : vector<16x16xi32>
    %c0_15 = arith.constant 0 : index
    %c0_16 = arith.constant 0 : index
    %c0_17 = arith.constant 0 : index
    %34 = vector.load %arg8[%c0_15, %c0_16, %c0_17] : memref<1x1x16xf32, #tpu.memory_space<vmem>>, vector<1x1x16xf32>
    %35 = vector.shape_cast %34 : vector<1x1x16xf32> to vector<1x16xf32>
    %cst_18 = arith.constant -1.000000e+09 : f32
    %36 = vector.shape_cast %35 : vector<1x16xf32> to vector<1x16xf32>
    %37 = vector.broadcast %36 : vector<1x16xf32> to vector<16x16xf32>
    %38 = vector.broadcast %cst_18 : f32 to vector<16x16xf32>
    %39 = arith.select %33, %37, %38 : vector<16x16xi1>, vector<16x16xf32>
    %c0_19 = arith.constant 0 : index
    %c0_20 = arith.constant 0 : index
    %40 = vector.load %arg7[%c0_19, %c0_20] : memref<1x128xf32, #tpu.memory_space<vmem>>, vector<1x128xf32>
    %41 = vector.broadcast %40 : vector<1x128xf32> to vector<16x128xf32>
    %42 = arith.addf %1, %41 : vector<16x128xf32>
    %43 = vector.extract_strided_slice %30 {offsets = [0, 0], sizes = [16, 32], strides = [1, 1]} : vector<16x384xbf16> to vector<16x32xbf16>
    %44 = vector.extract_strided_slice %30 {offsets = [0, 128], sizes = [16, 32], strides = [1, 1]} : vector<16x384xbf16> to vector<16x32xbf16>
    %45 = vector.extract_strided_slice %30 {offsets = [0, 256], sizes = [16, 32], strides = [1, 1]} : vector<16x384xbf16> to vector<16x32xbf16>
    %cst_21 = arith.constant dense<0.000000e+00> : vector<16x16xf32>
    %46 = tpu.matmul %43, %44, %cst_21 {dimension_numbers = #tpu.dot_dimension_numbers<[1], [1], [0], [0], [0, 0, 1, 0], [], []>} : vector<16x32xbf16>, vector<16x32xbf16>, vector<16x16xf32> -> vector<16x16xf32>
    %47 = arith.addf %46, %39 : vector<16x16xf32>
    %cst_22 = arith.constant dense<0xFF800000> : vector<16xf32>
    %48 = vector.multi_reduction <maximumf>, %47, %cst_22 [1] : vector<16x16xf32> to vector<16xf32>
    %49 = vector.shape_cast %48 : vector<16xf32> to vector<16x1xf32>
    %50 = vector.broadcast %49 : vector<16x1xf32> to vector<16x16xf32>
    %51 = arith.subf %47, %50 : vector<16x16xf32>
    %52 = math.exp %51 : vector<16x16xf32>
    %cst_23 = arith.constant dense<0.000000e+00> : vector<16xf32>
    %53 = vector.multi_reduction <add>, %52, %cst_23 [1] : vector<16x16xf32> to vector<16xf32>
    %54 = vector.shape_cast %53 : vector<16xf32> to vector<16x1xf32>
    %55 = vector.broadcast %54 : vector<16x1xf32> to vector<16x16xf32>
    %56 = arith.divf %52, %55 : vector<16x16xf32>
    %57 = arith.truncf %56 : vector<16x16xf32> to vector<16x16xbf16>
    %cst_24 = arith.constant dense<0.000000e+00> : vector<16x32xf32>
    %58 = tpu.matmul %57, %45, %cst_24 {dimension_numbers = #tpu.dot_dimension_numbers<[1], [0], [0], [1], [0, 0, 1, 1], [], []>} : vector<16x16xbf16>, vector<16x32xbf16>, vector<16x32xf32> -> vector<16x32xf32>
    %59 = arith.truncf %58 : vector<16x32xf32> to vector<16x32xbf16>
    %c0_25 = arith.constant 0 : index
    %c0_26 = arith.constant 0 : index
    %60 = vector.load %arg6[%c0_25, %c0_26] : memref<128x128xbf16, #tpu.memory_space<vmem>>, vector<32x128xbf16>
    %cst_27 = arith.constant dense<0.000000e+00> : vector<16x128xf32>
    %61 = tpu.matmul %59, %60, %cst_27 {dimension_numbers = #tpu.dot_dimension_numbers<[1], [0], [0], [1], [0, 0, 1, 1], [], []>} : vector<16x32xbf16>, vector<32x128xbf16>, vector<16x128xf32> -> vector<16x128xf32>
    %62 = arith.addf %42, %61 : vector<16x128xf32>
    %63 = vector.extract_strided_slice %30 {offsets = [0, 32], sizes = [16, 32], strides = [1, 1]} : vector<16x384xbf16> to vector<16x32xbf16>
    %64 = vector.extract_strided_slice %30 {offsets = [0, 160], sizes = [16, 32], strides = [1, 1]} : vector<16x384xbf16> to vector<16x32xbf16>
    %65 = vector.extract_strided_slice %30 {offsets = [0, 288], sizes = [16, 32], strides = [1, 1]} : vector<16x384xbf16> to vector<16x32xbf16>
    %cst_28 = arith.constant dense<0.000000e+00> : vector<16x16xf32>
    %66 = tpu.matmul %63, %64, %cst_28 {dimension_numbers = #tpu.dot_dimension_numbers<[1], [1], [0], [0], [0, 0, 1, 0], [], []>} : vector<16x32xbf16>, vector<16x32xbf16>, vector<16x16xf32> -> vector<16x16xf32>
    %67 = arith.addf %66, %39 : vector<16x16xf32>
    %cst_29 = arith.constant dense<0xFF800000> : vector<16xf32>
    %68 = vector.multi_reduction <maximumf>, %67, %cst_29 [1] : vector<16x16xf32> to vector<16xf32>
    %69 = vector.shape_cast %68 : vector<16xf32> to vector<16x1xf32>
    %70 = vector.broadcast %69 : vector<16x1xf32> to vector<16x16xf32>
    %71 = arith.subf %67, %70 : vector<16x16xf32>
    %72 = math.exp %71 : vector<16x16xf32>
    %cst_30 = arith.constant dense<0.000000e+00> : vector<16xf32>
    %73 = vector.multi_reduction <add>, %72, %cst_30 [1] : vector<16x16xf32> to vector<16xf32>
    %74 = vector.shape_cast %73 : vector<16xf32> to vector<16x1xf32>
    %75 = vector.broadcast %74 : vector<16x1xf32> to vector<16x16xf32>
    %76 = arith.divf %72, %75 : vector<16x16xf32>
    %77 = arith.truncf %76 : vector<16x16xf32> to vector<16x16xbf16>
    %cst_31 = arith.constant dense<0.000000e+00> : vector<16x32xf32>
    %78 = tpu.matmul %77, %65, %cst_31 {dimension_numbers = #tpu.dot_dimension_numbers<[1], [0], [0], [1], [0, 0, 1, 1], [], []>} : vector<16x16xbf16>, vector<16x32xbf16>, vector<16x32xf32> -> vector<16x32xf32>
    %79 = arith.truncf %78 : vector<16x32xf32> to vector<16x32xbf16>
    %c32 = arith.constant 32 : index
    %c0_32 = arith.constant 0 : index
    %80 = vector.load %arg6[%c32, %c0_32] : memref<128x128xbf16, #tpu.memory_space<vmem>>, vector<32x128xbf16>
    %cst_33 = arith.constant dense<0.000000e+00> : vector<16x128xf32>
    %81 = tpu.matmul %79, %80, %cst_33 {dimension_numbers = #tpu.dot_dimension_numbers<[1], [0], [0], [1], [0, 0, 1, 1], [], []>} : vector<16x32xbf16>, vector<32x128xbf16>, vector<16x128xf32> -> vector<16x128xf32>
    %82 = arith.addf %62, %81 : vector<16x128xf32>
    %83 = vector.extract_strided_slice %30 {offsets = [0, 64], sizes = [16, 32], strides = [1, 1]} : vector<16x384xbf16> to vector<16x32xbf16>
    %84 = vector.extract_strided_slice %30 {offsets = [0, 192], sizes = [16, 32], strides = [1, 1]} : vector<16x384xbf16> to vector<16x32xbf16>
    %85 = vector.extract_strided_slice %30 {offsets = [0, 320], sizes = [16, 32], strides = [1, 1]} : vector<16x384xbf16> to vector<16x32xbf16>
    %cst_34 = arith.constant dense<0.000000e+00> : vector<16x16xf32>
    %86 = tpu.matmul %83, %84, %cst_34 {dimension_numbers = #tpu.dot_dimension_numbers<[1], [1], [0], [0], [0, 0, 1, 0], [], []>} : vector<16x32xbf16>, vector<16x32xbf16>, vector<16x16xf32> -> vector<16x16xf32>
    %87 = arith.addf %86, %39 : vector<16x16xf32>
    %cst_35 = arith.constant dense<0xFF800000> : vector<16xf32>
    %88 = vector.multi_reduction <maximumf>, %87, %cst_35 [1] : vector<16x16xf32> to vector<16xf32>
    %89 = vector.shape_cast %88 : vector<16xf32> to vector<16x1xf32>
    %90 = vector.broadcast %89 : vector<16x1xf32> to vector<16x16xf32>
    %91 = arith.subf %87, %90 : vector<16x16xf32>
    %92 = math.exp %91 : vector<16x16xf32>
    %cst_36 = arith.constant dense<0.000000e+00> : vector<16xf32>
    %93 = vector.multi_reduction <add>, %92, %cst_36 [1] : vector<16x16xf32> to vector<16xf32>
    %94 = vector.shape_cast %93 : vector<16xf32> to vector<16x1xf32>
    %95 = vector.broadcast %94 : vector<16x1xf32> to vector<16x16xf32>
    %96 = arith.divf %92, %95 : vector<16x16xf32>
    %97 = arith.truncf %96 : vector<16x16xf32> to vector<16x16xbf16>
    %cst_37 = arith.constant dense<0.000000e+00> : vector<16x32xf32>
    %98 = tpu.matmul %97, %85, %cst_37 {dimension_numbers = #tpu.dot_dimension_numbers<[1], [0], [0], [1], [0, 0, 1, 1], [], []>} : vector<16x16xbf16>, vector<16x32xbf16>, vector<16x32xf32> -> vector<16x32xf32>
    %99 = arith.truncf %98 : vector<16x32xf32> to vector<16x32xbf16>
    %c64 = arith.constant 64 : index
    %c0_38 = arith.constant 0 : index
    %100 = vector.load %arg6[%c64, %c0_38] : memref<128x128xbf16, #tpu.memory_space<vmem>>, vector<32x128xbf16>
    %cst_39 = arith.constant dense<0.000000e+00> : vector<16x128xf32>
    %101 = tpu.matmul %99, %100, %cst_39 {dimension_numbers = #tpu.dot_dimension_numbers<[1], [0], [0], [1], [0, 0, 1, 1], [], []>} : vector<16x32xbf16>, vector<32x128xbf16>, vector<16x128xf32> -> vector<16x128xf32>
    %102 = arith.addf %82, %101 : vector<16x128xf32>
    %103 = vector.extract_strided_slice %30 {offsets = [0, 96], sizes = [16, 32], strides = [1, 1]} : vector<16x384xbf16> to vector<16x32xbf16>
    %104 = vector.extract_strided_slice %30 {offsets = [0, 224], sizes = [16, 32], strides = [1, 1]} : vector<16x384xbf16> to vector<16x32xbf16>
    %105 = vector.extract_strided_slice %30 {offsets = [0, 352], sizes = [16, 32], strides = [1, 1]} : vector<16x384xbf16> to vector<16x32xbf16>
    %cst_40 = arith.constant dense<0.000000e+00> : vector<16x16xf32>
    %106 = tpu.matmul %103, %104, %cst_40 {dimension_numbers = #tpu.dot_dimension_numbers<[1], [1], [0], [0], [0, 0, 1, 0], [], []>} : vector<16x32xbf16>, vector<16x32xbf16>, vector<16x16xf32> -> vector<16x16xf32>
    %107 = arith.addf %106, %39 : vector<16x16xf32>
    %cst_41 = arith.constant dense<0xFF800000> : vector<16xf32>
    %108 = vector.multi_reduction <maximumf>, %107, %cst_41 [1] : vector<16x16xf32> to vector<16xf32>
    %109 = vector.shape_cast %108 : vector<16xf32> to vector<16x1xf32>
    %110 = vector.broadcast %109 : vector<16x1xf32> to vector<16x16xf32>
    %111 = arith.subf %107, %110 : vector<16x16xf32>
    %112 = math.exp %111 : vector<16x16xf32>
    %cst_42 = arith.constant dense<0.000000e+00> : vector<16xf32>
    %113 = vector.multi_reduction <add>, %112, %cst_42 [1] : vector<16x16xf32> to vector<16xf32>
    %114 = vector.shape_cast %113 : vector<16xf32> to vector<16x1xf32>
    %115 = vector.broadcast %114 : vector<16x1xf32> to vector<16x16xf32>
    %116 = arith.divf %112, %115 : vector<16x16xf32>
    %117 = arith.truncf %116 : vector<16x16xf32> to vector<16x16xbf16>
    %cst_43 = arith.constant dense<0.000000e+00> : vector<16x32xf32>
    %118 = tpu.matmul %117, %105, %cst_43 {dimension_numbers = #tpu.dot_dimension_numbers<[1], [0], [0], [1], [0, 0, 1, 1], [], []>} : vector<16x16xbf16>, vector<16x32xbf16>, vector<16x32xf32> -> vector<16x32xf32>
    %119 = arith.truncf %118 : vector<16x32xf32> to vector<16x32xbf16>
    %c96 = arith.constant 96 : index
    %c0_44 = arith.constant 0 : index
    %120 = vector.load %arg6[%c96, %c0_44] : memref<128x128xbf16, #tpu.memory_space<vmem>>, vector<32x128xbf16>
    %cst_45 = arith.constant dense<0.000000e+00> : vector<16x128xf32>
    %121 = tpu.matmul %119, %120, %cst_45 {dimension_numbers = #tpu.dot_dimension_numbers<[1], [0], [0], [1], [0, 0, 1, 1], [], []>} : vector<16x32xbf16>, vector<32x128xbf16>, vector<16x128xf32> -> vector<16x128xf32>
    %122 = arith.addf %102, %121 : vector<16x128xf32>
    %c0_46 = arith.constant 0 : index
    %c0_47 = arith.constant 0 : index
    %c0_48 = arith.constant 0 : index
    %123 = vector.load %arg9[%c0_46, %c0_47, %c0_48] : memref<1x16x128xf32, #tpu.memory_space<vmem>>, vector<1x16x128xf32>
    %124 = vector.shape_cast %123 : vector<1x16x128xf32> to vector<16x128xf32>
    %125 = vector.shape_cast %122 : vector<16x128xf32> to vector<1x16x128xf32>
    tpu.vector_store %arg9[%c0_46, %c0_47, %c0_48], %125 {strides = array<i32>} : memref<1x16x128xf32, #tpu.memory_space<vmem>>, vector<1x16x128xf32>,
    return
  }
  func.func @transform_0(%arg0: i32) -> (i32, i32, i32) {
    %c0_i32 = arith.constant 0 : i32
    %c0_i32_0 = arith.constant 0 : i32
    %c0_i32_1 = arith.constant 0 : i32
    return %arg0, %c0_i32, %c0_i32_0 : i32, i32, i32
  }
  func.func @transform_1(%arg0: i32) -> (i32, i32) {
    %c0_i32 = arith.constant 0 : i32
    %c0_i32_0 = arith.constant 0 : i32
    %c0_i32_1 = arith.constant 0 : i32
    return %c0_i32, %c0_i32_0 : i32, i32
  }
  func.func @transform_2(%arg0: i32) -> (i32, i32) {
    %c0_i32 = arith.constant 0 : i32
    %c0_i32_0 = arith.constant 0 : i32
    %c0_i32_1 = arith.constant 0 : i32
    return %c0_i32, %c0_i32_0 : i32, i32
  }
  func.func @transform_3(%arg0: i32) -> (i32, i32) {
    %c0_i32 = arith.constant 0 : i32
    %c0_i32_0 = arith.constant 0 : i32
    %c0_i32_1 = arith.constant 0 : i32
    return %c0_i32, %c0_i32_0 : i32, i32
  }
  func.func @transform_4(%arg0: i32) -> (i32, i32) {
    %c0_i32 = arith.constant 0 : i32
    %c0_i32_0 = arith.constant 0 : i32
    %c0_i32_1 = arith.constant 0 : i32
    return %c0_i32, %c0_i32_0 : i32, i32
  }
  func.func @transform_5(%arg0: i32) -> (i32, i32) {
    %c0_i32 = arith.constant 0 : i32
    %c0_i32_0 = arith.constant 0 : i32
    %c0_i32_1 = arith.constant 0 : i32
    return %c0_i32, %c0_i32_0 : i32, i32
  }
  func.func @transform_6(%arg0: i32) -> (i32, i32) {
    %c0_i32 = arith.constant 0 : i32
    %c0_i32_0 = arith.constant 0 : i32
    %c0_i32_1 = arith.constant 0 : i32
    return %c0_i32, %c0_i32_0 : i32, i32
  }
  func.func @transform_7(%arg0: i32) -> (i32, i32, i32) {
    %c0_i32 = arith.constant 0 : i32
    %c0_i32_0 = arith.constant 0 : i32
    %c0_i32_1 = arith.constant 0 : i32
    return %arg0, %c0_i32, %c0_i32_0 : i32, i32, i32
  }
  func.func @transform_8(%arg0: i32) -> (i32, i32, i32) {
    %c0_i32 = arith.constant 0 : i32
    %c0_i32_0 = arith.constant 0 : i32
    %c0_i32_1 = arith.constant 0 : i32
    return %arg0, %c0_i32, %c0_i32_0 : i32, i32, i32
  }
}

module attributes {stable_mosaic.version = 11 : i64} {
  func.func @_mlp_block_kernel(%arg0: i32, %arg1: memref<16x128xf32, #tpu.memory_space<vmem>>, %arg2: memref<1x128xf32, #tpu.memory_space<vmem>>, %arg3: memref<1x128xf32, #tpu.memory_space<vmem>>, %arg4: memref<128x512xbf16, #tpu.memory_space<vmem>>, %arg5: memref<1x512xf32, #tpu.memory_space<vmem>>, %arg6: memref<512x128xbf16, #tpu.memory_space<vmem>>, %arg7: memref<1x128xf32, #tpu.memory_space<vmem>>, %arg8: memref<16x128xf32, #tpu.memory_space<vmem>>) attributes {dimension_semantics = [#tpu.dimension_semantics<parallel>], iteration_bounds = array<i64: 2>, scalar_prefetch = 0 : i64, scratch_operands = 0 : i64, tpu.core_type = #tpu.core_type<tc>, window_params = [{transform_indices = @transform_0, window_bounds = array<i64: 16, 128>}, {pipeline_mode = #tpu.pipeline_mode<synchronous>, transform_indices = @transform_1, window_bounds = array<i64: 1, 128>}, {pipeline_mode = #tpu.pipeline_mode<synchronous>, transform_indices = @transform_2, window_bounds = array<i64: 1, 128>}, {pipeline_mode = #tpu.pipeline_mode<synchronous>, transform_indices = @transform_3, window_bounds = array<i64: 128, 512>}, {pipeline_mode = #tpu.pipeline_mode<synchronous>, transform_indices = @transform_4, window_bounds = array<i64: 1, 512>}, {pipeline_mode = #tpu.pipeline_mode<synchronous>, transform_indices = @transform_5, window_bounds = array<i64: 512, 128>}, {pipeline_mode = #tpu.pipeline_mode<synchronous>, transform_indices = @transform_6, window_bounds = array<i64: 1, 128>}, {transform_indices = @transform_7, window_bounds = array<i64: 16, 128>}]} {
    %c0 = arith.constant 0 : index
    %c0_0 = arith.constant 0 : index
    %0 = vector.load %arg1[%c0, %c0_0] : memref<16x128xf32, #tpu.memory_space<vmem>>, vector<16x128xf32>
    %cst = arith.constant dense<0.000000e+00> : vector<16xf32>
    %1 = vector.multi_reduction <add>, %0, %cst [1] : vector<16x128xf32> to vector<16xf32>
    %2 = vector.shape_cast %1 : vector<16xf32> to vector<16x1xf32>
    %cst_1 = arith.constant 1.280000e+02 : f32
    %3 = vector.broadcast %cst_1 : f32 to vector<16x1xf32>
    %4 = arith.divf %2, %3 : vector<16x1xf32>
    %5 = vector.broadcast %4 : vector<16x1xf32> to vector<16x128xf32>
    %6 = arith.subf %0, %5 : vector<16x128xf32>
    %7 = arith.mulf %6, %6 : vector<16x128xf32>
    %cst_2 = arith.constant dense<0.000000e+00> : vector<16xf32>
    %8 = vector.multi_reduction <add>, %7, %cst_2 [1] : vector<16x128xf32> to vector<16xf32>
    %9 = vector.shape_cast %8 : vector<16xf32> to vector<16x1xf32>
    %cst_3 = arith.constant 1.280000e+02 : f32
    %10 = vector.broadcast %cst_3 : f32 to vector<16x1xf32>
    %11 = arith.divf %9, %10 : vector<16x1xf32>
    %cst_4 = arith.constant 9.99999974E-6 : f32
    %12 = vector.broadcast %cst_4 : f32 to vector<16x1xf32>
    %13 = arith.addf %11, %12 : vector<16x1xf32>
    %14 = math.rsqrt %13 : vector<16x1xf32>
    %15 = vector.broadcast %14 : vector<16x1xf32> to vector<16x128xf32>
    %16 = arith.mulf %6, %15 : vector<16x128xf32>
    %c0_5 = arith.constant 0 : index
    %c0_6 = arith.constant 0 : index
    %17 = vector.load %arg2[%c0_5, %c0_6] : memref<1x128xf32, #tpu.memory_space<vmem>>, vector<1x128xf32>
    %18 = vector.broadcast %17 : vector<1x128xf32> to vector<16x128xf32>
    %19 = arith.mulf %16, %18 : vector<16x128xf32>
    %c0_7 = arith.constant 0 : index
    %c0_8 = arith.constant 0 : index
    %20 = vector.load %arg3[%c0_7, %c0_8] : memref<1x128xf32, #tpu.memory_space<vmem>>, vector<1x128xf32>
    %21 = vector.broadcast %20 : vector<1x128xf32> to vector<16x128xf32>
    %22 = arith.addf %19, %21 : vector<16x128xf32>
    %23 = arith.truncf %22 : vector<16x128xf32> to vector<16x128xbf16>
    %c0_9 = arith.constant 0 : index
    %c0_10 = arith.constant 0 : index
    %24 = vector.load %arg4[%c0_9, %c0_10] : memref<128x512xbf16, #tpu.memory_space<vmem>>, vector<128x512xbf16>
    %cst_11 = arith.constant dense<0.000000e+00> : vector<16x512xf32>
    %25 = tpu.matmul %23, %24, %cst_11 {dimension_numbers = #tpu.dot_dimension_numbers<[1], [0], [0], [1], [0, 0, 1, 1], [], []>} : vector<16x128xbf16>, vector<128x512xbf16>, vector<16x512xf32> -> vector<16x512xf32>
    %c0_12 = arith.constant 0 : index
    %c0_13 = arith.constant 0 : index
    %26 = vector.load %arg5[%c0_12, %c0_13] : memref<1x512xf32, #tpu.memory_space<vmem>>, vector<1x512xf32>
    %27 = vector.broadcast %26 : vector<1x512xf32> to vector<16x512xf32>
    %28 = arith.addf %25, %27 : vector<16x512xf32>
    %cst_14 = arith.constant 5.000000e-01 : f32
    %29 = vector.broadcast %cst_14 : f32 to vector<16x512xf32>
    %30 = arith.mulf %29, %28 : vector<16x512xf32>
    %cst_15 = arith.constant 4.471500e-02 : f32
    %31 = vector.broadcast %cst_15 : f32 to vector<16x512xf32>
    %32 = arith.mulf %31, %28 : vector<16x512xf32>
    %33 = arith.mulf %32, %28 : vector<16x512xf32>
    %34 = arith.mulf %33, %28 : vector<16x512xf32>
    %35 = arith.addf %28, %34 : vector<16x512xf32>
    %cst_16 = arith.constant 0.797884583 : f32
    %36 = vector.broadcast %cst_16 : f32 to vector<16x512xf32>
    %37 = arith.mulf %36, %35 : vector<16x512xf32>
    %38 = math.tanh %37 : vector<16x512xf32>
    %cst_17 = arith.constant 1.000000e+00 : f32
    %39 = vector.broadcast %cst_17 : f32 to vector<16x512xf32>
    %40 = arith.addf %39, %38 : vector<16x512xf32>
    %41 = arith.mulf %30, %40 : vector<16x512xf32>
    %42 = arith.truncf %41 : vector<16x512xf32> to vector<16x512xbf16>
    %c0_18 = arith.constant 0 : index
    %c0_19 = arith.constant 0 : index
    %43 = vector.load %arg6[%c0_18, %c0_19] : memref<512x128xbf16, #tpu.memory_space<vmem>>, vector<512x128xbf16>
    %cst_20 = arith.constant dense<0.000000e+00> : vector<16x128xf32>
    %44 = tpu.matmul %42, %43, %cst_20 {dimension_numbers = #tpu.dot_dimension_numbers<[1], [0], [0], [1], [0, 0, 1, 1], [], []>} : vector<16x512xbf16>, vector<512x128xbf16>, vector<16x128xf32> -> vector<16x128xf32>
    %c0_21 = arith.constant 0 : index
    %c0_22 = arith.constant 0 : index
    %45 = vector.load %arg7[%c0_21, %c0_22] : memref<1x128xf32, #tpu.memory_space<vmem>>, vector<1x128xf32>
    %46 = vector.broadcast %45 : vector<1x128xf32> to vector<16x128xf32>
    %47 = arith.addf %44, %46 : vector<16x128xf32>
    %48 = arith.addf %0, %47 : vector<16x128xf32>
    %c0_23 = arith.constant 0 : index
    %c0_24 = arith.constant 0 : index
    %49 = vector.load %arg8[%c0_23, %c0_24] : memref<16x128xf32, #tpu.memory_space<vmem>>, vector<16x128xf32>
    tpu.vector_store %arg8[%c0_23, %c0_24], %48 {strides = array<i32>} : memref<16x128xf32, #tpu.memory_space<vmem>>, vector<16x128xf32>,
    return
  }
  func.func @transform_0(%arg0: i32) -> (i32, i32) {
    %c0_i32 = arith.constant 0 : i32
    %c0_i32_0 = arith.constant 0 : i32
    return %arg0, %c0_i32 : i32, i32
  }
  func.func @transform_1(%arg0: i32) -> (i32, i32) {
    %c0_i32 = arith.constant 0 : i32
    %c0_i32_0 = arith.constant 0 : i32
    %c0_i32_1 = arith.constant 0 : i32
    return %c0_i32, %c0_i32_0 : i32, i32
  }
  func.func @transform_2(%arg0: i32) -> (i32, i32) {
    %c0_i32 = arith.constant 0 : i32
    %c0_i32_0 = arith.constant 0 : i32
    %c0_i32_1 = arith.constant 0 : i32
    return %c0_i32, %c0_i32_0 : i32, i32
  }
  func.func @transform_3(%arg0: i32) -> (i32, i32) {
    %c0_i32 = arith.constant 0 : i32
    %c0_i32_0 = arith.constant 0 : i32
    %c0_i32_1 = arith.constant 0 : i32
    return %c0_i32, %c0_i32_0 : i32, i32
  }
  func.func @transform_4(%arg0: i32) -> (i32, i32) {
    %c0_i32 = arith.constant 0 : i32
    %c0_i32_0 = arith.constant 0 : i32
    %c0_i32_1 = arith.constant 0 : i32
    return %c0_i32, %c0_i32_0 : i32, i32
  }
  func.func @transform_5(%arg0: i32) -> (i32, i32) {
    %c0_i32 = arith.constant 0 : i32
    %c0_i32_0 = arith.constant 0 : i32
    %c0_i32_1 = arith.constant 0 : i32
    return %c0_i32, %c0_i32_0 : i32, i32
  }
  func.func @transform_6(%arg0: i32) -> (i32, i32) {
    %c0_i32 = arith.constant 0 : i32
    %c0_i32_0 = arith.constant 0 : i32
    %c0_i32_1 = arith.constant 0 : i32
    return %c0_i32, %c0_i32_0 : i32, i32
  }
  func.func @transform_7(%arg0: i32) -> (i32, i32) {
    %c0_i32 = arith.constant 0 : i32
    %c0_i32_0 = arith.constant 0 : i32
    return %arg0, %c0_i32 : i32, i32
  }
}

module attributes {stable_mosaic.version = 11 : i64} {
  func.func @_lm_head_loss_kernel(%arg0: i32, %arg1: i32, %arg2: memref<16x128xf32, #tpu.memory_space<vmem>>, %arg3: memref<1x128xf32, #tpu.memory_space<vmem>>, %arg4: memref<1x128xf32, #tpu.memory_space<vmem>>, %arg5: memref<128x128xbf16, #tpu.memory_space<vmem>>, %arg6: memref<16x1xi32, #tpu.memory_space<vmem>>, %arg7: memref<16x1xf32, #tpu.memory_space<vmem>>, %arg8: memref<16x128xf32, #tpu.memory_space<vmem>>, %arg9: memref<16x1xf32, #tpu.memory_space<vmem>>, %arg10: memref<16x128xbf16, #tpu.memory_space<vmem>>, %arg11: memref<16x1xf32, #tpu.memory_space<vmem>>, %arg12: memref<16x1xf32, #tpu.memory_space<vmem>>, %arg13: memref<16x1xf32, #tpu.memory_space<vmem>>) attributes {dimension_semantics = [#tpu.dimension_semantics<parallel>, #tpu.dimension_semantics<arbitrary>], iteration_bounds = array<i64: 2, 2>, scalar_prefetch = 0 : i64, scratch_operands = 4 : i64, tpu.core_type = #tpu.core_type<tc>, window_params = [{transform_indices = @transform_0, window_bounds = array<i64: 16, 128>}, {pipeline_mode = #tpu.pipeline_mode<synchronous>, transform_indices = @transform_1, window_bounds = array<i64: 1, 128>}, {pipeline_mode = #tpu.pipeline_mode<synchronous>, transform_indices = @transform_2, window_bounds = array<i64: 1, 128>}, {transform_indices = @transform_3, window_bounds = array<i64: 128, 128>}, {transform_indices = @transform_4, window_bounds = array<i64: 16, 1>}, {transform_indices = @transform_5, window_bounds = array<i64: 16, 1>}, {transform_indices = @transform_6, window_bounds = array<i64: 16, 128>}, {transform_indices = @transform_7, window_bounds = array<i64: 16, 1>}]} {
    %c0_i32 = arith.constant 0 : i32
    %0 = arith.cmpi eq, %arg1, %c0_i32 : i32
    %1 = arith.extui %0 : i1 to i32
    %c0_i32_0 = arith.constant 0 : i32
    %2 = arith.cmpi ne, %1, %c0_i32_0 : i32
    scf.if %2 {
      %c0_27 = arith.constant 0 : index
      %c0_28 = arith.constant 0 : index
      %41 = vector.load %arg2[%c0_27, %c0_28] : memref<16x128xf32, #tpu.memory_space<vmem>>, vector<16x128xf32>
      %cst_29 = arith.constant dense<0.000000e+00> : vector<16xf32>
      %42 = vector.multi_reduction <add>, %41, %cst_29 [1] : vector<16x128xf32> to vector<16xf32>
      %43 = vector.shape_cast %42 : vector<16xf32> to vector<16x1xf32>
      %cst_30 = arith.constant 1.280000e+02 : f32
      %44 = vector.broadcast %cst_30 : f32 to vector<16x1xf32>
      %45 = arith.divf %43, %44 : vector<16x1xf32>
      %46 = vector.broadcast %45 : vector<16x1xf32> to vector<16x128xf32>
      %47 = arith.subf %41, %46 : vector<16x128xf32>
      %48 = arith.mulf %47, %47 : vector<16x128xf32>
      %cst_31 = arith.constant dense<0.000000e+00> : vector<16xf32>
      %49 = vector.multi_reduction <add>, %48, %cst_31 [1] : vector<16x128xf32> to vector<16xf32>
      %50 = vector.shape_cast %49 : vector<16xf32> to vector<16x1xf32>
      %cst_32 = arith.constant 1.280000e+02 : f32
      %51 = vector.broadcast %cst_32 : f32 to vector<16x1xf32>
      %52 = arith.divf %50, %51 : vector<16x1xf32>
      %cst_33 = arith.constant 9.99999974E-6 : f32
      %53 = vector.broadcast %cst_33 : f32 to vector<16x1xf32>
      %54 = arith.addf %52, %53 : vector<16x1xf32>
      %55 = math.rsqrt %54 : vector<16x1xf32>
      %56 = vector.broadcast %55 : vector<16x1xf32> to vector<16x128xf32>
      %57 = arith.mulf %47, %56 : vector<16x128xf32>
      %c0_34 = arith.constant 0 : index
      %c0_35 = arith.constant 0 : index
      %58 = vector.load %arg3[%c0_34, %c0_35] : memref<1x128xf32, #tpu.memory_space<vmem>>, vector<1x128xf32>
      %59 = vector.broadcast %58 : vector<1x128xf32> to vector<16x128xf32>
      %60 = arith.mulf %57, %59 : vector<16x128xf32>
      %c0_36 = arith.constant 0 : index
      %c0_37 = arith.constant 0 : index
      %61 = vector.load %arg4[%c0_36, %c0_37] : memref<1x128xf32, #tpu.memory_space<vmem>>, vector<1x128xf32>
      %62 = vector.broadcast %61 : vector<1x128xf32> to vector<16x128xf32>
      %63 = arith.addf %60, %62 : vector<16x128xf32>
      %64 = arith.truncf %63 : vector<16x128xf32> to vector<16x128xbf16>
      %c0_38 = arith.constant 0 : index
      %c0_39 = arith.constant 0 : index
      %65 = vector.load %arg10[%c0_38, %c0_39] : memref<16x128xbf16, #tpu.memory_space<vmem>>, vector<16x128xbf16>
      tpu.vector_store %arg10[%c0_38, %c0_39], %64 {strides = array<i32>} : memref<16x128xbf16, #tpu.memory_space<vmem>>, vector<16x128xbf16>,
      %cst_40 = arith.constant 0xFF800000 : f32
      %66 = vector.broadcast %cst_40 : f32 to vector<16x1xf32>
      %c0_41 = arith.constant 0 : index
      %c0_42 = arith.constant 0 : index
      %67 = vector.load %arg11[%c0_41, %c0_42] : memref<16x1xf32, #tpu.memory_space<vmem>>, vector<16x1xf32>
      tpu.vector_store %arg11[%c0_41, %c0_42], %66 {strides = array<i32>} : memref<16x1xf32, #tpu.memory_space<vmem>>, vector<16x1xf32>,
      %cst_43 = arith.constant 0.000000e+00 : f32
      %68 = vector.broadcast %cst_43 : f32 to vector<16x1xf32>
      %c0_44 = arith.constant 0 : index
      %c0_45 = arith.constant 0 : index
      %69 = vector.load %arg12[%c0_44, %c0_45] : memref<16x1xf32, #tpu.memory_space<vmem>>, vector<16x1xf32>
      tpu.vector_store %arg12[%c0_44, %c0_45], %68 {strides = array<i32>} : memref<16x1xf32, #tpu.memory_space<vmem>>, vector<16x1xf32>,
      %cst_46 = arith.constant 0.000000e+00 : f32
      %70 = vector.broadcast %cst_46 : f32 to vector<16x1xf32>
      %c0_47 = arith.constant 0 : index
      %c0_48 = arith.constant 0 : index
      %71 = vector.load %arg13[%c0_47, %c0_48] : memref<16x1xf32, #tpu.memory_space<vmem>>, vector<16x1xf32>
      tpu.vector_store %arg13[%c0_47, %c0_48], %70 {strides = array<i32>} : memref<16x1xf32, #tpu.memory_space<vmem>>, vector<16x1xf32>,
      %cst_49 = arith.constant 0.000000e+00 : f32
      %72 = vector.broadcast %cst_49 : f32 to vector<16x1xf32>
      %c0_50 = arith.constant 0 : index
      %c0_51 = arith.constant 0 : index
      %73 = vector.load %arg9[%c0_50, %c0_51] : memref<16x1xf32, #tpu.memory_space<vmem>>, vector<16x1xf32>
      tpu.vector_store %arg9[%c0_50, %c0_51], %72 {strides = array<i32>} : memref<16x1xf32, #tpu.memory_space<vmem>>, vector<16x1xf32>,
    } else {
    }
    %c0 = arith.constant 0 : index
    %c0_1 = arith.constant 0 : index
    %3 = vector.load %arg10[%c0, %c0_1] : memref<16x128xbf16, #tpu.memory_space<vmem>>, vector<16x128xbf16>
    %c0_2 = arith.constant 0 : index
    %c0_3 = arith.constant 0 : index
    %4 = vector.load %arg5[%c0_2, %c0_3] : memref<128x128xbf16, #tpu.memory_space<vmem>>, vector<128x128xbf16>
    %cst = arith.constant dense<0.000000e+00> : vector<16x128xf32>
    %5 = tpu.matmul %3, %4, %cst {dimension_numbers = #tpu.dot_dimension_numbers<[1], [1], [0], [0], [0, 0, 1, 0], [], []>} : vector<16x128xbf16>, vector<128x128xbf16>, vector<16x128xf32> -> vector<16x128xf32>
    %c0_4 = arith.constant 0 : index
    %c0_5 = arith.constant 0 : index
    %6 = vector.load %arg8[%c0_4, %c0_5] : memref<16x128xf32, #tpu.memory_space<vmem>>, vector<16x128xf32>
    tpu.vector_store %arg8[%c0_4, %c0_5], %5 {strides = array<i32>} : memref<16x128xf32, #tpu.memory_space<vmem>>, vector<16x128xf32>,
    %c0_6 = arith.constant 0 : index
    %c0_7 = arith.constant 0 : index
    %7 = vector.load %arg11[%c0_6, %c0_7] : memref<16x1xf32, #tpu.memory_space<vmem>>, vector<16x1xf32>
    %cst_8 = arith.constant dense<0xFF800000> : vector<16xf32>
    %8 = vector.multi_reduction <maximumf>, %5, %cst_8 [1] : vector<16x128xf32> to vector<16xf32>
    %9 = vector.shape_cast %8 : vector<16xf32> to vector<16x1xf32>
    %10 = arith.maximumf %7, %9 : vector<16x1xf32>
    %c0_9 = arith.constant 0 : index
    %c0_10 = arith.constant 0 : index
    %11 = vector.load %arg12[%c0_9, %c0_10] : memref<16x1xf32, #tpu.memory_space<vmem>>, vector<16x1xf32>
    %c0_11 = arith.constant 0 : index
    %c0_12 = arith.constant 0 : index
    %12 = vector.load %arg11[%c0_11, %c0_12] : memref<16x1xf32, #tpu.memory_space<vmem>>, vector<16x1xf32>
    %13 = arith.subf %12, %10 : vector<16x1xf32>
    %14 = math.exp %13 : vector<16x1xf32>
    %15 = arith.mulf %11, %14 : vector<16x1xf32>
    %16 = vector.broadcast %10 : vector<16x1xf32> to vector<16x128xf32>
    %17 = arith.subf %5, %16 : vector<16x128xf32>
    %18 = math.exp %17 : vector<16x128xf32>
    %cst_13 = arith.constant dense<0.000000e+00> : vector<16xf32>
    %19 = vector.multi_reduction <add>, %18, %cst_13 [1] : vector<16x128xf32> to vector<16xf32>
    %20 = vector.shape_cast %19 : vector<16xf32> to vector<16x1xf32>
    %21 = arith.addf %15, %20 : vector<16x1xf32>
    %c0_14 = arith.constant 0 : index
    %c0_15 = arith.constant 0 : index
    %22 = vector.load %arg12[%c0_14, %c0_15] : memref<16x1xf32, #tpu.memory_space<vmem>>, vector<16x1xf32>
    tpu.vector_store %arg12[%c0_14, %c0_15], %21 {strides = array<i32>} : memref<16x1xf32, #tpu.memory_space<vmem>>, vector<16x1xf32>,
    %c0_16 = arith.constant 0 : index
    %c0_17 = arith.constant 0 : index
    %23 = vector.load %arg11[%c0_16, %c0_17] : memref<16x1xf32, #tpu.memory_space<vmem>>, vector<16x1xf32>
    tpu.vector_store %arg11[%c0_16, %c0_17], %10 {strides = array<i32>} : memref<16x1xf32, #tpu.memory_space<vmem>>, vector<16x1xf32>,
    %24 = tpu.iota {dimensions = array<i32: 1>} : vector<16x128xi32>
    %c128_i32 = arith.constant 128 : i32
    %25 = arith.muli %arg1, %c128_i32 : i32
    %26 = vector.broadcast %25 : i32 to vector<16x128xi32>
    %27 = arith.addi %24, %26 : vector<16x128xi32>
    %c0_18 = arith.constant 0 : index
    %c0_19 = arith.constant 0 : index
    %28 = vector.load %arg13[%c0_18, %c0_19] : memref<16x1xf32, #tpu.memory_space<vmem>>, vector<16x1xf32>
    %c0_20 = arith.constant 0 : index
    %c0_21 = arith.constant 0 : index
    %29 = vector.load %arg6[%c0_20, %c0_21] : memref<16x1xi32, #tpu.memory_space<vmem>>, vector<16x1xi32>
    %30 = vector.broadcast %29 : vector<16x1xi32> to vector<16x128xi32>
    %31 = arith.cmpi eq, %27, %30 : vector<16x128xi32>
    %cst_22 = arith.constant 0.000000e+00 : f32
    %32 = vector.broadcast %cst_22 : f32 to vector<16x128xf32>
    %33 = arith.select %31, %5, %32 : vector<16x128xi1>, vector<16x128xf32>
    %cst_23 = arith.constant dense<0.000000e+00> : vector<16xf32>
    %34 = vector.multi_reduction <add>, %33, %cst_23 [1] : vector<16x128xf32> to vector<16xf32>
    %35 = vector.shape_cast %34 : vector<16xf32> to vector<16x1xf32>
    %36 = arith.addf %28, %35 : vector<16x1xf32>
    %c0_24 = arith.constant 0 : index
    %c0_25 = arith.constant 0 : index
    %37 = vector.load %arg13[%c0_24, %c0_25] : memref<16x1xf32, #tpu.memory_space<vmem>>, vector<16x1xf32>
    tpu.vector_store %arg13[%c0_24, %c0_25], %36 {strides = array<i32>} : memref<16x1xf32, #tpu.memory_space<vmem>>, vector<16x1xf32>,
    %c1_i32 = arith.constant 1 : i32
    %38 = arith.cmpi eq, %arg1, %c1_i32 : i32
    %39 = arith.extui %38 : i1 to i32
    %c0_i32_26 = arith.constant 0 : i32
    %40 = arith.cmpi ne, %39, %c0_i32_26 : i32
    scf.if %40 {
      %c0_27 = arith.constant 0 : index
      %c0_28 = arith.constant 0 : index
      %41 = vector.load %arg11[%c0_27, %c0_28] : memref<16x1xf32, #tpu.memory_space<vmem>>, vector<16x1xf32>
      %c0_29 = arith.constant 0 : index
      %c0_30 = arith.constant 0 : index
      %42 = vector.load %arg12[%c0_29, %c0_30] : memref<16x1xf32, #tpu.memory_space<vmem>>, vector<16x1xf32>
      %43 = math.log %42 : vector<16x1xf32>
      %44 = arith.addf %41, %43 : vector<16x1xf32>
      %c0_31 = arith.constant 0 : index
      %c0_32 = arith.constant 0 : index
      %45 = vector.load %arg7[%c0_31, %c0_32] : memref<16x1xf32, #tpu.memory_space<vmem>>, vector<16x1xf32>
      %c0_33 = arith.constant 0 : index
      %c0_34 = arith.constant 0 : index
      %46 = vector.load %arg13[%c0_33, %c0_34] : memref<16x1xf32, #tpu.memory_space<vmem>>, vector<16x1xf32>
      %47 = arith.subf %44, %46 : vector<16x1xf32>
      %48 = arith.mulf %45, %47 : vector<16x1xf32>
      %c0_35 = arith.constant 0 : index
      %c0_36 = arith.constant 0 : index
      %49 = vector.load %arg9[%c0_35, %c0_36] : memref<16x1xf32, #tpu.memory_space<vmem>>, vector<16x1xf32>
      tpu.vector_store %arg9[%c0_35, %c0_36], %48 {strides = array<i32>} : memref<16x1xf32, #tpu.memory_space<vmem>>, vector<16x1xf32>,
    } else {
    }
    return
  }
  func.func @transform_0(%arg0: i32, %arg1: i32) -> (i32, i32) {
    %c0_i32 = arith.constant 0 : i32
    %c0_i32_0 = arith.constant 0 : i32
    return %arg0, %c0_i32 : i32, i32
  }
  func.func @transform_1(%arg0: i32, %arg1: i32) -> (i32, i32) {
    %c0_i32 = arith.constant 0 : i32
    %c0_i32_0 = arith.constant 0 : i32
    %c0_i32_1 = arith.constant 0 : i32
    return %c0_i32, %c0_i32_0 : i32, i32
  }
  func.func @transform_2(%arg0: i32, %arg1: i32) -> (i32, i32) {
    %c0_i32 = arith.constant 0 : i32
    %c0_i32_0 = arith.constant 0 : i32
    %c0_i32_1 = arith.constant 0 : i32
    return %c0_i32, %c0_i32_0 : i32, i32
  }
  func.func @transform_3(%arg0: i32, %arg1: i32) -> (i32, i32) {
    %c0_i32 = arith.constant 0 : i32
    %c0_i32_0 = arith.constant 0 : i32
    return %arg1, %c0_i32 : i32, i32
  }
  func.func @transform_4(%arg0: i32, %arg1: i32) -> (i32, i32) {
    %c0_i32 = arith.constant 0 : i32
    %c0_i32_0 = arith.constant 0 : i32
    return %arg0, %c0_i32 : i32, i32
  }
  func.func @transform_5(%arg0: i32, %arg1: i32) -> (i32, i32) {
    %c0_i32 = arith.constant 0 : i32
    %c0_i32_0 = arith.constant 0 : i32
    return %arg0, %c0_i32 : i32, i32
  }
  func.func @transform_6(%arg0: i32, %arg1: i32) -> (i32, i32) {
    %c0_i32 = arith.constant 0 : i32
    return %arg0, %arg1 : i32, i32
  }
  func.func @transform_7(%arg0: i32, %arg1: i32) -> (i32, i32) {
    %c0_i32 = arith.constant 0 : i32
    %c0_i32_0 = arith.constant 0 : i32
    return %arg0, %c0_i32 : i32, i32
  }
}

</mosaic_0001>

<bundles_post_ra>
// kernel: gpt2_forward.6
= control target key start
LH: loop header
LB: loop body
LE: loop exit
PB: predicated region body
PF: predicated region fallthrough
CT: control target
= control target key end

     0   :  { %12 = vsyncpa [#allocation3], 0  ;;  %s1976_s0 = inlined_call_operand.vmem [shape: f32[32,128], index: 0, kind: input, shape index: {}]   ;;  %s1977_s1 = inlined_call_operand.hbm [shape: f32[1,128], index: 1, kind: input, shape index: {}]   ;;  %s1978_s2 = inlined_call_operand.hbm [shape: f32[1,128], index: 2, kind: input, shape index: {}]   ;;  %s1979_s3 = inlined_call_operand.vmem [shape: bf16[128,512], index: 3, kind: input, shape index: {}]   ;;  %s1980_s4 = inlined_call_operand.vmem [shape: f32[1,512], index: 4, kind: input, shape index: {}]   ;;  %s1981_s5 = inlined_call_operand.vmem [shape: bf16[512,128], index: 5, kind: input, shape index: {}]   ;;  %s1982_s6 = inlined_call_operand.hbm [shape: f32[1,128], index: 6, kind: input, shape index: {}]   ;;  %s1983_s7 = inlined_call_operand.vmem [shape: f32[32,128], index: 7, kind: output, shape index: {}]  }
   0x1   :  { %13 = vsyncpa [#allocation5], 0  ;;  %s1589_s24 = smov 0  }
   0x2 LB: > { %s1177_s25 = sadd.s32 4294967295, %s1543_s24   ;;  %p1179_p0 = scmp.ge.s32.totalorder %s1543_s24, 1  ;;  %s1543_s24 = sphi %s1589_s24, %s19_s24  }
   0x3   : > { %p202_p1 = scmp.lt.s32.totalorder %s1543_s24, 3  ;;  %p1599_p2 = scmp.eq.s32.totalorder %s1177_s25, 0 }
   0x4   : > { %s1545_s28 = smov [#allocation4]   ;;  %s1546_s30 = smov [#allocation2]  }
   0x5   : > { %s1987_s26 = scalar_select %p1599_p2, 1, 0 }
   0x6   : > { %p1603_p3 = pnand %p1179_p0, %p202_p1  ;;  %s226_s29 = sshll.u32 %s1545_s28, 4  ;;  %s227_s29 = int_to_ptr.vmem [resolvable:$true] %s226_s29 }
   0x7   : > { %s215_s8 = sshll.u32 %s1546_s30, 4  ;;  %s1547_s9 = smov [#allocation6]   ;;  %s1615_s8 = int_to_ptr.vmem [resolvable:$true] %s215_s8 }
   0x8   : > { %s1988_s27 = scalar_select %p1603_p3, 1, 0 }
   0x9   : > { %p1317_p4 = pneg %p1603_p3  ;;  %s246_s10 = sshll.u32 %s1547_s9, 4  ;;  %s1617_s10 = int_to_ptr.vmem [resolvable:$true] %s246_s10 }
   0xa   : > { %s1445_s14 = scalar_lea.hbm %s1978_s2, 16 }
   0xb   : > { %p1611_p5 = pnand %p1599_p2, %p1317_p4  ;;  %p1446_p6 = scmp.ne.s32.totalorder %s1978_s2, %s1445_s14 }
   0xc   : > { %p1452_p10 = scmp.lt.u32.totalorder %s1445_s14, %s1978_s2 }
   0xd   : > { %p1627_p7 = pneg %p1611_p5 }
   0xf   : > { %p1448_p8 = pnand %p1627_p7, %p1446_p6 }
  0x11   : > { %p1449_p9 = pneg %p1448_p8 }
  0x13   : > { %p1454_p11 = pnand %p1452_p10, %p1449_p9 }
  0x15   : > { %1457 = shalt.err (!%p1454_p11)
}
  0x16   : > { %s1458_s20 = scalar_lea.vmem %s227_s29, 16  ;;  %s1465_s21 = scalar_lea.vmem %s227_s29, 32 }
  0x17   : > { %p1459_p12 = scmp.ne.s32.totalorder %s227_s29, %s1458_s20  ;;  %p1466_p1 = scmp.lt.s32.totalorder %s227_s29, %s227_s29 }
  0x18   : > { %p1467_p4 = scmp.lt.s32.totalorder %s1465_s21, %s1458_s20 }
  0x19   : > { %p1461_p13 = pnand %p1459_p12, %p1627_p7 }
  0x1a   : > { %p1468_p2 = por %p1467_p4, %p1466_p1 }
  0x1b   : > { %p1462_p0 = pneg %p1461_p13 }
  0x1d   : > { %p1469_p3 = pnand %p1468_p2, %p1462_p0 }
  0x1f   : > { %1472 = shalt.err (!%p1469_p3)
}
  0x20   : > { %1323 = dma.hbm_to_vmem [thread:$0]  (!%p1611_p5), %s1978_s2, 16, %s227_s29, [#allocation5]  }
  0x21   : > { %s1473_s9 = scalar_lea.hbm %s1977_s1, 16 }
  0x22   : > { %p1474_p6 = scmp.ne.s32.totalorder %s1977_s1, %s1473_s9  ;;  %p1480_p2 = scmp.lt.u32.totalorder %s1473_s9, %s1977_s1 }
  0x24   : > { %p1476_p8 = pnand %p1474_p6, %p1627_p7 }
  0x26   : > { %p1477_p9 = pneg %p1476_p8 }
  0x28   : > { %p1482_p3 = pnand %p1480_p2, %p1477_p9 }
  0x2a   : > { %1485 = shalt.err (!%p1482_p3)
}
  0x2b   : > { %s1486_s29 = scalar_lea.vmem %s1615_s8, 16  ;;  %s1493_s16 = scalar_lea.vmem %s1615_s8, 32 }
  0x2c   : > { %p1487_p10 = scmp.ne.s32.totalorder %s1615_s8, %s1486_s29  ;;  %p1494_p13 = scmp.lt.s32.totalorder %s1615_s8, %s1615_s8 }
  0x2d   : > { %p1495_p0 = scmp.lt.s32.totalorder %s1493_s16, %s1486_s29 }
  0x2e   : > { %p1489_p11 = pnand %p1487_p10, %p1627_p7 }
  0x2f   : > { %p1496_p1 = por %p1495_p0, %p1494_p13 }
  0x30   : > { %p1490_p12 = pneg %p1489_p11 }
  0x32   : > { %p1497_p4 = pnand %p1496_p1, %p1490_p12 }
  0x34   : > { %1500 = shalt.err (!%p1497_p4)
}
  0x35   : > { %1320 = dma.hbm_to_vmem [thread:$0]  (!%p1611_p5), %s1977_s1, 16, %s1615_s8, [#allocation3]  }
  0x36   : > { %s1501_s22 = scalar_lea.hbm %s1982_s6, 16 }
  0x37   : > { %p1502_p6 = scmp.ne.s32.totalorder %s1982_s6, %s1501_s22  ;;  %p1508_p2 = scmp.lt.u32.totalorder %s1501_s22, %s1982_s6 }
  0x39   : > { %p1504_p8 = pnand %p1502_p6, %p1627_p7 }
  0x3b   : > { %p1505_p9 = pneg %p1504_p8 }
  0x3d   : > { %p1510_p3 = pnand %p1508_p2, %p1505_p9 }
  0x3f   : > { %1513 = shalt.err (!%p1510_p3)
}
  0x40   : > { %s1514_s8 = scalar_lea.vmem %s1617_s10, 16  ;;  %s1521_s12 = scalar_lea.vmem %s1617_s10, 32 }
  0x41   : > { %p1515_p10 = scmp.ne.s32.totalorder %s1617_s10, %s1514_s8  ;;  %p1522_p13 = scmp.lt.s32.totalorder %s1617_s10, %s1617_s10 }
  0x42   : > { %p1523_p0 = scmp.lt.s32.totalorder %s1521_s12, %s1514_s8 }
  0x43   : > { %p1517_p11 = pnand %p1515_p10, %p1627_p7 }
  0x44   : > { %p1524_p1 = por %p1523_p0, %p1522_p13 }
  0x45   : > { %p1518_p12 = pneg %p1517_p11 }
  0x47   : > { %p1525_p4 = pnand %p1524_p1, %p1518_p12 }
  0x49   : > { %1528 = shalt.err (!%p1525_p4)
}
  0x4a   : > { %1326 = dma.hbm_to_vmem [thread:$0]  (!%p1611_p5), %s1982_s6, 16, %s1617_s10, [#allocation5]  }
  0x4b   : > { %p1991_p6 = scmp.ne.s32.totalorder %s1988_s27, 0 }
  0x4c   : > { %p1992_p7 = scmp.ne.s32.totalorder (!%p1991_p6), %s1987_s26, 0 }
  0x4d   : > { %268 = sbr.rel (%p1991_p6) target bundleno = 882 (0x372), region = 48 }
  0x54   : > { %1534 = dma.done.wait (%p1992_p7), [#allocation3], 16  }
  0x55   : > { %1536 = vsyncadd (%p1992_p7), [#allocation3], 4294967280 }
  0x56   : > { %1538 = dma.done.wait (%p1992_p7), [#allocation5], 32  }
  0x57   : > { %1540 = vsyncadd (%p1992_p7), [#allocation5], 4294967264  ;;  %s1188_s11 = sshll.u32 %s1177_s25, 1  ;;  %v1345_v2 = vld [vmem:[%s1979_s3 + $0x4] ss:$16 sps:$4 sm:$0xff]   ;;  %v1548_v36 = vmov 0  }
  0x58   : > { %p309_p8 = scmp.lt.s32.totalorder %s1188_s11, 3  ;;  %v1347_v3 = vld [vmem:[%s1979_s3 + $0xc] ss:$16 sps:$4 sm:$0xff]   ;;  %v1349_v4 = vld [vmem:[%s1979_s3] ss:$16 sps:$4 sm:$0xff]   ;;  %579 = vmatprep.subr.bf16.mxu0 %v1345_v2  ;;  %611 = vmatprep.mubr.bf16.mxu0 %v1548_v36 }
  0x59   : > { %v1350_v5 = vld [vmem:[%s1979_s3 + $0x8] ss:$16 sps:$4 sm:$0xff]   ;;  %v1351_v6 = vld [vmem:[%s1979_s3 + $0x24] ss:$16 sps:$4 sm:$0xff]   ;;  %v1353_v7 = vld [vmem:[%s1979_s3 + $0x2c] ss:$16 sps:$4 sm:$0xff]   ;;  %622 = vmatprep.subr.bf16.mxu1 %v1347_v3  ;;  %580 = vmatpush1.bf16.msra.mxu0 %v1349_v4 }
  0x5a   : > { %s1994_s11 = smov (!%p309_p8, %s1188_s11), 3  ;;  %623 = vmatpush1.bf16.msra.mxu1 %v1350_v5  ;;  %581 = vmatprep.subr.bf16.mxu0 %v1351_v6  ;;  %v1355_v16 = vld [vmem:[%s1979_s3 + $0x20] ss:$16 sps:$4 sm:$0xff]   ;;  %v1356_v17 = vld [vmem:[%s1979_s3 + $0x28] ss:$16 sps:$4 sm:$0xff]  }
  0x5b   : > { %s1189_s27 = sshll.u32 %s1994_s11, 3  ;;  %624 = vmatprep.subr.bf16.mxu1 %v1353_v7  ;;  %v1357_v18 = vld [vmem:[%s1979_s3 + $0x44] ss:$16 sps:$4 sm:$0xff]   ;;  %v1359_v19 = vld [vmem:[%s1979_s3 + $0x4c] ss:$16 sps:$4 sm:$0xff]   ;;  %654 = vmatprep.mubr.bf16.mxu1 %v1548_v36 }
  0x5c   : > { %s312_s15 = scalar_lea.vmem %s1976_s0, %s1189_s27  ;;  %v1361_v20 = vld [vmem:[%s1979_s3 + $0x40] ss:$16 sps:$4 sm:$0xff]   ;;  %v1362_v21 = vld [vmem:[%s1979_s3 + $0x48] ss:$16 sps:$4 sm:$0xff]   ;;  %v1363_v22 = vld [vmem:[%s1979_s3 + $0x64] ss:$16 sps:$4 sm:$0xff]   ;;  %s318_s9 = scalar_lea.vmem %s1983_s7, %s1189_s27 }
  0x5d   : > { %v1711_v0 = vld [vmem:[%s312_s15] sm:$0xff]  ;;  %v1713_v1 = vld [vmem:[%s312_s15 + $0x8] sm:$0xff]  ;;  %582 = vmatpush1.bf16.msra.mxu0 %v1355_v16  ;;  %v1401_v6 = vld [vmem:[%s1981_s5 + $0x50] sm:$0xff]  }
  0x5e   : > { %323 = vadd.xlane.f32.xlu0 %v1711_v0  ;;  %625 = vmatpush1.bf16.msra.mxu1 %v1356_v17  ;;  %v1365_v23 = vld [vmem:[%s1979_s3 + $0x6c] ss:$16 sps:$4 sm:$0xff]   ;;  %v1367_v24 = vld [vmem:[%s1979_s3 + $0x60] ss:$16 sps:$4 sm:$0xff]   ;;  %v1368_v25 = vld [vmem:[%s1979_s3 + $0x68] ss:$16 sps:$4 sm:$0xff]  }
  0x5f   : > { %583 = vmatprep.subr.bf16.mxu0 %v1357_v18  ;;  %626 = vmatprep.subr.bf16.mxu1 %v1359_v19  ;;  %v1369_v26 = vld [vmem:[%s1979_s3 + $0x84] ss:$16 sps:$4 sm:$0xff]   ;;  %v1371_v27 = vld [vmem:[%s1979_s3 + $0x8c] ss:$16 sps:$4 sm:$0xff]   ;;  %v1373_v28 = vld [vmem:[%s1979_s3 + $0x80] ss:$16 sps:$4 sm:$0xff]  }
  0x60   : > { %v1374_v29 = vld [vmem:[%s1979_s3 + $0x88] ss:$16 sps:$4 sm:$0xff]   ;;  %v1375_v30 = vld [vmem:[%s1979_s3 + $0xa4] ss:$16 sps:$4 sm:$0xff]   ;;  %v1377_v31 = vld [vmem:[%s1979_s3 + $0xac] ss:$16 sps:$4 sm:$0xff]  }
  0x61   : > { %584 = vmatpush1.bf16.msra.mxu0 %v1361_v20  ;;  %v1379_v32 = vld [vmem:[%s1979_s3 + $0xa0] ss:$16 sps:$4 sm:$0xff]   ;;  %v1380_v33 = vld [vmem:[%s1979_s3 + $0xa8] ss:$16 sps:$4 sm:$0xff]   ;;  %v1381_v34 = vld [vmem:[%s1979_s3 + $0xc4] ss:$16 sps:$4 sm:$0xff]  }
  0x62   : > { %325 = vadd.xlane.f32.xlu0 %v1713_v1  ;;  %627 = vmatpush1.bf16.msra.mxu1 %v1362_v21  ;;  %v1383_v35 = vld [vmem:[%s1979_s3 + $0xcc] ss:$16 sps:$4 sm:$0xff]   ;;  %v1385_v37 = vld [vmem:[%s1979_s3 + $0xc0] ss:$16 sps:$4 sm:$0xff]   ;;  %v1386_v38 = vld [vmem:[%s1979_s3 + $0xc8] ss:$16 sps:$4 sm:$0xff]  }
  0x63   : > { %585 = vmatprep.subr.bf16.mxu0 %v1363_v22  ;;  %628 = vmatprep.subr.bf16.mxu1 %v1365_v23  ;;  %v1387_v39 = vld [vmem:[%s1979_s3 + $0xe4] ss:$16 sps:$4 sm:$0xff]   ;;  %v1389_v40 = vld [vmem:[%s1979_s3 + $0xec] ss:$16 sps:$4 sm:$0xff]   ;;  %v1391_v41 = vld [vmem:[%s1979_s3 + $0xe0] ss:$16 sps:$4 sm:$0xff]  }
  0x64   : > { %v1392_v42 = vld [vmem:[%s1979_s3 + $0xe8] ss:$16 sps:$4 sm:$0xff]   ;;  %v1192_v51 = vld [vmem:[#allocation2] ss:$0 sm:$0xff]  ;;  %v1193_v55 = vld [vmem:[#allocation4] ss:$0 sm:$0xff] }
  0x65   : > { %586 = vmatpush1.bf16.msra.mxu0 %v1367_v24  ;;  %v1393_v60 = vld [vmem:[%s1981_s5 + $0x40] sm:$0xff]   ;;  %v1397_v2 = vld [vmem:[%s1981_s5 + $0x48] sm:$0xff]   ;;  %v1402_v7 = vld [vmem:[%s1981_s5 + $0xd0] sm:$0xff]  }
  0x66   : > { %629 = vmatpush1.bf16.msra.mxu1 %v1368_v25  ;;  %587 = vmatprep.subr.bf16.mxu0 %v1369_v26  ;;  %v1394_v61 = vld [vmem:[%s1981_s5 + $0xc0] sm:$0xff]   ;;  %v1398_v3 = vld [vmem:[%s1981_s5 + $0xc8] sm:$0xff]   ;;  %v1417_v22 = vld [vmem:[%s1981_s5 + $0x70] sm:$0xff]  }
  0x67   : > { %630 = vmatprep.subr.bf16.mxu1 %v1371_v27  ;;  %v1395_v62 = vld [vmem:[%s1981_s5] sm:$0xff]   ;;  %v1399_v4 = vld [vmem:[%s1981_s5 + $0x8] sm:$0xff]   ;;  %v1418_v23 = vld [vmem:[%s1981_s5 + $0xf0] sm:$0xff]  }
  0x68   : > { %v1396_v63 = vld [vmem:[%s1981_s5 + $0x80] sm:$0xff]   ;;  %v1400_v5 = vld [vmem:[%s1981_s5 + $0x88] sm:$0xff]   ;;  %v1419_v24 = vld [vmem:[%s1981_s5 + $0x30] sm:$0xff]  }
  0x69   : > { %588 = vmatpush1.bf16.msra.mxu0 %v1373_v28  ;;  %v1411_v16 = vld [vmem:[%s1981_s5 + $0x20] sm:$0xff]   ;;  %v1413_v18 = vld [vmem:[%s1981_s5 + $0x68] sm:$0xff]   ;;  %v1420_v25 = vld [vmem:[%s1981_s5 + $0xb0] sm:$0xff]  }
  0x6a   : > { %631 = vmatpush1.bf16.msra.mxu1 %v1374_v29  ;;  %589 = vmatprep.subr.bf16.mxu0 %v1375_v30  ;;  %v1412_v17 = vld [vmem:[%s1981_s5 + $0xa0] sm:$0xff]   ;;  %v1414_v19 = vld [vmem:[%s1981_s5 + $0xe8] sm:$0xff]   ;;  %v1421_v26 = vld [vmem:[%s1981_s5 + $0x78] sm:$0xff]   ;;  %v399_v30 = vlaneseq }
  0x6b   : > { %632 = vmatprep.subr.bf16.mxu1 %v1377_v31  ;;  %v1415_v20 = vld [vmem:[%s1981_s5 + $0x28] sm:$0xff]   ;;  %v1422_v27 = vld [vmem:[%s1981_s5 + $0xf8] sm:$0xff]  }
  0x6c   : > { %v1416_v21 = vld [vmem:[%s1981_s5 + $0xa8] sm:$0xff]   ;;  %v1423_v28 = vld [vmem:[%s1981_s5 + $0x38] sm:$0xff]   ;;  %v400_v31 = vshrl.u32 %v399_v30, 7 }
  0x6d   : > { %590 = vmatpush1.bf16.msra.mxu0 %v1379_v32  ;;  %v1424_v29 = vld [vmem:[%s1981_s5 + $0xb8] sm:$0xff]  }
  0x6e   : > { %633 = vmatpush1.bf16.msra.mxu1 %v1380_v33  ;;  %591 = vmatprep.subr.bf16.mxu0 %v1381_v34  ;;  %v401_v32 = vsub.s32 0, %v400_v31  ;;  %v409_v33 = vsub.s32 2, %v400_v31  ;;  %v397_v34 = vld [vmem:[%s1980_s4] sm:$0xf]  ;;  %v413_v36 = vsub.s32 3, %v400_v31 }
  0x6f   : > { %634 = vmatprep.subr.bf16.mxu1 %v1383_v35  ;;  %v405_v35 = vsub.s32 1, %v400_v31 }
  0x71   : > { %592 = vmatpush1.bf16.msra.mxu0 %v1385_v37  ;;  %v402_v37 = vrot.slane %v397_v34, %v401_v32 }
  0x72   : > { %635 = vmatpush1.bf16.msra.mxu1 %v1386_v38  ;;  %593 = vmatprep.subr.bf16.mxu0 %v1387_v39  ;;  %v410_v38 = vrot.slane %v397_v34, %v409_v33  ;;  %v406_v39 = vrot.slane %v397_v34, %v405_v35 }
  0x73   : > { %636 = vmatprep.subr.bf16.mxu1 %v1389_v40  ;;  %v414_v40 = vrot.slane %v397_v34, %v413_v36 }
  0x75   : > { %594 = vmatpush1.bf16.msra.mxu0 %v1391_v41 }
  0x76   : > { %637 = vmatpush1.bf16.msra.mxu1 %v1392_v42  ;;  %1261 = vmatprep.subr.bf16.mxu0 %v1393_v60 }
  0x77   : > { %1283 = vmatprep.subr.bf16.mxu1 %v1394_v61 }
  0xeb   : > { %v324_v8 = vpop.xlane.xlu0 %323 }
  0xec   : > { %v328_v9 = vmul.f32 0.0078125, %v324_v8  ;;  %v1403_v8 = vld [vmem:[%s1981_s5 + $0x10] sm:$0xff]  }
  0xee   : > { %v1736_v10 = vsub.f32 %v1711_v0, %v328_v9  ;;  %v1404_v9 = vld [vmem:[%s1981_s5 + $0x90] sm:$0xff]  }
  0xef   : > { %v326_v11 = vpop.xlane.xlu0 %325 }
  0xf0   : > { %v329_v12 = vmul.f32 0.0078125, %v326_v11  ;;  %v332_v13 = vmul.f32 %v1736_v10, %v1736_v10  ;;  %v1406_v11 = vld [vmem:[%s1981_s5 + $0xd8] sm:$0xff]  }
  0xf2   : > { %v1741_v14 = vsub.f32 %v1713_v1, %v329_v12  ;;  %334 = vadd.xlane.f32.xlu1 %v332_v13  ;;  %v1407_v12 = vld [vmem:[%s1981_s5 + $0x18] sm:$0xff]  }
  0xf3   : > { %v1408_v13 = vld [vmem:[%s1981_s5 + $0x98] sm:$0xff]  }
  0xf4   : > { %v333_v15 = vmul.f32 %v1741_v14, %v1741_v14 }
  0xf6   : > { %336 = vadd.xlane.f32.xlu1 %v333_v15  ;;  %v1410_v15 = vld [vmem:[%s1981_s5 + $0xe0] sm:$0xff]  }
 0x17f   : > { %v335_v43 = vpop.xlane.xlu1 %334 }
 0x180   : > { %v338_v44 = vmul.f32 0.0078125, %v335_v43 }
 0x182   : > { %v340_v45 = vadd.f32 1e-05, %v338_v44 }
 0x183   : > { %v337_v46 = vpop.xlane.xlu1 %336 }
 0x184   : > { %1425 = vrsqrt.f32 %v340_v45  ;;  %v339_v47 = vmul.f32 0.0078125, %v337_v46 }
 0x186   : > { %v341_v48 = vadd.f32 1e-05, %v339_v47 }
 0x188   : > { %1427 = vrsqrt.f32 %v341_v48 }
 0x18e   : > { %v1426_v49 = vpop.eup %1425 }
 0x18f   : > { %v344_v50 = vmul.f32 %v1426_v49, %v1736_v10  ;;  %v1405_v10 = vld [vmem:[%s1981_s5 + $0x58] sm:$0xff]  }
 0x191   : > { %v353_v54 = vmul.f32 %v1192_v51, %v344_v50 }
 0x192   : > { %v1428_v52 = vpop.eup %1427 }
 0x193   : > { %v345_v53 = vmul.f32 %v1428_v52, %v1741_v14  ;;  %v362_v57 = vadd.f32 %v1193_v55, %v353_v54  ;;  %v1409_v14 = vld [vmem:[%s1981_s5 + $0x60] sm:$0xff]  }
 0x195   : > { %v354_v56 = vmul.f32 %v1192_v51, %v345_v53 }
 0x197   : > { %v363_v58 = vadd.f32 %v1193_v55, %v354_v56 }
 0x199   : > { %v364_v59 = vpack.c.bf16 %v363_v58, %v362_v57 }
 0x19b   : > { %612 = vmatmul.mubr.bf16.vlgmr.msra.gmra.mrb[0].mxu0 %v364_v59  ;;  %655 = vmatmul.mubr.bf16.vlgmr.msra.gmra.mrb[0].mxu1 %v364_v59 }
 0x19c   : > { %1262 = vmatpush3.bf16.msra.mxu0 %v1395_v62  ;;  %1284 = vmatpush3.bf16.msra.mxu1 %v1396_v63 }
 0x19d   : > { %1263 = vmatprep.subr.bf16.mxu0 %v1397_v2  ;;  %1285 = vmatprep.subr.bf16.mxu1 %v1398_v3 }
 0x1a0   : > { %1264 = vmatpush3.bf16.msra.mxu0 %v1399_v4  ;;  %1286 = vmatpush3.bf16.msra.mxu1 %v1400_v5 }
 0x1a1   : > { %1265 = vmatprep.subr.bf16.mxu0 %v1401_v6  ;;  %1287 = vmatprep.subr.bf16.mxu1 %v1402_v7 }
 0x1a4   : > { %1266 = vmatpush3.bf16.msra.mxu0 %v1403_v8  ;;  %1288 = vmatpush3.bf16.msra.mxu1 %v1404_v9 }
 0x1a5   : > { %1267 = vmatprep.subr.bf16.mxu0 %v1405_v10  ;;  %1289 = vmatprep.subr.bf16.mxu1 %v1406_v11 }
 0x1a8   : > { %1268 = vmatpush3.bf16.msra.mxu0 %v1407_v12  ;;  %1290 = vmatpush3.bf16.msra.mxu1 %v1408_v13 }
 0x1a9   : > { %1269 = vmatprep.subr.bf16.mxu0 %v1409_v14  ;;  %1291 = vmatprep.subr.bf16.mxu1 %v1410_v15 }
 0x1ac   : > { %1270 = vmatpush3.bf16.msra.mxu0 %v1411_v16  ;;  %1292 = vmatpush3.bf16.msra.mxu1 %v1412_v17 }
 0x1ad   : > { %1271 = vmatprep.subr.bf16.mxu0 %v1413_v18  ;;  %1293 = vmatprep.subr.bf16.mxu1 %v1414_v19 }
 0x1b0   : > { %1272 = vmatpush3.bf16.msra.mxu0 %v1415_v20  ;;  %1294 = vmatpush3.bf16.msra.mxu1 %v1416_v21 }
 0x1b1   : > { %1273 = vmatprep.subr.bf16.mxu0 %v1417_v22  ;;  %1295 = vmatprep.subr.bf16.mxu1 %v1418_v23 }
 0x1b4   : > { %1274 = vmatpush3.bf16.msra.mxu0 %v1419_v24  ;;  %1296 = vmatpush3.bf16.msra.mxu1 %v1420_v25 }
 0x1b5   : > { %1275 = vmatprep.subr.bf16.mxu0 %v1421_v26  ;;  %1297 = vmatprep.subr.bf16.mxu1 %v1422_v27 }
 0x1b8   : > { %1276 = vmatpush3.bf16.msra.mxu0 %v1423_v28  ;;  %1298 = vmatpush3.bf16.msra.mxu1 %v1424_v29 }
 0x26e   : > { %v613_v41 = vpop.f32.mrb[0].mxu0  ;;  %v656_v42 = vpop.f32.mrb[0].mxu1 }
 0x26f   : > { %v1924_v43 = vadd.f32 %v613_v41, %v402_v37  ;;  %v1926_v44 = vadd.f32 %v656_v42, %v410_v38  ;;  %v615_v45 = vpop.f32.mrb[1].mxu0  ;;  %v658_v46 = vpop.f32.mrb[1].mxu1 }
 0x270   : > { %v1928_v47 = vadd.f32 %v615_v45, %v406_v39  ;;  %v1930_v48 = vadd.f32 %v658_v46, %v414_v40  ;;  %v617_v49 = vpop.f32.mrb[2].mxu0  ;;  %v660_v50 = vpop.f32.mrb[2].mxu1 }
 0x271   : > { %v673_v51 = vmul.f32 0.044715, %v1924_v43  ;;  %v675_v52 = vmul.f32 0.044715, %v1926_v44  ;;  %v618_v53 = vadd.f32 %v617_v49, %v402_v37  ;;  %v661_v54 = vadd.f32 %v660_v50, %v410_v38  ;;  %v619_v55 = vpop.f32.mrb[3].mxu0  ;;  %v662_v56 = vpop.f32.mrb[3].mxu1 }
 0x272   : > { %v674_v57 = vmul.f32 0.044715, %v1928_v47  ;;  %v676_v58 = vmul.f32 0.044715, %v1930_v48  ;;  %v1936_v59 = vadd.f32 %v619_v55, %v406_v39  ;;  %v1938_v60 = vadd.f32 %v662_v56, %v414_v40 }
 0x273   : > { %v681_v61 = vmul.f32 %v673_v51, %v1924_v43  ;;  %v683_v62 = vmul.f32 %v675_v52, %v1926_v44  ;;  %v677_v63 = vmul.f32 0.044715, %v618_v53  ;;  %v679_v2 = vmul.f32 0.044715, %v661_v54 }
 0x274   : > { %v682_v3 = vmul.f32 %v674_v57, %v1928_v47  ;;  %v684_v4 = vmul.f32 %v676_v58, %v1930_v48  ;;  %v678_v5 = vmul.f32 0.044715, %v1936_v59  ;;  %v680_v6 = vmul.f32 0.044715, %v1938_v60 }
 0x275   : > { %v689_v7 = vmul.f32 %v681_v61, %v1924_v43  ;;  %v691_v8 = vmul.f32 %v683_v62, %v1926_v44  ;;  %v685_v9 = vmul.f32 %v677_v63, %v618_v53  ;;  %v687_v10 = vmul.f32 %v679_v2, %v661_v54 }
 0x276   : > { %v690_v11 = vmul.f32 %v682_v3, %v1928_v47  ;;  %v692_v12 = vmul.f32 %v684_v4, %v1930_v48  ;;  %v686_v13 = vmul.f32 %v678_v5, %v1936_v59  ;;  %v688_v14 = vmul.f32 %v680_v6, %v1938_v60 }
 0x277   : > { %v697_v15 = vadd.f32 %v689_v7, %v1924_v43  ;;  %v699_v16 = vadd.f32 %v691_v8, %v1926_v44  ;;  %v693_v17 = vmul.f32 %v685_v9, %v618_v53  ;;  %v695_v18 = vmul.f32 %v687_v10, %v661_v54 }
 0x278   : > { %v694_v19 = vmul.f32 %v686_v13, %v1936_v59  ;;  %v696_v20 = vmul.f32 %v688_v14, %v1938_v60  ;;  %v698_v25 = vadd.f32 %v690_v11, %v1928_v47  ;;  %v700_v29 = vadd.f32 %v692_v12, %v1930_v48  ;;  %v1226_v12 = vld [vmem:[#allocation6] ss:$0 sm:$0xff] }
 0x279   : > { %v705_v21 = vmul.f32 0.7978846, %v697_v15  ;;  %v707_v22 = vmul.f32 0.7978846, %v699_v16  ;;  %v701_v23 = vadd.f32 %v693_v17, %v618_v53  ;;  %v703_v24 = vadd.f32 %v695_v18, %v661_v54 }
 0x27a   : > { %v702_v26 = vadd.f32 %v694_v19, %v1936_v59  ;;  %v706_v30 = vmul.f32 0.7978846, %v698_v25  ;;  %v704_v32 = vadd.f32 %v696_v20, %v1938_v60  ;;  %v708_v33 = vmul.f32 0.7978846, %v700_v29 }
 0x27b   : > { %1429 = vtanh.f32 %v705_v21  ;;  %v709_v27 = vmul.f32 0.7978846, %v701_v23  ;;  %v711_v28 = vmul.f32 0.7978846, %v703_v24  ;;  %v665_v41 = vmul.f32 0.5, %v1924_v43 }
 0x27c   : > { %1431 = vtanh.f32 %v707_v22  ;;  %v710_v31 = vmul.f32 0.7978846, %v702_v26  ;;  %v712_v34 = vmul.f32 0.7978846, %v704_v32  ;;  %v669_v42 = vmul.f32 0.5, %v618_v53 }
 0x27d   : > { %1433 = vtanh.f32 %v709_v27  ;;  %v667_v49 = vmul.f32 0.5, %v1926_v44  ;;  %v671_v50 = vmul.f32 0.5, %v661_v54  ;;  %v666_v55 = vmul.f32 0.5, %v1928_v47 }
 0x27e   : > { %1435 = vtanh.f32 %v711_v28  ;;  %v670_v62 = vmul.f32 0.5, %v1936_v59  ;;  %v668_v53 = vmul.f32 0.5, %v1930_v48  ;;  %v672_v4 = vmul.f32 0.5, %v1938_v60 }
 0x27f   : > { %1437 = vtanh.f32 %v706_v30 }
 0x280   : > { %1439 = vtanh.f32 %v710_v31 }
 0x281   : > { %1441 = vtanh.f32 %v708_v33 }
 0x282   : > { %1443 = vtanh.f32 %v712_v34 }
 0x285   : > { %v1430_v35 = vpop.eup %1429 }
 0x286   : > { %v1432_v36 = vpop.eup %1431  ;;  %v721_v37 = vadd.f32 1.0, %v1430_v35 }
 0x287   : > { %v1434_v38 = vpop.eup %1433  ;;  %v723_v39 = vadd.f32 1.0, %v1432_v36 }
 0x288   : > { %v1436_v40 = vpop.eup %1435  ;;  %v725_v45 = vadd.f32 1.0, %v1434_v38  ;;  %v729_v57 = vmul.f32 %v721_v37, %v665_v41 }
 0x289   : > { %v1438_v46 = vpop.eup %1437  ;;  %v727_v51 = vadd.f32 1.0, %v1436_v40  ;;  %v731_v2 = vmul.f32 %v723_v39, %v667_v49 }
 0x28a   : > { %v1440_v52 = vpop.eup %1439  ;;  %v722_v56 = vadd.f32 1.0, %v1438_v46  ;;  %v733_v58 = vmul.f32 %v725_v45, %v669_v42 }
 0x28b   : > { %v1442_v61 = vpop.eup %1441  ;;  %v726_v63 = vadd.f32 1.0, %v1440_v52  ;;  %v735_v3 = vmul.f32 %v727_v51, %v671_v50 }
 0x28c   : > { %v1444_v43 = vpop.eup %1443  ;;  %v724_v44 = vadd.f32 1.0, %v1442_v61  ;;  %v737_v54 = vpack.c.bf16 %v733_v58, %v729_v57  ;;  %v730_v5 = vmul.f32 %v722_v56, %v666_v55 }
 0x28d   : > { %v734_v6 = vmul.f32 %v726_v63, %v670_v62  ;;  %v728_v7 = vadd.f32 1.0, %v1444_v43  ;;  %v739_v47 = vpack.c.bf16 %v735_v3, %v731_v2 }
 0x28e   : > { %v732_v9 = vmul.f32 %v724_v44, %v668_v53 }
 0x28f   : > { %v738_v8 = vpack.c.bf16 %v734_v6, %v730_v5  ;;  %v736_v10 = vmul.f32 %v728_v7, %v672_v4 }
 0x291   : > { %1036 = vmatprep.mubr.bf16.mxu0 %v738_v8  ;;  %v740_v11 = vpack.c.bf16 %v736_v10, %v732_v9 }
 0x292   : > { %1037 = vmatmul.mubr.bf16.vlgmr.msra.gmra.mrb[4].mxu0 %v737_v54 }
 0x293   : > { %1077 = vmatprep.mubr.bf16.mxu1 %v740_v11 }
 0x294   : > { %1078 = vmatmul.mubr.bf16.vlgmr.msra.gmra.mrb[4].mxu1 %v739_v47 }
 0x365   : > { %v1277_v59 = vpop.f32.mrb[4].mxu0 }
 0x366   : > { %v1278_v48 = vpop.f32.mrb[5].mxu0 }
 0x367   : > { %v1299_v13 = vpop.f32.mrb[4].mxu1  ;;  %v1279_v60 = vadd.f32 %v1278_v48, %v1277_v59  ;;  %v1280_v14 = vpop.f32.mrb[6].mxu0 }
 0x368   : > { %v1300_v15 = vpop.f32.mrb[5].mxu1  ;;  %v1281_v16 = vpop.f32.mrb[7].mxu0 }
 0x369   : > { %v1039_v17 = vadd.f32 %v1279_v60, %v1226_v12  ;;  %v1301_v18 = vadd.f32 %v1300_v15, %v1299_v13  ;;  %v1302_v19 = vpop.f32.mrb[6].mxu1  ;;  %v1282_v20 = vadd.f32 %v1281_v16, %v1280_v14 }
 0x36a   : > { %v1303_v21 = vpop.f32.mrb[7].mxu1 }
 0x36b   : > { %v1080_v22 = vadd.f32 %v1301_v18, %v1039_v17  ;;  %v1042_v23 = vadd.f32 %v1282_v20, %v1226_v12  ;;  %v1304_v24 = vadd.f32 %v1303_v21, %v1302_v19 }
 0x36d   : > { %v1086_v25 = vadd.f32 %v1080_v22, %v1711_v0  ;;  %v1083_v26 = vadd.f32 %v1304_v24, %v1042_v23 }
 0x36f   : > { %1088 = vst [vmem:[%s318_s9] sm:$0xff] %v1086_v25  ;;  %v1087_v27 = vadd.f32 %v1083_v26, %v1713_v1 }
 0x371   : > { %1089 = vst [vmem:[%s318_s9 + $0x8] sm:$0xff] %v1087_v27 }
 0x372 PF: > { %s19_s24 = sadd.s32 1, %s1543_s24  }
 0x373   : > { %p16_p5 = scmp.ge.s32.totalorder %s19_s24, 4  }
 0x375   :  { %18 = sbr.rel (!%p16_p5) target bundleno = 2 (0x2), region = 91 }
 0x37c   :  { %1112 = vsyncpa [#allocation3], 1 }
 0x37d   :  { %1114 = vsyncpa [#allocation3 + $0x1], 1 }
 0x37e   :  { %1115 = vsyncpa [#allocation5], 1 }

// kernel: gpt2_forward.7
= control target key start
LH: loop header
LB: loop body
LE: loop exit
PB: predicated region body
PF: predicated region fallthrough
CT: control target
= control target key end

     0   :  { %s1815_s27 = smov 0   ;;  %s2089_s0 = inlined_call_operand.vmem [shape: f32[2,16,128], index: 0, kind: input, shape index: {}]   ;;  %s2090_s1 = inlined_call_operand.vmem [shape: f32[1,128], index: 1, kind: input, shape index: {}]   ;;  %s2091_s2 = inlined_call_operand.vmem [shape: f32[1,128], index: 2, kind: input, shape index: {}]   ;;  %s2092_s3 = inlined_call_operand.vmem [shape: bf16[128,384], index: 3, kind: input, shape index: {}]   ;;  %s2093_s4 = inlined_call_operand.vmem [shape: f32[1,384], index: 4, kind: input, shape index: {}]   ;;  %s2094_s5 = inlined_call_operand.vmem [shape: bf16[128,128], index: 5, kind: input, shape index: {}]   ;;  %s2095_s6 = inlined_call_operand.vmem [shape: f32[1,128], index: 6, kind: input, shape index: {}]   ;;  %s2096_s7 = inlined_call_operand.vmem [shape: f32[2,1,16], index: 7, kind: input, shape index: {}]   ;;  %s2097_s8 = inlined_call_operand.vmem [shape: f32[2,16,128], index: 8, kind: output, shape index: {}]  }
   0x1 LB: > { %s1454_s28 = sadd.s32 4294967295, %s1762_s27   ;;  %p1458_p0 = scmp.ge.s32.totalorder %s1762_s27, 1  ;;  %s1762_s27 = sphi %s1815_s27, %s18_s27  }
   0x2   : > { %p270_p1 = scmp.lt.s32.totalorder %s1762_s27, 3 }
   0x4   : > { %p271_p2 = pnand %p1458_p0, %p270_p1 }
   0x5   : > { %p307_p3 = scmp.lt.s32.totalorder (!%p271_p2), %s1454_s28, 1  ;;  %v1680_v2 = vld [vmem:[%s2092_s3 + $0x4] ss:$12 sps:$4 sm:$0xff] (!%p271_p2)   ;;  %v1682_v3 = vld [vmem:[%s2092_s3] ss:$12 sps:$4 sm:$0xff] (!%p271_p2)   ;;  %v1764_v4 = vmov (!%p271_p2), 0.0   ;;  %v399_v53 = vlaneseq (!%p271_p2) }
   0x6   : > { %274 = sbr.rel (%p271_p2) target bundleno = 2618 (0xa3a), region = 52  ;;  %1552 = vmatprep.subr.bf16.mxu1 (!%p271_p2), %v1764_v4  ;;  %v1683_v5 = vld [vmem:[%s2092_s3 + $0x8] ss:$12 sps:$4 sm:$0xff] (!%p271_p2)   ;;  %542 = vmatprep.subr.bf16.mxu0 (!%p271_p2), %v1680_v2  ;;  %v1686_v15 = vld [vmem:[%s2092_s3 + $0x18] ss:$12 sps:$4 sm:$0xff] (!%p271_p2)   ;;  %v1765_v30 = vmov (!%p271_p2), 0  }
   0x7   : > { %v1684_v6 = vld [vmem:[%s2092_s3 + $0x1c] ss:$12 sps:$4 sm:$0xff] (!%p271_p2)   ;;  %543 = vmatpush1.bf16.msra.mxu0 (!%p271_p2), %v1682_v3  ;;  %1553 = vmatpush3.bf16.msra.mxu1 (!%p271_p2), %v1683_v5  ;;  %v1687_v16 = vld [vmem:[%s2092_s3 + $0x20] ss:$12 sps:$4 sm:$0xff] (!%p271_p2)   ;;  %v1691_v19 = vld [vmem:[%s2092_s3 + $0x38] ss:$12 sps:$4 sm:$0xff] (!%p271_p2)  }
   0x8   : > { %544 = vmatprep.subr.bf16.mxu0 (!%p271_p2), %v1684_v6  ;;  %1554 = vmatprep.subr.bf16.mxu1 (!%p271_p2), %v1764_v4  ;;  %v1688_v17 = vld [vmem:[%s2092_s3 + $0x34] ss:$12 sps:$4 sm:$0xff] (!%p271_p2)   ;;  %v1690_v18 = vld [vmem:[%s2092_s3 + $0x30] ss:$12 sps:$4 sm:$0xff] (!%p271_p2)   ;;  %v1692_v20 = vld [vmem:[%s2092_s3 + $0x4c] ss:$12 sps:$4 sm:$0xff] (!%p271_p2)  }
   0x9   : > { %v1694_v21 = vld [vmem:[%s2092_s3 + $0x48] ss:$12 sps:$4 sm:$0xff] (!%p271_p2)   ;;  %v1695_v22 = vld [vmem:[%s2092_s3 + $0x50] ss:$12 sps:$4 sm:$0xff] (!%p271_p2)   ;;  %v1698_v24 = vld [vmem:[%s2092_s3 + $0x60] ss:$12 sps:$4 sm:$0xff] (!%p271_p2)   ;;  %574 = vmatprep.mubr.bf16.mxu0 (!%p271_p2), %v1765_v30 }
   0xa   : > { %v1696_v23 = vld [vmem:[%s2092_s3 + $0x64] ss:$12 sps:$4 sm:$0xff] (!%p271_p2)   ;;  %v1699_v25 = vld [vmem:[%s2092_s3 + $0x68] ss:$12 sps:$4 sm:$0xff] (!%p271_p2)   ;;  %v1703_v28 = vld [vmem:[%s2092_s3 + $0x80] ss:$12 sps:$4 sm:$0xff] (!%p271_p2)  }
   0xb   : > { %545 = vmatpush1.bf16.msra.mxu0 (!%p271_p2), %v1686_v15  ;;  %1555 = vmatpush3.bf16.msra.mxu1 (!%p271_p2), %v1687_v16  ;;  %v1700_v26 = vld [vmem:[%s2092_s3 + $0x7c] ss:$12 sps:$4 sm:$0xff] (!%p271_p2)   ;;  %v1702_v27 = vld [vmem:[%s2092_s3 + $0x78] ss:$12 sps:$4 sm:$0xff] (!%p271_p2)   ;;  %v1704_v29 = vld [vmem:[%s2092_s3 + $0x94] ss:$12 sps:$4 sm:$0xff] (!%p271_p2)  }
   0xc   : > { %1556 = vmatprep.subr.bf16.mxu1 (!%p271_p2), %v1764_v4  ;;  %546 = vmatprep.subr.bf16.mxu0 (!%p271_p2), %v1688_v17  ;;  %vm1766_vm0 = vmmov (!%p271_p2), 0   ;;  %v1706_v31 = vld [vmem:[%s2092_s3 + $0x90] ss:$12 sps:$4 sm:$0xff] (!%p271_p2)   ;;  %v1707_v32 = vld [vmem:[%s2092_s3 + $0x98] ss:$12 sps:$4 sm:$0xff] (!%p271_p2)   ;;  %v400_v54 = vshrl.u32 (!%p271_p2), %v399_v53, 7 }
   0xd   : > { %s2099_s28 = smov (!%p307_p3, %s1454_s28), 1  ;;  %1568 = vmatprep.mubr.msk.bf16.mxu1 %vm1766_vm0, %v1764_v4  ;;  %v1708_v33 = vld [vmem:[%s2092_s3 + $0xac] ss:$12 sps:$4 sm:$0xff]   ;;  %v1710_v34 = vld [vmem:[%s2092_s3 + $0xa8] ss:$12 sps:$4 sm:$0xff]   ;;  %vm654_vm1 = vcmask 261120  }
   0xe   : > { %s1513_s29 = sshll.u32 %s2099_s28, 4  ;;  %v1711_v35 = vld [vmem:[%s2092_s3 + $0xb0] ss:$12 sps:$4 sm:$0xff]   ;;  %v1463_v44 = vld [vmem:[%s2090_s1] ss:$0 sm:$0xff]  ;;  %v401_v55 = vsub.s32 0, %v400_v54 }
   0xf   : > { %s311_s10 = scalar_lea.vmem %s2089_s0, %s1513_s29  ;;  %547 = vmatpush1.bf16.msra.mxu0 %v1690_v18  ;;  %1557 = vmatpush3.bf16.msra.mxu1 %v1691_v19  ;;  %v1464_v48 = vld [vmem:[%s2091_s2] ss:$0 sm:$0xff]  ;;  %v409_v56 = vsub.s32 2, %v400_v54  ;;  %v405_v58 = vsub.s32 1, %v400_v54  ;;  %v633_v19 = vand.u32 127, %v399_v53  ;;  %vm702_vm4 = vcmask 130048   ;;  %s319_s15 = scalar_lea.vmem %s2097_s8, %s1513_s29 }
  0x10   : > { %v1831_v0 = vld [vmem:[%s311_s10] sm:$0xff]  ;;  %v1833_v1 = vld [vmem:[%s311_s10 + $0x8] sm:$0xff]  ;;  %1558 = vmatprep.subr.bf16.mxu1 %v1764_v4  ;;  %548 = vmatprep.subr.bf16.mxu0 %v1692_v20  ;;  %s314_s10 = scalar_lea.vmem %s2096_s7, %s2099_s28  ;;  %v631_v20 = vadd.s32 8, %v400_v54  ;;  %s1767_s11 = smov 96  }
  0x11   : > { %323 = vadd.xlane.f32.xlu0 %v1831_v0  ;;  %v397_v57 = vld [vmem:[%s2093_s4] sm:$0x7]  ;;  %vm634_vm2 = vcmp.le.s32.totalorder %v633_v19, %v400_v54  ;;  %s1768_s12 = smov 64   ;;  %s1769_s17 = smov 32  }
  0x12   : > { %v402_v59 = vrot.slane %v397_v57, %v401_v55  ;;  %v410_v60 = vrot.slane %v397_v57, %v409_v56  ;;  %v406_v63 = vrot.slane %v397_v57, %v405_v58  ;;  %vm635_vm3 = vcmp.le.s32.totalorder %v633_v19, %v631_v20  ;;  %v1713_v56 = vld [vmem:[%s2094_s5 + $0x8] sm:$0xff]  }
  0x13   : > { %549 = vmatpush1.bf16.msra.mxu0 %v1694_v21  ;;  %1559 = vmatpush3.bf16.msra.mxu1 %v1695_v22  ;;  %v1489_v21 = vld [vmem:[%s314_s10] ss:$0 sm:$0xff] }
  0x14   : > { %1560 = vmatprep.subr.bf16.mxu1 %v1764_v4  ;;  %550 = vmatprep.subr.bf16.mxu0 %v1696_v23  ;;  %v1965_v22 = vsel %vm634_vm2, %v1489_v21, -1e+09 }
  0x15   : > { %325 = vadd.xlane.f32.xlu0 %v1833_v1 }
  0x17   : > { %551 = vmatpush1.bf16.msra.mxu0 %v1698_v24  ;;  %1561 = vmatpush3.bf16.msra.mxu1 %v1699_v25  ;;  %v1967_v24 = vsel %vm635_vm3, %v1489_v21, -1e+09 }
  0x18   : > { %552 = vmatprep.subr.bf16.mxu0 %v1700_v26  ;;  %1562 = vmatprep.subr.bf16.mxu1 %v1764_v4 }
  0x1b   : > { %553 = vmatpush1.bf16.msra.mxu0 %v1702_v27  ;;  %1563 = vmatpush3.bf16.msra.mxu1 %v1703_v28 }
  0x1c   : > { %554 = vmatprep.subr.bf16.mxu0 %v1704_v29  ;;  %1564 = vmatprep.subr.bf16.mxu1 %v1764_v4 }
  0x1f   : > { %555 = vmatpush1.bf16.msra.mxu0 %v1706_v31  ;;  %1565 = vmatpush3.bf16.msra.mxu1 %v1707_v32 }
  0x20   : > { %556 = vmatprep.subr.bf16.mxu0 %v1708_v33  ;;  %1566 = vmatprep.subr.bf16.mxu1 %v1764_v4 }
  0x23   : > { %557 = vmatpush1.bf16.msra.mxu0 %v1710_v34  ;;  %1567 = vmatpush3.bf16.msra.mxu1 %v1711_v35 }
  0x24   : > { %1572 = vmatprep.subr.bf16.mxu1 %v1764_v4  ;;  %1584 = vmatprep.subr.bf16.mxu0 %v1764_v4 }
  0x9e   : > { %v324_v7 = vpop.xlane.xlu0 %323 }
  0x9f   : > { %v328_v8 = vmul.f32 0.0078125, %v324_v7 }
  0xa1   : > { %v1852_v9 = vsub.f32 %v1831_v0, %v328_v8 }
  0xa2   : > { %v326_v10 = vpop.xlane.xlu0 %325 }
  0xa3   : > { %v329_v11 = vmul.f32 0.0078125, %v326_v10  ;;  %v332_v12 = vmul.f32 %v1852_v9, %v1852_v9 }
  0xa5   : > { %v1857_v13 = vsub.f32 %v1833_v1, %v329_v11  ;;  %334 = vadd.xlane.f32.xlu1 %v332_v12 }
  0xa7   : > { %v333_v14 = vmul.f32 %v1857_v13, %v1857_v13 }
  0xa9   : > { %336 = vadd.xlane.f32.xlu1 %v333_v14 }
 0x132   : > { %v335_v36 = vpop.xlane.xlu1 %334 }
 0x133   : > { %v338_v37 = vmul.f32 0.0078125, %v335_v36 }
 0x135   : > { %v340_v38 = vadd.f32 1e-05, %v338_v37 }
 0x136   : > { %v337_v39 = vpop.xlane.xlu1 %336 }
 0x137   : > { %1720 = vrsqrt.f32 %v340_v38  ;;  %v339_v40 = vmul.f32 0.0078125, %v337_v39 }
 0x139   : > { %v341_v41 = vadd.f32 1e-05, %v339_v40 }
 0x13b   : > { %1722 = vrsqrt.f32 %v341_v41 }
 0x141   : > { %v1721_v42 = vpop.eup %1720 }
 0x142   : > { %v344_v43 = vmul.f32 %v1721_v42, %v1852_v9  ;;  %v1712_v42 = vld [vmem:[%s2094_s5] sm:$0xff]  }
 0x144   : > { %v353_v47 = vmul.f32 %v1463_v44, %v344_v43 }
 0x145   : > { %v1723_v45 = vpop.eup %1722 }
 0x146   : > { %v345_v46 = vmul.f32 %v1723_v45, %v1857_v13  ;;  %v362_v50 = vadd.f32 %v1464_v48, %v353_v47 }
 0x148   : > { %v354_v49 = vmul.f32 %v1463_v44, %v345_v46 }
 0x14a   : > { %v363_v51 = vadd.f32 %v1464_v48, %v354_v49 }
 0x14c   : > { %v364_v52 = vpack.c.bf16 %v363_v51, %v362_v50 }
 0x14e   : > { %575 = vmatmul.mubr.bf16.vlgmr.msra.gmra.mrb[0].mxu0 %v364_v52  ;;  %1569 = vmatmul.mubr.bf16.vlgmr.msra.gmra.mrb[0].mxu1 %v364_v52 }
 0x14f   : > { %1574 = vmatprep.mubr.msk.bf16.mxu1 %vm1766_vm0, %v1764_v4  ;;  %1588 = vmatprep.mubr.msk.bf16.mxu0 %vm1766_vm0, %v1764_v4 }
 0x150   : > { %1585 = vmatpush3.bf16.msra.mxu0 %v1712_v42 }
 0x151   : > { %1586 = vmatprep.subr.bf16.mxu0 %v1764_v4 }
 0x154   : > { %1587 = vmatpush3.bf16.msra.mxu0 %v1713_v56 }
 0x155   : > { %1598 = vmatprep.subr.bf16.mxu0 %v1764_v4 }
 0x221   : > { %v576_v61 = vpop.f32.mrb[0].mxu0  ;;  %v619_v62 = vpop.f32.mrb[0].mxu1 }
 0x222   : > { %v578_v2 = vpop.f32.mrb[1].mxu0  ;;  %v1570_v3 = vpop.f32.mrb[1].mxu1  ;;  %v577_v7 = vadd.f32 %v576_v61, %v402_v59  ;;  %v620_v8 = vadd.f32 %v619_v62, %v410_v60 }
 0x223   : > { %v580_v5 = vpop.f32.mrb[2].mxu0  ;;  %v622_v6 = vpop.f32.mrb[2].mxu1  ;;  %v579_v13 = vadd.f32 %v578_v2, %v406_v63 }
 0x224   : > { %v581_v9 = vadd.f32 %v580_v5, %v402_v59  ;;  %v623_v10 = vadd.f32 %v622_v6, %v410_v60  ;;  %v582_v11 = vpop.f32.mrb[3].mxu0  ;;  %v1571_v12 = vpop.f32.mrb[3].mxu1 }
 0x225   : > { %v583_v14 = vadd.f32 %v582_v11, %v406_v63 }
 0x226   : > { %v1946_v15 = vpack.c.bf16 %v581_v9, %v577_v7  ;;  %v1948_v16 = vpack.c.bf16 %v623_v10, %v620_v8 }
 0x227   : > { %v1950_v17 = vpack.c.bf16 %v583_v14, %v579_v13 }
 0x229   : > { %v659_v18 = vsel %vm654_vm1, %v1950_v17, 0 }
 0x22a   : > { %1573 = vmatpush3.bf16.xpose.msra.mxu1 %v659_v18 }
 0x22b   : > { %1578 = vmatprep.subr.bf16.mxu1 %v1764_v4 }
 0x231   : > { %1575 = vmatmul.mubr.msk.bf16.vlgmr.msra.gmra.mrb[4].mxu1 %vm654_vm1, %v1946_v15 }
 0x232   : > { %1579 = vmatpush3.bf16.msra.mxu1 %v1948_v16  ;;  %1580 = vmatprep.mubr.msk.bf16.mxu1 %vm1766_vm0, %v1764_v4 }
 0x233   : > { %1592 = vmatprep.subr.bf16.mxu1 %v1764_v4 }
 0x304   : > { %v695_v23 = vpop.f32.mrb[4].mxu1 }
 0x305   : > { %v696_v25 = vadd.f32 %v695_v23, %v1965_v22  ;;  %v1576_v26 = vpop.f32.mrb[5].mxu1 }
 0x306   : > { %v698_v27 = vpop.f32.mrb[6].mxu1 }
 0x307   : > { %v699_v28 = vadd.f32 %v698_v27, %v1967_v24  ;;  %v1577_v29 = vpop.f32.mrb[7].mxu1  ;;  %v703_v30 = vsel %vm702_vm4, %v696_v25, -inf }
 0x308   : > { %704 = vmax.xlane.f32.xlu0 %v703_v30 }
 0x309   : > { %v706_v31 = vsel %vm702_vm4, %v699_v28, -inf }
 0x30a   : > { %707 = vmax.xlane.f32.xlu1 %v706_v31 }
 0x395   : > { %v705_v32 = vpop.xlane.xlu0 %704 }
 0x396   : > { %v709_v33 = vsub.f32 %v696_v25, %v705_v32 }
 0x397   : > { %v708_v34 = vpop.xlane.xlu1 %707 }
 0x398   : > { %v711_v35 = vmul.f32 1.442695, %v709_v33  ;;  %v710_v36 = vsub.f32 %v699_v28, %v708_v34 }
 0x39a   : > { %1724 = vpow2.f32 %v711_v35  ;;  %v713_v37 = vmul.f32 1.442695, %v710_v36 }
 0x39c   : > { %1726 = vpow2.f32 %v713_v37 }
 0x3a4   : > { %v1725_v38 = vpop.eup %1724 }
 0x3a5   : > { %v715_v39 = vsel %vm702_vm4, %v1725_v38, 0.0 }
 0x3a6   : > { %v1727_v40 = vpop.eup %1726  ;;  %716 = vadd.xlane.f32.xlu0 %v715_v39 }
 0x3a7   : > { %v718_v41 = vsel %vm702_vm4, %v1727_v40, 0.0 }
 0x3a8   : > { %719 = vadd.xlane.f32.xlu1 %v718_v41 }
 0x3b9   : > { %834 = vrot.lane.b32.xlu1 %v1946_v15, %s1767_s11 }
 0x3bc   : > { %837 = vrot.lane.b32.xlu0 %v1950_v17, %s1767_s11 }
 0x3bd   : > { %1022 = vrot.lane.b32.xlu1 %v1950_v17, %s1768_s12 }
 0x3c1   : > { %1020 = vrot.lane.b32.xlu1 %v1946_v15, %s1768_s12 }
 0x433   : > { %v717_v43 = vpop.xlane.xlu0 %716 }
 0x434   : > { %1728 = vrcp.f32 %v717_v43 }
 0x435   : > { %v720_v44 = vpop.xlane.xlu1 %719 }
 0x436   : > { %1730 = vrcp.f32 %v720_v44 }
 0x437   : > { %v838_v49 = vpop.permute.xlu0 %837 }
 0x438   : > { %v843_v52 = vsel %vm654_vm1, %v838_v49, 0 }
 0x439   : > { %v835_v51 = vpop.permute.xlu1 %834 }
 0x43d   : > { %v1023_v53 = vpop.permute.xlu1 %1022 }
 0x43e   : > { %v1729_v45 = vpop.eup %1728  ;;  %v1028_v54 = vsel %vm654_vm1, %v1023_v53, 0 }
 0x43f   : > { %v722_v47 = vmul.f32 %v1729_v45, %v1725_v38 }
 0x440   : > { %v1731_v46 = vpop.eup %1730 }
 0x441   : > { %v724_v48 = vmul.f32 %v1731_v46, %v1727_v40  ;;  %v1021_v55 = vpop.permute.xlu1 %1020 }
 0x443   : > { %v725_v50 = vpack.c.bf16 %v724_v48, %v722_v47 }
 0x445   : > { %1581 = vmatmul.mubr.msk.bf16.vlgmr.msra.gmra.mrb[8].mxu1 %vm702_vm4, %v725_v50 }
 0x446   : > { %1593 = vmatpush3.bf16.xpose.msra.mxu1 %v843_v52  ;;  %1594 = vmatprep.mubr.msk.bf16.mxu1 %vm1766_vm0, %v1764_v4 }
 0x447   : > { %1612 = vmatprep.subr.bf16.mxu1 %v1764_v4 }
 0x44d   : > { %1595 = vmatmul.mubr.msk.bf16.vlgmr.msra.gmra.mrb[12].mxu1 %vm654_vm1, %v835_v51 }
 0x44e   : > { %1613 = vmatpush3.bf16.xpose.msra.mxu1 %v1028_v54  ;;  %1614 = vmatprep.mubr.msk.bf16.mxu1 %vm1766_vm0, %v1764_v4 }
 0x44f   : > { %1618 = vmatprep.subr.bf16.mxu1 %v1764_v4 }
 0x455   : > { %1615 = vmatmul.mubr.msk.bf16.vlgmr.msra.gmra.mrb[16].mxu1 %vm654_vm1, %v1021_v55 }
 0x456   : > { %1620 = vmatprep.mubr.msk.bf16.mxu1 %vm1766_vm0, %v1764_v4 }
 0x518   : > { %v763_v57 = vpop.f32.mrb[8].mxu1 }
 0x519   : > { %v1582_v58 = vpop.f32.mrb[9].mxu1 }
 0x51a   : > { %v766_v59 = vpop.f32.mrb[10].mxu1 }
 0x51b   : > { %v770_v60 = vpack.c.bf16 %v766_v59, %v763_v57  ;;  %v1583_v61 = vpop.f32.mrb[11].mxu1 }
 0x51d   : > { %1589 = vmatmul.mubr.msk.bf16.vlgmr.msra.gmra.mrb[4].mxu0 %vm654_vm1, %v770_v60 }
 0x51e   : > { %1600 = vmatprep.mubr.msk.bf16.mxu0 %vm1766_vm0, %v1764_v4 }
 0x520   : > { %v879_v62 = vpop.f32.mrb[12].mxu1 }
 0x521   : > { %v1596_v63 = vpop.f32.mrb[13].mxu1  ;;  %v880_v13 = vadd.f32 %v879_v62, %v1965_v22 }
 0x522   : > { %v882_v2 = vpop.f32.mrb[14].mxu1 }
 0x523   : > { %v1597_v3 = vpop.f32.mrb[15].mxu1  ;;  %v886_v14 = vsel %vm702_vm4, %v880_v13, -inf  ;;  %v883_v34 = vadd.f32 %v882_v2, %v1967_v24 }
 0x525   : > { %v889_v35 = vsel %vm702_vm4, %v883_v34, -inf }
 0x528   : > { %v1064_v5 = vpop.f32.mrb[16].mxu1 }
 0x529   : > { %v1065_v6 = vadd.f32 %v1064_v5, %v1965_v22  ;;  %v1616_v7 = vpop.f32.mrb[17].mxu1 }
 0x52a   : > { %v1067_v8 = vpop.f32.mrb[18].mxu1 }
 0x52b   : > { %v1068_v9 = vadd.f32 %v1067_v8, %v1967_v24  ;;  %v1617_v10 = vpop.f32.mrb[19].mxu1  ;;  %v1071_v11 = vsel %vm702_vm4, %v1065_v6, -inf }
 0x52c   : > { %1072 = vmax.xlane.f32.xlu0 %v1071_v11  ;;  %v1714_v10 = vld [vmem:[%s2094_s5 + $0x10] sm:$0xff]  }
 0x52d   : > { %v1074_v12 = vsel %vm702_vm4, %v1068_v9, -inf }
 0x52e   : > { %1075 = vmax.xlane.f32.xlu1 %v1074_v12 }
 0x53f   : > { %1206 = vrot.lane.b32.xlu1 %v1950_v17, %s1769_s17 }
 0x543   : > { %1204 = vrot.lane.b32.xlu1 %v1946_v15, %s1769_s17 }
 0x567   : > { %887 = vmax.xlane.f32.xlu1 %v886_v14 }
 0x578   : > { %910 = vrot.lane.b32.xlu1 %v1948_v16, %s1767_s11 }
 0x57c   : > { %1278 = vrot.lane.b32.xlu1 %v1948_v16, %s1769_s17 }
 0x5b9   : > { %v1073_v18 = vpop.xlane.xlu0 %1072 }
 0x5ba   : > { %v1077_v19 = vsub.f32 %v1065_v6, %v1073_v18 }
 0x5bb   : > { %v1076_v20 = vpop.xlane.xlu1 %1075 }
 0x5bc   : > { %v1079_v21 = vmul.f32 1.442695, %v1077_v19  ;;  %v1078_v23 = vsub.f32 %v1068_v9, %v1076_v20 }
 0x5be   : > { %1732 = vpow2.f32 %v1079_v21  ;;  %v1081_v25 = vmul.f32 1.442695, %v1078_v23 }
 0x5bf   : > { %v1207_v28 = vpop.permute.xlu1 %1206 }
 0x5c0   : > { %1734 = vpow2.f32 %v1081_v25  ;;  %v1212_v45 = vsel %vm654_vm1, %v1207_v28, 0 }
 0x5c3   : > { %v1205_v29 = vpop.permute.xlu1 %1204 }
 0x5c8   : > { %v1733_v17 = vpop.eup %1732 }
 0x5c9   : > { %v1083_v15 = vsel %vm702_vm4, %v1733_v17, 0.0 }
 0x5ca   : > { %v1735_v26 = vpop.eup %1734  ;;  %1084 = vadd.xlane.f32.xlu0 %v1083_v15 }
 0x5cb   : > { %v1086_v27 = vsel %vm702_vm4, %v1735_v26, 0.0 }
 0x5ce   : > { %1087 = vadd.xlane.f32.xlu0 %v1086_v27 }
 0x5e4   : > { %1094 = vrot.lane.b32.xlu0 %v1948_v16, %s1768_s12 }
 0x5f4   : > { %v888_v30 = vpop.xlane.xlu1 %887 }
 0x5f5   : > { %v892_v31 = vsub.f32 %v880_v13, %v888_v30 }
 0x5f7   : > { %v894_v32 = vmul.f32 1.442695, %v892_v31 }
 0x5f8   : > { %v911_v33 = vpop.permute.xlu1 %910 }
 0x5f9   : > { %1736 = vpow2.f32 %v894_v32  ;;  %1599 = vmatpush3.bf16.msra.mxu0 %v911_v33 }
 0x5fa   : > { %1604 = vmatprep.subr.bf16.mxu0 %v1764_v4 }
 0x5fc   : > { %v1279_v30 = vpop.permute.xlu1 %1278 }
 0x603   : > { %v1737_v36 = vpop.eup %1736  ;;  %890 = vmax.xlane.f32.xlu0 %v889_v35 }
 0x604   : > { %v898_v37 = vsel %vm702_vm4, %v1737_v36, 0.0 }
 0x607   : > { %899 = vadd.xlane.f32.xlu0 %v898_v37  ;;  %v1718_v37 = vld [vmem:[%s2094_s5 + $0x30] sm:$0xff]  }
 0x657   : > { %v1085_v16 = vpop.xlane.xlu0 %1084 }
 0x658   : > { %1738 = vrcp.f32 %v1085_v16 }
 0x65b   : > { %v1088_v38 = vpop.xlane.xlu0 %1087 }
 0x65c   : > { %1740 = vrcp.f32 %v1088_v38  ;;  %v1719_v38 = vld [vmem:[%s2094_s5 + $0x38] sm:$0xff]  }
 0x65f   : > { %v1095_v39 = vpop.permute.xlu0 %1094 }
 0x660   : > { %1619 = vmatpush3.bf16.msra.mxu1 %v1095_v39 }
 0x661   : > { %1632 = vmatprep.subr.bf16.mxu1 %v1764_v4 }
 0x662   : > { %v1739_v40 = vpop.eup %1738 }
 0x663   : > { %v1090_v42 = vmul.f32 %v1739_v40, %v1733_v17 }
 0x666   : > { %v1741_v41 = vpop.eup %1740 }
 0x667   : > { %v1092_v43 = vmul.f32 %v1741_v41, %v1735_v26  ;;  %v1716_v26 = vld [vmem:[%s2094_s5 + $0x20] sm:$0xff]  }
 0x669   : > { %v1093_v44 = vpack.c.bf16 %v1092_v43, %v1090_v42 }
 0x66b   : > { %1621 = vmatmul.mubr.msk.bf16.vlgmr.msra.gmra.mrb[20].mxu1 %vm702_vm4, %v1093_v44  ;;  %v1490_v44 = vld [vmem:[%s2095_s6] ss:$0 sm:$0xff] }
 0x66c   : > { %1633 = vmatpush3.bf16.xpose.msra.mxu1 %v1212_v45  ;;  %1634 = vmatprep.mubr.msk.bf16.mxu1 %vm1766_vm0, %v1764_v4  ;;  %v652_v45 = vadd.f32 %v1490_v44, %v1831_v0 }
 0x673   : > { %1635 = vmatmul.mubr.msk.bf16.vlgmr.msra.gmra.mrb[24].mxu1 %vm654_vm1, %v1205_v29  ;;  %v1717_v29 = vld [vmem:[%s2094_s5 + $0x28] sm:$0xff]  }
 0x690   : > { %v891_v46 = vpop.xlane.xlu0 %890 }
 0x691   : > { %v893_v47 = vsub.f32 %v883_v34, %v891_v46 }
 0x693   : > { %v896_v48 = vmul.f32 1.442695, %v893_v47 }
 0x694   : > { %v900_v51 = vpop.xlane.xlu0 %899 }
 0x695   : > { %1742 = vpow2.f32 %v896_v48 }
 0x696   : > { %1744 = vrcp.f32 %v900_v51 }
 0x69f   : > { %v1743_v49 = vpop.eup %1742 }
 0x6a0   : > { %v901_v50 = vsel %vm702_vm4, %v1743_v49, 0.0  ;;  %v1745_v53 = vpop.eup %1744 }
 0x6a1   : > { %902 = vadd.xlane.f32.xlu0 %v901_v50  ;;  %v905_v55 = vmul.f32 %v1745_v53, %v1737_v36 }
 0x72e   : > { %v903_v52 = vpop.xlane.xlu0 %902 }
 0x72f   : > { %1746 = vrcp.f32 %v903_v52 }
 0x739   : > { %v1747_v54 = vpop.eup %1746 }
 0x73a   : > { %v907_v56 = vmul.f32 %v1747_v54, %v1743_v49 }
 0x73c   : > { %v908_v57 = vpack.c.bf16 %v907_v56, %v905_v55 }
 0x73e   : > { %1601 = vmatmul.mubr.msk.bf16.vlgmr.msra.gmra.mrb[8].mxu0 %vm702_vm4, %v908_v57  ;;  %v1134_v58 = vpop.f32.mrb[20].mxu1 }
 0x73f   : > { %v1622_v59 = vpop.f32.mrb[21].mxu1  ;;  %1608 = vmatprep.mubr.msk.bf16.mxu0 %vm1766_vm0, %v1764_v4  ;;  %1605 = vmatpush3.bf16.msra.mxu0 %v1714_v10 }
 0x740   : > { %v1137_v60 = vpop.f32.mrb[22].mxu1  ;;  %1606 = vmatprep.subr.bf16.mxu0 %v1764_v4 }
 0x741   : > { %v1141_v61 = vpack.c.bf16 %v1137_v60, %v1134_v58  ;;  %v1623_v62 = vpop.f32.mrb[23].mxu1 }
 0x746   : > { %v1248_v63 = vpop.f32.mrb[24].mxu1 }
 0x747   : > { %v1249_v2 = vadd.f32 %v1248_v63, %v1965_v22  ;;  %v1636_v3 = vpop.f32.mrb[25].mxu1  ;;  %v1715_v22 = vld [vmem:[%s2094_s5 + $0x18] sm:$0xff]  }
 0x748   : > { %v1251_v5 = vpop.f32.mrb[26].mxu1  ;;  %1607 = vmatpush3.bf16.msra.mxu0 %v1715_v22 }
 0x749   : > { %v1252_v6 = vadd.f32 %v1251_v5, %v1967_v24  ;;  %v1637_v7 = vpop.f32.mrb[27].mxu1  ;;  %v1255_v8 = vsel %vm702_vm4, %v1249_v2, -inf  ;;  %1624 = vmatprep.subr.bf16.mxu0 %v1764_v4 }
 0x74a   : > { %1256 = vmax.xlane.f32.xlu0 %v1255_v8 }
 0x74b   : > { %v1258_v9 = vsel %vm702_vm4, %v1252_v6, -inf }
 0x74e   : > { %1259 = vmax.xlane.f32.xlu0 %v1258_v9 }
 0x7d7   : > { %v1257_v24 = vpop.xlane.xlu0 %1256 }
 0x7d8   : > { %v1261_v11 = vsub.f32 %v1249_v2, %v1257_v24 }
 0x7da   : > { %v1263_v12 = vmul.f32 1.442695, %v1261_v11 }
 0x7db   : > { %v1260_v13 = vpop.xlane.xlu0 %1259 }
 0x7dc   : > { %1748 = vpow2.f32 %v1263_v12  ;;  %v1262_v14 = vsub.f32 %v1252_v6, %v1260_v13 }
 0x7de   : > { %v1265_v18 = vmul.f32 1.442695, %v1262_v14 }
 0x7e0   : > { %1750 = vpow2.f32 %v1265_v18 }
 0x7e6   : > { %v1749_v19 = vpop.eup %1748 }
 0x7e7   : > { %v1267_v20 = vsel %vm702_vm4, %v1749_v19, 0.0 }
 0x7e8   : > { %1268 = vadd.xlane.f32.xlu0 %v1267_v20 }
 0x7ea   : > { %v1751_v21 = vpop.eup %1750 }
 0x7eb   : > { %v1270_v23 = vsel %vm702_vm4, %v1751_v21, 0.0 }
 0x7ec   : > { %1271 = vadd.xlane.f32.xlu0 %v1270_v23 }
 0x811   : > { %v950_v25 = vpop.f32.mrb[8].mxu0 }
 0x812   : > { %v1602_v17 = vpop.f32.mrb[9].mxu0 }
 0x813   : > { %v953_v15 = vpop.f32.mrb[10].mxu0 }
 0x814   : > { %v957_v27 = vpack.c.bf16 %v953_v15, %v950_v25  ;;  %v1603_v28 = vpop.f32.mrb[11].mxu0 }
 0x816   : > { %1609 = vmatmul.mubr.msk.bf16.vlgmr.msra.gmra.mrb[4].mxu0 %vm654_vm1, %v957_v27 }
 0x817   : > { %1625 = vmatpush3.bf16.msra.mxu0 %v1716_v26  ;;  %1628 = vmatprep.mubr.msk.bf16.mxu0 %vm1766_vm0, %v1764_v4 }
 0x818   : > { %1626 = vmatprep.subr.bf16.mxu0 %v1764_v4 }
 0x81b   : > { %1627 = vmatpush3.bf16.msra.mxu0 %v1717_v29 }
 0x81c   : > { %1638 = vmatprep.subr.bf16.mxu0 %v1764_v4 }
 0x822   : > { %1629 = vmatmul.mubr.msk.bf16.vlgmr.msra.gmra.mrb[4].mxu0 %vm654_vm1, %v1141_v61 }
 0x823   : > { %1639 = vmatpush3.bf16.msra.mxu0 %v1279_v30  ;;  %1640 = vmatprep.mubr.msk.bf16.mxu0 %vm1766_vm0, %v1764_v4 }
 0x824   : > { %1644 = vmatprep.subr.bf16.mxu0 %v1764_v4 }
 0x875   : > { %v1269_v31 = vpop.xlane.xlu0 %1268 }
 0x876   : > { %1752 = vrcp.f32 %v1269_v31 }
 0x879   : > { %v1272_v32 = vpop.xlane.xlu0 %1271 }
 0x87a   : > { %1754 = vrcp.f32 %v1272_v32 }
 0x880   : > { %v1753_v33 = vpop.eup %1752 }
 0x881   : > { %v1274_v35 = vmul.f32 %v1753_v33, %v1749_v19 }
 0x884   : > { %v1755_v34 = vpop.eup %1754 }
 0x885   : > { %v1276_v36 = vmul.f32 %v1755_v34, %v1751_v21 }
 0x887   : > { %v1277_v16 = vpack.c.bf16 %v1276_v36, %v1274_v35 }
 0x889   : > { %1641 = vmatmul.mubr.msk.bf16.vlgmr.msra.gmra.mrb[12].mxu0 %vm702_vm4, %v1277_v16 }
 0x88a   : > { %1645 = vmatpush3.bf16.msra.mxu0 %v1718_v37  ;;  %1648 = vmatprep.mubr.msk.bf16.mxu0 %vm1766_vm0, %v1764_v4 }
 0x88b   : > { %1646 = vmatprep.subr.bf16.mxu0 %v1764_v4  ;;  %v653_v4 = vadd.f32 %v1490_v44, %v1833_v1 }
 0x88e   : > { %1647 = vmatpush3.bf16.msra.mxu0 %v1719_v38 }
 0x95c   : > { %v1318_v39 = vpop.f32.mrb[12].mxu0 }
 0x95d   : > { %v1642_v40 = vpop.f32.mrb[13].mxu0 }
 0x95e   : > { %v1321_v41 = vpop.f32.mrb[14].mxu0 }
 0x95f   : > { %v1325_v42 = vpack.c.bf16 %v1321_v41, %v1318_v39  ;;  %v1643_v43 = vpop.f32.mrb[15].mxu0 }
 0x961   : > { %1649 = vmatmul.mubr.msk.bf16.vlgmr.msra.gmra.mrb[4].mxu0 %vm654_vm1, %v1325_v42 }
 0xa34   : > { %v1379_v46 = vpop.f32.mrb[4].mxu0 }
 0xa35   : > { %v1652_v47 = vadd.f32 %v1379_v46, %v652_v45  ;;  %v1650_v48 = vpop.f32.mrb[5].mxu0 }
 0xa36   : > { %v1382_v49 = vpop.f32.mrb[6].mxu0 }
 0xa37   : > { %1388 = vst [vmem:[%s319_s15] sm:$0xff] %v1652_v47  ;;  %v1653_v50 = vadd.f32 %v1382_v49, %v653_v4  ;;  %v1651_v51 = vpop.f32.mrb[7].mxu0 }
 0xa39   : > { %1389 = vst [vmem:[%s319_s15 + $0x8] sm:$0xff] %v1653_v50 }
 0xa3a PF: > { %s18_s27 = sadd.s32 1, %s1762_s27  }
 0xa3b   : > { %p15_p4 = scmp.ge.s32.totalorder %s18_s27, 4  }
 0xa3d   :  { %17 = sbr.rel (!%p15_p4) target bundleno = 1 (0x1), region = 85 }

// kernel: gpt2_forward.8
= control target key start
LH: loop header
LB: loop body
LE: loop exit
PB: predicated region body
PF: predicated region fallthrough
CT: control target
= control target key end

     0   :  { %s1388_s24 = smov 0   ;;  %s1678_s0 = inlined_call_operand.vmem [shape: f32[32,128], index: 0, kind: input, shape index: {}]   ;;  %s1679_s1 = inlined_call_operand.vmem [shape: f32[1,128], index: 1, kind: input, shape index: {}]   ;;  %s1680_s2 = inlined_call_operand.vmem [shape: f32[1,128], index: 2, kind: input, shape index: {}]   ;;  %s1681_s3 = inlined_call_operand.vmem [shape: bf16[128,512], index: 3, kind: input, shape index: {}]   ;;  %s1682_s4 = inlined_call_operand.vmem [shape: f32[1,512], index: 4, kind: input, shape index: {}]   ;;  %s1683_s5 = inlined_call_operand.vmem [shape: bf16[512,128], index: 5, kind: input, shape index: {}]   ;;  %s1684_s6 = inlined_call_operand.vmem [shape: f32[1,128], index: 6, kind: input, shape index: {}]   ;;  %s1685_s7 = inlined_call_operand.vmem [shape: f32[32,128], index: 7, kind: output, shape index: {}]  }
   0x1 LB: > { %s1108_s25 = sadd.s32 4294967295, %s1345_s24   ;;  %p1112_p0 = scmp.ge.s32.totalorder %s1345_s24, 1  ;;  %s1345_s24 = sphi %s1388_s24, %s17_s24  }
   0x2   : > { %p238_p1 = scmp.lt.s32.totalorder %s1345_s24, 3 }
   0x4   : > { %p239_p2 = pnand %p1112_p0, %p238_p1 }
   0x5   : > { %s1113_s26 = sshll.u32 (!%p239_p2), %s1108_s25, 1  ;;  %v1239_v2 = vld [vmem:[%s1681_s3 + $0x4] ss:$16 sps:$4 sm:$0xff] (!%p239_p2)   ;;  %v1241_v3 = vld [vmem:[%s1681_s3 + $0xc] ss:$16 sps:$4 sm:$0xff] (!%p239_p2)   ;;  %v1347_v36 = vmov (!%p239_p2), 0  }
   0x6   : > { %242 = sbr.rel (%p239_p2) target bundleno = 805 (0x325), region = 48  ;;  %p271_p3 = scmp.lt.s32.totalorder (!%p239_p2), %s1113_s26, 3  ;;  %v1243_v4 = vld [vmem:[%s1681_s3] ss:$16 sps:$4 sm:$0xff] (!%p239_p2)   ;;  %v1244_v5 = vld [vmem:[%s1681_s3 + $0x8] ss:$16 sps:$4 sm:$0xff] (!%p239_p2)   ;;  %541 = vmatprep.subr.bf16.mxu0 (!%p239_p2), %v1239_v2  ;;  %584 = vmatprep.subr.bf16.mxu1 (!%p239_p2), %v1241_v3 }
   0x7   : > { %v1245_v6 = vld [vmem:[%s1681_s3 + $0x24] ss:$16 sps:$4 sm:$0xff] (!%p239_p2)   ;;  %v1247_v7 = vld [vmem:[%s1681_s3 + $0x2c] ss:$16 sps:$4 sm:$0xff] (!%p239_p2)   ;;  %542 = vmatpush1.bf16.msra.mxu0 (!%p239_p2), %v1243_v4  ;;  %585 = vmatpush1.bf16.msra.mxu1 (!%p239_p2), %v1244_v5  ;;  %v1249_v16 = vld [vmem:[%s1681_s3 + $0x20] ss:$16 sps:$4 sm:$0xff] (!%p239_p2)  }
   0x8   : > { %543 = vmatprep.subr.bf16.mxu0 (!%p239_p2), %v1245_v6  ;;  %586 = vmatprep.subr.bf16.mxu1 (!%p239_p2), %v1247_v7  ;;  %v1250_v17 = vld [vmem:[%s1681_s3 + $0x28] ss:$16 sps:$4 sm:$0xff] (!%p239_p2)   ;;  %v1251_v18 = vld [vmem:[%s1681_s3 + $0x44] ss:$16 sps:$4 sm:$0xff] (!%p239_p2)   ;;  %v1253_v19 = vld [vmem:[%s1681_s3 + $0x4c] ss:$16 sps:$4 sm:$0xff] (!%p239_p2)  }
   0x9   : > { %v1255_v20 = vld [vmem:[%s1681_s3 + $0x40] ss:$16 sps:$4 sm:$0xff] (!%p239_p2)   ;;  %v1256_v21 = vld [vmem:[%s1681_s3 + $0x48] ss:$16 sps:$4 sm:$0xff] (!%p239_p2)   ;;  %v1257_v22 = vld [vmem:[%s1681_s3 + $0x64] ss:$16 sps:$4 sm:$0xff] (!%p239_p2)   ;;  %573 = vmatprep.mubr.bf16.mxu0 (!%p239_p2), %v1347_v36  ;;  %616 = vmatprep.mubr.bf16.mxu1 (!%p239_p2), %v1347_v36 }
   0xa   : > { %v1259_v23 = vld [vmem:[%s1681_s3 + $0x6c] ss:$16 sps:$4 sm:$0xff] (!%p239_p2)   ;;  %v1261_v24 = vld [vmem:[%s1681_s3 + $0x60] ss:$16 sps:$4 sm:$0xff] (!%p239_p2)   ;;  %v1262_v25 = vld [vmem:[%s1681_s3 + $0x68] ss:$16 sps:$4 sm:$0xff] (!%p239_p2)  }
   0xb   : > { %544 = vmatpush1.bf16.msra.mxu0 (!%p239_p2), %v1249_v16  ;;  %587 = vmatpush1.bf16.msra.mxu1 (!%p239_p2), %v1250_v17  ;;  %v1263_v26 = vld [vmem:[%s1681_s3 + $0x84] ss:$16 sps:$4 sm:$0xff] (!%p239_p2)   ;;  %v1265_v27 = vld [vmem:[%s1681_s3 + $0x8c] ss:$16 sps:$4 sm:$0xff] (!%p239_p2)   ;;  %v1267_v28 = vld [vmem:[%s1681_s3 + $0x80] ss:$16 sps:$4 sm:$0xff] (!%p239_p2)  }
   0xc   : > { %545 = vmatprep.subr.bf16.mxu0 (!%p239_p2), %v1251_v18  ;;  %588 = vmatprep.subr.bf16.mxu1 (!%p239_p2), %v1253_v19  ;;  %v1268_v29 = vld [vmem:[%s1681_s3 + $0x88] ss:$16 sps:$4 sm:$0xff] (!%p239_p2)   ;;  %v1269_v30 = vld [vmem:[%s1681_s3 + $0xa4] ss:$16 sps:$4 sm:$0xff] (!%p239_p2)   ;;  %v1271_v31 = vld [vmem:[%s1681_s3 + $0xac] ss:$16 sps:$4 sm:$0xff] (!%p239_p2)  }
   0xd   : > { %s1687_s26 = smov (!%p271_p3, %s1113_s26), 3  ;;  %v1273_v32 = vld [vmem:[%s1681_s3 + $0xa0] ss:$16 sps:$4 sm:$0xff]   ;;  %v1274_v33 = vld [vmem:[%s1681_s3 + $0xa8] ss:$16 sps:$4 sm:$0xff]  }
   0xe   : > { %s1114_s27 = sshll.u32 %s1687_s26, 3  ;;  %v1275_v34 = vld [vmem:[%s1681_s3 + $0xc4] ss:$16 sps:$4 sm:$0xff]   ;;  %v1277_v35 = vld [vmem:[%s1681_s3 + $0xcc] ss:$16 sps:$4 sm:$0xff]  }
   0xf   : > { %s274_s30 = scalar_lea.vmem %s1678_s0, %s1114_s27  ;;  %546 = vmatpush1.bf16.msra.mxu0 %v1255_v20  ;;  %589 = vmatpush1.bf16.msra.mxu1 %v1256_v21  ;;  %v1279_v37 = vld [vmem:[%s1681_s3 + $0xc0] ss:$16 sps:$4 sm:$0xff]   ;;  %v1280_v38 = vld [vmem:[%s1681_s3 + $0xc8] ss:$16 sps:$4 sm:$0xff]   ;;  %v1281_v39 = vld [vmem:[%s1681_s3 + $0xe4] ss:$16 sps:$4 sm:$0xff]   ;;  %s280_s29 = scalar_lea.vmem %s1685_s7, %s1114_s27 }
  0x10   : > { %v1404_v0 = vld [vmem:[%s274_s30] sm:$0xff]  ;;  %v1406_v1 = vld [vmem:[%s274_s30 + $0x8] sm:$0xff]  ;;  %547 = vmatprep.subr.bf16.mxu0 %v1257_v22  ;;  %590 = vmatprep.subr.bf16.mxu1 %v1259_v23  ;;  %v1295_v6 = vld [vmem:[%s1683_s5 + $0x50] sm:$0xff]  }
  0x11   : > { %285 = vadd.xlane.f32.xlu0 %v1404_v0  ;;  %v1283_v40 = vld [vmem:[%s1681_s3 + $0xec] ss:$16 sps:$4 sm:$0xff]   ;;  %v1285_v41 = vld [vmem:[%s1681_s3 + $0xe0] ss:$16 sps:$4 sm:$0xff]   ;;  %v1286_v42 = vld [vmem:[%s1681_s3 + $0xe8] ss:$16 sps:$4 sm:$0xff]  }
  0x12   : > { %v1117_v51 = vld [vmem:[%s1679_s1] ss:$0 sm:$0xff]  ;;  %v1291_v2 = vld [vmem:[%s1683_s5 + $0x48] sm:$0xff]   ;;  %v1296_v7 = vld [vmem:[%s1683_s5 + $0xd0] sm:$0xff]  }
  0x13   : > { %548 = vmatpush1.bf16.msra.mxu0 %v1261_v24  ;;  %591 = vmatpush1.bf16.msra.mxu1 %v1262_v25  ;;  %v1118_v55 = vld [vmem:[%s1680_s2] ss:$0 sm:$0xff]  ;;  %v1292_v3 = vld [vmem:[%s1683_s5 + $0xc8] sm:$0xff]   ;;  %v1311_v22 = vld [vmem:[%s1683_s5 + $0x70] sm:$0xff]  }
  0x14   : > { %549 = vmatprep.subr.bf16.mxu0 %v1263_v26  ;;  %592 = vmatprep.subr.bf16.mxu1 %v1265_v27  ;;  %v1287_v60 = vld [vmem:[%s1683_s5 + $0x40] sm:$0xff]   ;;  %v1293_v4 = vld [vmem:[%s1683_s5 + $0x8] sm:$0xff]   ;;  %v1312_v23 = vld [vmem:[%s1683_s5 + $0xf0] sm:$0xff]  }
  0x15   : > { %287 = vadd.xlane.f32.xlu0 %v1406_v1  ;;  %v1288_v61 = vld [vmem:[%s1683_s5 + $0xc0] sm:$0xff]   ;;  %v1294_v5 = vld [vmem:[%s1683_s5 + $0x88] sm:$0xff]   ;;  %v1313_v24 = vld [vmem:[%s1683_s5 + $0x30] sm:$0xff]  }
  0x16   : > { %v1289_v62 = vld [vmem:[%s1683_s5] sm:$0xff]   ;;  %v1307_v18 = vld [vmem:[%s1683_s5 + $0x68] sm:$0xff]   ;;  %v1314_v25 = vld [vmem:[%s1683_s5 + $0xb0] sm:$0xff]  }
  0x17   : > { %550 = vmatpush1.bf16.msra.mxu0 %v1267_v28  ;;  %593 = vmatpush1.bf16.msra.mxu1 %v1268_v29  ;;  %v1290_v63 = vld [vmem:[%s1683_s5 + $0x80] sm:$0xff]   ;;  %v1308_v19 = vld [vmem:[%s1683_s5 + $0xe8] sm:$0xff]   ;;  %v1315_v26 = vld [vmem:[%s1683_s5 + $0x78] sm:$0xff]  }
  0x18   : > { %551 = vmatprep.subr.bf16.mxu0 %v1269_v30  ;;  %594 = vmatprep.subr.bf16.mxu1 %v1271_v31  ;;  %v1305_v16 = vld [vmem:[%s1683_s5 + $0x20] sm:$0xff]   ;;  %v1309_v20 = vld [vmem:[%s1683_s5 + $0x28] sm:$0xff]   ;;  %v1316_v27 = vld [vmem:[%s1683_s5 + $0xf8] sm:$0xff]   ;;  %v361_v30 = vlaneseq }
  0x19   : > { %v1306_v17 = vld [vmem:[%s1683_s5 + $0xa0] sm:$0xff]   ;;  %v1310_v21 = vld [vmem:[%s1683_s5 + $0xa8] sm:$0xff]   ;;  %v1317_v28 = vld [vmem:[%s1683_s5 + $0x38] sm:$0xff]  }
  0x1a   : > { %v1318_v29 = vld [vmem:[%s1683_s5 + $0xb8] sm:$0xff]   ;;  %v362_v31 = vshrl.u32 %v361_v30, 7 }
  0x1b   : > { %552 = vmatpush1.bf16.msra.mxu0 %v1273_v32  ;;  %595 = vmatpush1.bf16.msra.mxu1 %v1274_v33 }
  0x1c   : > { %553 = vmatprep.subr.bf16.mxu0 %v1275_v34  ;;  %596 = vmatprep.subr.bf16.mxu1 %v1277_v35  ;;  %v363_v32 = vsub.s32 0, %v362_v31  ;;  %v371_v33 = vsub.s32 2, %v362_v31  ;;  %v359_v34 = vld [vmem:[%s1682_s4] sm:$0xf]  ;;  %v367_v35 = vsub.s32 1, %v362_v31  ;;  %v375_v36 = vsub.s32 3, %v362_v31 }
  0x1f   : > { %554 = vmatpush1.bf16.msra.mxu0 %v1279_v37  ;;  %597 = vmatpush1.bf16.msra.mxu1 %v1280_v38  ;;  %v364_v37 = vrot.slane %v359_v34, %v363_v32  ;;  %v372_v38 = vrot.slane %v359_v34, %v371_v33 }
  0x20   : > { %555 = vmatprep.subr.bf16.mxu0 %v1281_v39  ;;  %598 = vmatprep.subr.bf16.mxu1 %v1283_v40  ;;  %v368_v39 = vrot.slane %v359_v34, %v367_v35  ;;  %v376_v40 = vrot.slane %v359_v34, %v375_v36 }
  0x23   : > { %556 = vmatpush1.bf16.msra.mxu0 %v1285_v41  ;;  %599 = vmatpush1.bf16.msra.mxu1 %v1286_v42 }
  0x24   : > { %1186 = vmatprep.subr.bf16.mxu0 %v1287_v60  ;;  %1208 = vmatprep.subr.bf16.mxu1 %v1288_v61 }
  0x9e   : > { %v286_v8 = vpop.xlane.xlu0 %285 }
  0x9f   : > { %v290_v9 = vmul.f32 0.0078125, %v286_v8  ;;  %v1297_v8 = vld [vmem:[%s1683_s5 + $0x10] sm:$0xff]  }
  0xa1   : > { %v1429_v10 = vsub.f32 %v1404_v0, %v290_v9  ;;  %v1298_v9 = vld [vmem:[%s1683_s5 + $0x90] sm:$0xff]  }
  0xa2   : > { %v288_v11 = vpop.xlane.xlu0 %287 }
  0xa3   : > { %v291_v12 = vmul.f32 0.0078125, %v288_v11  ;;  %v294_v13 = vmul.f32 %v1429_v10, %v1429_v10  ;;  %v1300_v11 = vld [vmem:[%s1683_s5 + $0xd8] sm:$0xff]  }
  0xa5   : > { %v1434_v14 = vsub.f32 %v1406_v1, %v291_v12  ;;  %296 = vadd.xlane.f32.xlu1 %v294_v13  ;;  %v1301_v12 = vld [vmem:[%s1683_s5 + $0x18] sm:$0xff]  }
  0xa6   : > { %v1302_v13 = vld [vmem:[%s1683_s5 + $0x98] sm:$0xff]  }
  0xa7   : > { %v295_v15 = vmul.f32 %v1434_v14, %v1434_v14 }
  0xa9   : > { %298 = vadd.xlane.f32.xlu1 %v295_v15  ;;  %v1304_v15 = vld [vmem:[%s1683_s5 + $0xe0] sm:$0xff]  }
 0x132   : > { %v297_v43 = vpop.xlane.xlu1 %296 }
 0x133   : > { %v300_v44 = vmul.f32 0.0078125, %v297_v43 }
 0x135   : > { %v302_v45 = vadd.f32 1e-05, %v300_v44 }
 0x136   : > { %v299_v46 = vpop.xlane.xlu1 %298 }
 0x137   : > { %1319 = vrsqrt.f32 %v302_v45  ;;  %v301_v47 = vmul.f32 0.0078125, %v299_v46 }
 0x139   : > { %v303_v48 = vadd.f32 1e-05, %v301_v47 }
 0x13b   : > { %1321 = vrsqrt.f32 %v303_v48 }
 0x141   : > { %v1320_v49 = vpop.eup %1319 }
 0x142   : > { %v306_v50 = vmul.f32 %v1320_v49, %v1429_v10  ;;  %v1299_v10 = vld [vmem:[%s1683_s5 + $0x58] sm:$0xff]  }
 0x144   : > { %v315_v54 = vmul.f32 %v1117_v51, %v306_v50 }
 0x145   : > { %v1322_v52 = vpop.eup %1321 }
 0x146   : > { %v307_v53 = vmul.f32 %v1322_v52, %v1434_v14  ;;  %v324_v57 = vadd.f32 %v1118_v55, %v315_v54  ;;  %v1303_v14 = vld [vmem:[%s1683_s5 + $0x60] sm:$0xff]  }
 0x148   : > { %v316_v56 = vmul.f32 %v1117_v51, %v307_v53 }
 0x14a   : > { %v325_v58 = vadd.f32 %v1118_v55, %v316_v56 }
 0x14c   : > { %v326_v59 = vpack.c.bf16 %v325_v58, %v324_v57 }
 0x14e   : > { %574 = vmatmul.mubr.bf16.vlgmr.msra.gmra.mrb[0].mxu0 %v326_v59  ;;  %617 = vmatmul.mubr.bf16.vlgmr.msra.gmra.mrb[0].mxu1 %v326_v59 }
 0x14f   : > { %1187 = vmatpush3.bf16.msra.mxu0 %v1289_v62  ;;  %1209 = vmatpush3.bf16.msra.mxu1 %v1290_v63 }
 0x150   : > { %1188 = vmatprep.subr.bf16.mxu0 %v1291_v2  ;;  %1210 = vmatprep.subr.bf16.mxu1 %v1292_v3 }
 0x153   : > { %1189 = vmatpush3.bf16.msra.mxu0 %v1293_v4  ;;  %1211 = vmatpush3.bf16.msra.mxu1 %v1294_v5 }
 0x154   : > { %1190 = vmatprep.subr.bf16.mxu0 %v1295_v6  ;;  %1212 = vmatprep.subr.bf16.mxu1 %v1296_v7 }
 0x157   : > { %1191 = vmatpush3.bf16.msra.mxu0 %v1297_v8  ;;  %1213 = vmatpush3.bf16.msra.mxu1 %v1298_v9 }
 0x158   : > { %1192 = vmatprep.subr.bf16.mxu0 %v1299_v10  ;;  %1214 = vmatprep.subr.bf16.mxu1 %v1300_v11 }
 0x15b   : > { %1193 = vmatpush3.bf16.msra.mxu0 %v1301_v12  ;;  %1215 = vmatpush3.bf16.msra.mxu1 %v1302_v13 }
 0x15c   : > { %1194 = vmatprep.subr.bf16.mxu0 %v1303_v14  ;;  %1216 = vmatprep.subr.bf16.mxu1 %v1304_v15 }
 0x15f   : > { %1195 = vmatpush3.bf16.msra.mxu0 %v1305_v16  ;;  %1217 = vmatpush3.bf16.msra.mxu1 %v1306_v17 }
 0x160   : > { %1196 = vmatprep.subr.bf16.mxu0 %v1307_v18  ;;  %1218 = vmatprep.subr.bf16.mxu1 %v1308_v19 }
 0x163   : > { %1197 = vmatpush3.bf16.msra.mxu0 %v1309_v20  ;;  %1219 = vmatpush3.bf16.msra.mxu1 %v1310_v21 }
 0x164   : > { %1198 = vmatprep.subr.bf16.mxu0 %v1311_v22  ;;  %1220 = vmatprep.subr.bf16.mxu1 %v1312_v23 }
 0x167   : > { %1199 = vmatpush3.bf16.msra.mxu0 %v1313_v24  ;;  %1221 = vmatpush3.bf16.msra.mxu1 %v1314_v25 }
 0x168   : > { %1200 = vmatprep.subr.bf16.mxu0 %v1315_v26  ;;  %1222 = vmatprep.subr.bf16.mxu1 %v1316_v27 }
 0x16b   : > { %1201 = vmatpush3.bf16.msra.mxu0 %v1317_v28  ;;  %1223 = vmatpush3.bf16.msra.mxu1 %v1318_v29 }
 0x221   : > { %v575_v41 = vpop.f32.mrb[0].mxu0  ;;  %v618_v42 = vpop.f32.mrb[0].mxu1 }
 0x222   : > { %v1623_v43 = vadd.f32 %v575_v41, %v364_v37  ;;  %v1625_v44 = vadd.f32 %v618_v42, %v372_v38  ;;  %v577_v45 = vpop.f32.mrb[1].mxu0  ;;  %v620_v46 = vpop.f32.mrb[1].mxu1 }
 0x223   : > { %v1627_v47 = vadd.f32 %v577_v45, %v368_v39  ;;  %v1629_v48 = vadd.f32 %v620_v46, %v376_v40  ;;  %v579_v49 = vpop.f32.mrb[2].mxu0  ;;  %v622_v50 = vpop.f32.mrb[2].mxu1 }
 0x224   : > { %v635_v51 = vmul.f32 0.044715, %v1623_v43  ;;  %v637_v52 = vmul.f32 0.044715, %v1625_v44  ;;  %v580_v53 = vadd.f32 %v579_v49, %v364_v37  ;;  %v623_v54 = vadd.f32 %v622_v50, %v372_v38  ;;  %v581_v55 = vpop.f32.mrb[3].mxu0  ;;  %v624_v56 = vpop.f32.mrb[3].mxu1 }
 0x225   : > { %v636_v57 = vmul.f32 0.044715, %v1627_v47  ;;  %v638_v58 = vmul.f32 0.044715, %v1629_v48  ;;  %v1635_v59 = vadd.f32 %v581_v55, %v368_v39  ;;  %v1637_v60 = vadd.f32 %v624_v56, %v376_v40 }
 0x226   : > { %v643_v61 = vmul.f32 %v635_v51, %v1623_v43  ;;  %v645_v62 = vmul.f32 %v637_v52, %v1625_v44  ;;  %v639_v63 = vmul.f32 0.044715, %v580_v53  ;;  %v641_v2 = vmul.f32 0.044715, %v623_v54 }
 0x227   : > { %v644_v3 = vmul.f32 %v636_v57, %v1627_v47  ;;  %v646_v4 = vmul.f32 %v638_v58, %v1629_v48  ;;  %v640_v5 = vmul.f32 0.044715, %v1635_v59  ;;  %v642_v6 = vmul.f32 0.044715, %v1637_v60 }
 0x228   : > { %v651_v7 = vmul.f32 %v643_v61, %v1623_v43  ;;  %v653_v8 = vmul.f32 %v645_v62, %v1625_v44  ;;  %v647_v9 = vmul.f32 %v639_v63, %v580_v53  ;;  %v649_v10 = vmul.f32 %v641_v2, %v623_v54 }
 0x229   : > { %v652_v11 = vmul.f32 %v644_v3, %v1627_v47  ;;  %v654_v12 = vmul.f32 %v646_v4, %v1629_v48  ;;  %v648_v13 = vmul.f32 %v640_v5, %v1635_v59  ;;  %v650_v14 = vmul.f32 %v642_v6, %v1637_v60 }
 0x22a   : > { %v659_v15 = vadd.f32 %v651_v7, %v1623_v43  ;;  %v661_v16 = vadd.f32 %v653_v8, %v1625_v44  ;;  %v655_v17 = vmul.f32 %v647_v9, %v580_v53  ;;  %v657_v18 = vmul.f32 %v649_v10, %v623_v54 }
 0x22b   : > { %v656_v19 = vmul.f32 %v648_v13, %v1635_v59  ;;  %v658_v20 = vmul.f32 %v650_v14, %v1637_v60  ;;  %v660_v25 = vadd.f32 %v652_v11, %v1627_v47  ;;  %v662_v29 = vadd.f32 %v654_v12, %v1629_v48 }
 0x22c   : > { %v667_v21 = vmul.f32 0.7978846, %v659_v15  ;;  %v669_v22 = vmul.f32 0.7978846, %v661_v16  ;;  %v663_v23 = vadd.f32 %v655_v17, %v580_v53  ;;  %v665_v24 = vadd.f32 %v657_v18, %v623_v54 }
 0x22d   : > { %v664_v26 = vadd.f32 %v656_v19, %v1635_v59  ;;  %v668_v30 = vmul.f32 0.7978846, %v660_v25  ;;  %v666_v32 = vadd.f32 %v658_v20, %v1637_v60  ;;  %v670_v33 = vmul.f32 0.7978846, %v662_v29 }
 0x22e   : > { %1323 = vtanh.f32 %v667_v21  ;;  %v671_v27 = vmul.f32 0.7978846, %v663_v23  ;;  %v673_v28 = vmul.f32 0.7978846, %v665_v24  ;;  %v627_v41 = vmul.f32 0.5, %v1623_v43 }
 0x22f   : > { %1325 = vtanh.f32 %v669_v22  ;;  %v672_v31 = vmul.f32 0.7978846, %v664_v26  ;;  %v674_v34 = vmul.f32 0.7978846, %v666_v32  ;;  %v631_v42 = vmul.f32 0.5, %v580_v53 }
 0x230   : > { %1327 = vtanh.f32 %v671_v27  ;;  %v629_v49 = vmul.f32 0.5, %v1625_v44  ;;  %v633_v50 = vmul.f32 0.5, %v623_v54  ;;  %v628_v55 = vmul.f32 0.5, %v1627_v47 }
 0x231   : > { %1329 = vtanh.f32 %v673_v28  ;;  %v632_v62 = vmul.f32 0.5, %v1635_v59  ;;  %v630_v53 = vmul.f32 0.5, %v1629_v48  ;;  %v634_v4 = vmul.f32 0.5, %v1637_v60  ;;  %v1151_v48 = vld [vmem:[%s1684_s6] ss:$0 sm:$0xff] }
 0x232   : > { %1331 = vtanh.f32 %v668_v30 }
 0x233   : > { %1333 = vtanh.f32 %v672_v31 }
 0x234   : > { %1335 = vtanh.f32 %v670_v33 }
 0x235   : > { %1337 = vtanh.f32 %v674_v34 }
 0x238   : > { %v1324_v35 = vpop.eup %1323 }
 0x239   : > { %v1326_v36 = vpop.eup %1325  ;;  %v683_v37 = vadd.f32 1.0, %v1324_v35 }
 0x23a   : > { %v1328_v38 = vpop.eup %1327  ;;  %v685_v39 = vadd.f32 1.0, %v1326_v36 }
 0x23b   : > { %v1330_v40 = vpop.eup %1329  ;;  %v687_v45 = vadd.f32 1.0, %v1328_v38  ;;  %v691_v57 = vmul.f32 %v683_v37, %v627_v41 }
 0x23c   : > { %v1332_v46 = vpop.eup %1331  ;;  %v689_v51 = vadd.f32 1.0, %v1330_v40  ;;  %v693_v2 = vmul.f32 %v685_v39, %v629_v49 }
 0x23d   : > { %v1334_v52 = vpop.eup %1333  ;;  %v684_v56 = vadd.f32 1.0, %v1332_v46  ;;  %v695_v58 = vmul.f32 %v687_v45, %v631_v42 }
 0x23e   : > { %v1336_v61 = vpop.eup %1335  ;;  %v688_v63 = vadd.f32 1.0, %v1334_v52  ;;  %v697_v3 = vmul.f32 %v689_v51, %v633_v50 }
 0x23f   : > { %v1338_v43 = vpop.eup %1337  ;;  %v686_v44 = vadd.f32 1.0, %v1336_v61  ;;  %v699_v54 = vpack.c.bf16 %v695_v58, %v691_v57  ;;  %v692_v5 = vmul.f32 %v684_v56, %v628_v55 }
 0x240   : > { %v696_v6 = vmul.f32 %v688_v63, %v632_v62  ;;  %v690_v7 = vadd.f32 1.0, %v1338_v43  ;;  %v701_v47 = vpack.c.bf16 %v697_v3, %v693_v2 }
 0x241   : > { %v694_v9 = vmul.f32 %v686_v44, %v630_v53 }
 0x242   : > { %v700_v8 = vpack.c.bf16 %v696_v6, %v692_v5  ;;  %v698_v10 = vmul.f32 %v690_v7, %v634_v4 }
 0x244   : > { %998 = vmatprep.mubr.bf16.mxu0 %v700_v8  ;;  %v702_v11 = vpack.c.bf16 %v698_v10, %v694_v9 }
 0x245   : > { %999 = vmatmul.mubr.bf16.vlgmr.msra.gmra.mrb[4].mxu0 %v699_v54 }
 0x246   : > { %1039 = vmatprep.mubr.bf16.mxu1 %v702_v11 }
 0x247   : > { %1040 = vmatmul.mubr.bf16.vlgmr.msra.gmra.mrb[4].mxu1 %v701_v47 }
 0x318   : > { %v1202_v59 = vpop.f32.mrb[4].mxu0 }
 0x319   : > { %v1203_v60 = vpop.f32.mrb[5].mxu0 }
 0x31a   : > { %v1224_v12 = vpop.f32.mrb[4].mxu1  ;;  %v1204_v13 = vadd.f32 %v1203_v60, %v1202_v59  ;;  %v1205_v14 = vpop.f32.mrb[6].mxu0 }
 0x31b   : > { %v1225_v15 = vpop.f32.mrb[5].mxu1  ;;  %v1206_v16 = vpop.f32.mrb[7].mxu0 }
 0x31c   : > { %v1001_v17 = vadd.f32 %v1204_v13, %v1151_v48  ;;  %v1226_v18 = vadd.f32 %v1225_v15, %v1224_v12  ;;  %v1227_v19 = vpop.f32.mrb[6].mxu1  ;;  %v1207_v20 = vadd.f32 %v1206_v16, %v1205_v14 }
 0x31d   : > { %v1228_v21 = vpop.f32.mrb[7].mxu1 }
 0x31e   : > { %v1042_v22 = vadd.f32 %v1226_v18, %v1001_v17  ;;  %v1004_v23 = vadd.f32 %v1207_v20, %v1151_v48  ;;  %v1229_v24 = vadd.f32 %v1228_v21, %v1227_v19 }
 0x320   : > { %v1048_v25 = vadd.f32 %v1042_v22, %v1404_v0  ;;  %v1045_v26 = vadd.f32 %v1229_v24, %v1004_v23 }
 0x322   : > { %1050 = vst [vmem:[%s280_s29] sm:$0xff] %v1048_v25  ;;  %v1049_v27 = vadd.f32 %v1045_v26, %v1406_v1 }
 0x324   : > { %1051 = vst [vmem:[%s280_s29 + $0x8] sm:$0xff] %v1049_v27 }
 0x325 PF: > { %s17_s24 = sadd.s32 1, %s1345_s24  }
 0x326   : > { %p14_p4 = scmp.ge.s32.totalorder %s17_s24, 4  }
 0x328   :  { %16 = sbr.rel (!%p14_p4) target bundleno = 1 (0x1), region = 78 }

// kernel: gpt2_forward.5
= control target key start
LH: loop header
LB: loop body
LE: loop exit
PB: predicated region body
PF: predicated region fallthrough
CT: control target
= control target key end

     0   :  { %13 = vsyncpa [#allocation3], 0  ;;  %s2376_s0 = inlined_call_operand.vmem [shape: f32[2,16,128], index: 0, kind: input, shape index: {}]   ;;  %s2377_s1 = inlined_call_operand.vmem [shape: f32[1,128], index: 1, kind: input, shape index: {}]   ;;  %s2378_s2 = inlined_call_operand.hbm [shape: f32[1,128], index: 2, kind: input, shape index: {}]   ;;  %s2379_s3 = inlined_call_operand.vmem [shape: bf16[128,384], index: 3, kind: input, shape index: {}]   ;;  %s2380_s4 = inlined_call_operand.vmem [shape: f32[1,384], index: 4, kind: input, shape index: {}]   ;;  %s2381_s5 = inlined_call_operand.hbm [shape: bf16[128,128], index: 5, kind: input, shape index: {}]   ;;  %s2382_s6 = inlined_call_operand.hbm [shape: f32[1,128], index: 6, kind: input, shape index: {}]   ;;  %s2383_s7 = inlined_call_operand.vmem [shape: f32[2,1,16], index: 7, kind: input, shape index: {}]   ;;  %s2384_s8 = inlined_call_operand.vmem [shape: f32[2,16,128], index: 8, kind: output, shape index: {}]  }
   0x1   :  { %14 = vsyncpa [#allocation5], 0  ;;  %s2022_s27 = smov 0  }
   0x2 LB: > { %s1966_s28 = smov [#allocation4]   ;;  %s2028_s30 = sadd.s32 4294967295, %s1964_s27   ;;  %s1964_s27 = sphi %s2022_s27, %s20_s27  }
   0x3   : > { %s261_s29 = sshll.u32 %s1966_s28, 4  ;;  %p1527_p0 = scmp.ge.s32.totalorder %s1964_s27, 1  ;;  %s2037_s29 = int_to_ptr.vmem [resolvable:$true] %s261_s29 }
   0x4   : > { %p229_p1 = scmp.lt.s32.totalorder %s1964_s27, 3  ;;  %p1765_p2 = scmp.eq.s32.totalorder %s2028_s30, 0 }
   0x5   : > { %s1967_s10 = smov [#allocation2]   ;;  %s1968_s13 = smov [#allocation6]  }
   0x6   : > { %p2033_p3 = pnand %p1527_p0, %p229_p1  ;;  %s245_s11 = sshll.u32 %s1967_s10, 4  ;;  %s2047_s11 = int_to_ptr.vmem [resolvable:$true] %s245_s11 }
   0x7   : > { %s275_s14 = sshll.u32 %s1968_s13, 4  ;;  %s1866_s17 = scalar_lea.hbm %s2381_s5, 1024  ;;  %s2049_s14 = int_to_ptr.vmem [resolvable:$true] %s275_s14 }
   0x8   : > { %p1755_p4 = pneg %p2033_p3  ;;  %p1867_p6 = scmp.ne.s32.totalorder %s2381_s5, %s1866_s17 }
   0x9   : > { %p1873_p10 = scmp.lt.u32.totalorder %s1866_s17, %s2381_s5 }
   0xa   : > { %p2043_p5 = pnand %p1765_p2, %p1755_p4 }
   0xc   : > { %p2059_p7 = pneg %p2043_p5 }
   0xe   : > { %p1869_p8 = pnand %p2059_p7, %p1867_p6 }
  0x10   : > { %p1870_p9 = pneg %p1869_p8 }
  0x12   : > { %p1875_p11 = pnand %p1873_p10, %p1870_p9 }
  0x14   : > { %1878 = shalt.err (!%p1875_p11)
}
  0x15   : > { %s1879_s23 = scalar_lea.vmem %s2037_s29, 1024  ;;  %p1887_p1 = scmp.lt.s32.totalorder %s2037_s29, %s2037_s29 }
  0x16   : > { %p1880_p12 = scmp.ne.s32.totalorder %s2037_s29, %s1879_s23  ;;  %p1888_p4 = scmp.lt.s32.totalorder %s1879_s23, %s1879_s23 }
  0x18   : > { %p1882_p13 = pnand %p1880_p12, %p2059_p7  ;;  %p1889_p6 = por %p1888_p4, %p1887_p1 }
  0x1a   : > { %p1883_p0 = pneg %p1882_p13 }
  0x1c   : > { %p1890_p8 = pnand %p1889_p6, %p1883_p0 }
  0x1e   : > { %1893 = shalt.err (!%p1890_p8)
}
  0x1f   : > { %s1969_s24 = smov 64   ;;  %s1970_s25 = smov 4  }
  0x20   : > { %1761 = dma.hbm_to_vmem [thread:$0]  (!%p2043_p5), %s2381_s5, 1024, %s2037_s29, [#allocation5], %s1969_s24, %s1969_s24, %s1970_s25  }
  0x21   : > { %s1894_s15 = scalar_lea.hbm %s2378_s2, 16 }
  0x22   : > { %p1895_p9 = scmp.ne.s32.totalorder %s2378_s2, %s1894_s15  ;;  %p1901_p12 = scmp.lt.u32.totalorder %s1894_s15, %s2378_s2 }
  0x24   : > { %p1897_p10 = pnand %p1895_p9, %p2059_p7 }
  0x26   : > { %p1898_p11 = pneg %p1897_p10 }
  0x28   : > { %p1903_p13 = pnand %p1901_p12, %p1898_p11 }
  0x2a   : > { %1906 = shalt.err (!%p1903_p13)
}
  0x2b   : > { %s1907_s29 = scalar_lea.vmem %s2047_s11, 16  ;;  %s1914_s21 = scalar_lea.vmem %s2047_s11, 32 }
  0x2c   : > { %p1908_p0 = scmp.ne.s32.totalorder %s2047_s11, %s1907_s29  ;;  %p1915_p6 = scmp.lt.s32.totalorder %s2047_s11, %s2047_s11 }
  0x2d   : > { %p1916_p8 = scmp.lt.s32.totalorder %s1914_s21, %s1907_s29 }
  0x2e   : > { %p1910_p1 = pnand %p1908_p0, %p2059_p7 }
  0x2f   : > { %p1917_p9 = por %p1916_p8, %p1915_p6 }
  0x30   : > { %p1911_p4 = pneg %p1910_p1 }
  0x32   : > { %p1918_p10 = pnand %p1917_p9, %p1911_p4 }
  0x34   : > { %1921 = shalt.err (!%p1918_p10)
}
  0x35   : > { %1758 = dma.hbm_to_vmem [thread:$0]  (!%p2043_p5), %s2378_s2, 16, %s2047_s11, [#allocation3]  }
  0x36   : > { %s1922_s26 = scalar_lea.hbm %s2382_s6, 16 }
  0x37   : > { %p1923_p11 = scmp.ne.s32.totalorder %s2382_s6, %s1922_s26  ;;  %p1929_p0 = scmp.lt.u32.totalorder %s1922_s26, %s2382_s6 }
  0x39   : > { %p1925_p12 = pnand %p1923_p11, %p2059_p7 }
  0x3b   : > { %p1926_p13 = pneg %p1925_p12 }
  0x3d   : > { %p1931_p1 = pnand %p1929_p0, %p1926_p13 }
  0x3f   : > { %1934 = shalt.err (!%p1931_p1)
}
  0x40   : > { %s1935_s11 = scalar_lea.vmem %s2049_s14, 16  ;;  %s1942_s16 = scalar_lea.vmem %s2049_s14, 32 }
  0x41   : > { %p1936_p4 = scmp.ne.s32.totalorder %s2049_s14, %s1935_s11  ;;  %p1943_p9 = scmp.lt.s32.totalorder %s2049_s14, %s2049_s14 }
  0x42   : > { %p1944_p10 = scmp.lt.s32.totalorder %s1942_s16, %s1935_s11 }
  0x43   : > { %p1938_p6 = pnand %p1936_p4, %p2059_p7 }
  0x44   : > { %p1945_p11 = por %p1944_p10, %p1943_p9 }
  0x45   : > { %p1939_p8 = pneg %p1938_p6 }
  0x47   : > { %p1946_p12 = pnand %p1945_p11, %p1939_p8 }
  0x49   : > { %1949 = shalt.err (!%p1946_p12)
}
  0x4a   : > { %1764 = dma.hbm_to_vmem [thread:$0]  (!%p2043_p5), %s2382_s6, 16, %s2049_s14, [#allocation5]  }
  0x4b   : > { %302 = sbr.rel (%p2033_p3) target bundleno = 2692 (0xa84), region = 52 }
  0x52   : > { %1955 = dma.done.wait (%p1765_p2), [#allocation3], 16  }
  0x53   : > { %1957 = vsyncadd (%p1765_p2), [#allocation3], 4294967280 }
  0x54   : > { %1959 = dma.done.wait (%p1765_p2), [#allocation5], 1040  }
  0x55   : > { %1961 = vsyncadd (%p1765_p2), [#allocation5], 4294966256  ;;  %p347_p7 = scmp.lt.s32.totalorder %s2028_s30, 1  ;;  %v1790_v2 = vld [vmem:[%s2379_s3 + $0x4] ss:$12 sps:$4 sm:$0xff]   ;;  %v1971_v4 = vmov 0.0   ;;  %v439_v53 = vlaneseq }
  0x56   : > { %v1792_v3 = vld [vmem:[%s2379_s3] ss:$12 sps:$4 sm:$0xff]   ;;  %1629 = vmatprep.subr.bf16.mxu1 %v1971_v4  ;;  %v1793_v5 = vld [vmem:[%s2379_s3 + $0x8] ss:$12 sps:$4 sm:$0xff]   ;;  %582 = vmatprep.subr.bf16.mxu0 %v1790_v2  ;;  %v1796_v15 = vld [vmem:[%s2379_s3 + $0x18] ss:$12 sps:$4 sm:$0xff]  }
  0x57   : > { %s2389_s30 = smov (!%p347_p7, %s2028_s30), 1  ;;  %v1794_v6 = vld [vmem:[%s2379_s3 + $0x1c] ss:$12 sps:$4 sm:$0xff]   ;;  %583 = vmatpush1.bf16.msra.mxu0 %v1792_v3  ;;  %1630 = vmatpush3.bf16.msra.mxu1 %v1793_v5  ;;  %v1797_v16 = vld [vmem:[%s2379_s3 + $0x20] ss:$12 sps:$4 sm:$0xff]   ;;  %v1972_v30 = vmov 0  }
  0x58   : > { %s1590_s9 = sshll.u32 %s2389_s30, 4  ;;  %584 = vmatprep.subr.bf16.mxu0 %v1794_v6  ;;  %1631 = vmatprep.subr.bf16.mxu1 %v1971_v4  ;;  %v1798_v17 = vld [vmem:[%s2379_s3 + $0x34] ss:$12 sps:$4 sm:$0xff]   ;;  %v1800_v18 = vld [vmem:[%s2379_s3 + $0x30] ss:$12 sps:$4 sm:$0xff]   ;;  %vm1973_vm0 = vmmov 0   ;;  %s354_s12 = scalar_lea.vmem %s2383_s7, %s2389_s30 }
  0x59   : > { %s351_s20 = scalar_lea.vmem %s2376_s0, %s1590_s9  ;;  %v1801_v19 = vld [vmem:[%s2379_s3 + $0x38] ss:$12 sps:$4 sm:$0xff]   ;;  %v1804_v21 = vld [vmem:[%s2379_s3 + $0x48] ss:$12 sps:$4 sm:$0xff]   ;;  %v1805_v22 = vld [vmem:[%s2379_s3 + $0x50] ss:$12 sps:$4 sm:$0xff]   ;;  %614 = vmatprep.mubr.bf16.mxu0 %v1972_v30  ;;  %1645 = vmatprep.mubr.msk.bf16.mxu1 %vm1973_vm0, %v1971_v4  ;;  %s359_s22 = scalar_lea.vmem %s2384_s8, %s1590_s9 }
  0x5a   : > { %v2148_v0 = vld [vmem:[%s351_s20] sm:$0xff]  ;;  %v2150_v1 = vld [vmem:[%s351_s20 + $0x8] sm:$0xff]  ;;  %v1816_v31 = vld [vmem:[%s2379_s3 + $0x90] ss:$12 sps:$4 sm:$0xff]   ;;  %v440_v54 = vshrl.u32 %v439_v53, 7  ;;  %vm694_vm1 = vcmask 261120  }
  0x5b   : > { %363 = vadd.xlane.f32.xlu0 %v2148_v0  ;;  %585 = vmatpush1.bf16.msra.mxu0 %v1796_v15  ;;  %v1802_v20 = vld [vmem:[%s2379_s3 + $0x4c] ss:$12 sps:$4 sm:$0xff]   ;;  %v1806_v23 = vld [vmem:[%s2379_s3 + $0x64] ss:$12 sps:$4 sm:$0xff]   ;;  %v1809_v25 = vld [vmem:[%s2379_s3 + $0x68] ss:$12 sps:$4 sm:$0xff]  }
  0x5c   : > { %1632 = vmatpush3.bf16.msra.mxu1 %v1797_v16  ;;  %586 = vmatprep.subr.bf16.mxu0 %v1798_v17  ;;  %v1808_v24 = vld [vmem:[%s2379_s3 + $0x60] ss:$12 sps:$4 sm:$0xff]   ;;  %v1810_v26 = vld [vmem:[%s2379_s3 + $0x7c] ss:$12 sps:$4 sm:$0xff]   ;;  %v1812_v27 = vld [vmem:[%s2379_s3 + $0x78] ss:$12 sps:$4 sm:$0xff]  }
  0x5d   : > { %1633 = vmatprep.subr.bf16.mxu1 %v1971_v4  ;;  %v1813_v28 = vld [vmem:[%s2379_s3 + $0x80] ss:$12 sps:$4 sm:$0xff]   ;;  %v1817_v32 = vld [vmem:[%s2379_s3 + $0x98] ss:$12 sps:$4 sm:$0xff]   ;;  %v1820_v34 = vld [vmem:[%s2379_s3 + $0xa8] ss:$12 sps:$4 sm:$0xff]  }
  0x5e   : > { %v1814_v29 = vld [vmem:[%s2379_s3 + $0x94] ss:$12 sps:$4 sm:$0xff]   ;;  %v1818_v33 = vld [vmem:[%s2379_s3 + $0xac] ss:$12 sps:$4 sm:$0xff]   ;;  %v1821_v35 = vld [vmem:[%s2379_s3 + $0xb0] ss:$12 sps:$4 sm:$0xff]  }
  0x5f   : > { %365 = vadd.xlane.f32.xlu0 %v2150_v1  ;;  %587 = vmatpush1.bf16.msra.mxu0 %v1800_v18  ;;  %v1540_v44 = vld [vmem:[%s2377_s1] ss:$0 sm:$0xff]  ;;  %v441_v55 = vsub.s32 0, %v440_v54  ;;  %v449_v56 = vsub.s32 2, %v440_v54  ;;  %v445_v58 = vsub.s32 1, %v440_v54  ;;  %vm742_vm4 = vcmask 130048  }
  0x60   : > { %1634 = vmatpush3.bf16.msra.mxu1 %v1801_v19  ;;  %588 = vmatprep.subr.bf16.mxu0 %v1802_v20  ;;  %v1541_v48 = vld [vmem:[#allocation2] ss:$0 sm:$0xff]  ;;  %v673_v19 = vand.u32 127, %v439_v53  ;;  %v671_v20 = vadd.s32 8, %v440_v54  ;;  %s1974_s14 = smov 96   ;;  %s1975_s20 = smov 64  }
  0x61   : > { %1635 = vmatprep.subr.bf16.mxu1 %v1971_v4  ;;  %v437_v57 = vld [vmem:[%s2380_s4] sm:$0x7]  ;;  %s1976_s19 = smov 32  }
  0x62   : > { %v442_v59 = vrot.slane %v437_v57, %v441_v55  ;;  %v450_v60 = vrot.slane %v437_v57, %v449_v56  ;;  %v446_v63 = vrot.slane %v437_v57, %v445_v58  ;;  %vm674_vm2 = vcmp.le.s32.totalorder %v673_v19, %v440_v54  ;;  %v1823_v56 = vld [vmem:[#allocation4 + $0x8] sm:$0xff]  }
  0x63   : > { %589 = vmatpush1.bf16.msra.mxu0 %v1804_v21  ;;  %v1566_v21 = vld [vmem:[%s354_s12] ss:$0 sm:$0xff]  ;;  %vm675_vm3 = vcmp.le.s32.totalorder %v673_v19, %v671_v20 }
  0x64   : > { %1636 = vmatpush3.bf16.msra.mxu1 %v1805_v22  ;;  %590 = vmatprep.subr.bf16.mxu0 %v1806_v23  ;;  %v2279_v22 = vsel %vm674_vm2, %v1566_v21, -1e+09 }
  0x65   : > { %1637 = vmatprep.subr.bf16.mxu1 %v1971_v4 }
  0x67   : > { %591 = vmatpush1.bf16.msra.mxu0 %v1808_v24  ;;  %v2281_v24 = vsel %vm675_vm3, %v1566_v21, -1e+09 }
  0x68   : > { %1638 = vmatpush3.bf16.msra.mxu1 %v1809_v25  ;;  %592 = vmatprep.subr.bf16.mxu0 %v1810_v26 }
  0x69   : > { %1639 = vmatprep.subr.bf16.mxu1 %v1971_v4 }
  0x6b   : > { %593 = vmatpush1.bf16.msra.mxu0 %v1812_v27 }
  0x6c   : > { %1640 = vmatpush3.bf16.msra.mxu1 %v1813_v28  ;;  %594 = vmatprep.subr.bf16.mxu0 %v1814_v29 }
  0x6d   : > { %1641 = vmatprep.subr.bf16.mxu1 %v1971_v4 }
  0x6f   : > { %595 = vmatpush1.bf16.msra.mxu0 %v1816_v31 }
  0x70   : > { %1642 = vmatpush3.bf16.msra.mxu1 %v1817_v32  ;;  %596 = vmatprep.subr.bf16.mxu0 %v1818_v33 }
  0x71   : > { %1643 = vmatprep.subr.bf16.mxu1 %v1971_v4 }
  0x73   : > { %597 = vmatpush1.bf16.msra.mxu0 %v1820_v34 }
  0x74   : > { %1644 = vmatpush3.bf16.msra.mxu1 %v1821_v35  ;;  %1661 = vmatprep.subr.bf16.mxu0 %v1971_v4 }
  0x75   : > { %1649 = vmatprep.subr.bf16.mxu1 %v1971_v4 }
  0xe8   : > { %v364_v7 = vpop.xlane.xlu0 %363 }
  0xe9   : > { %v368_v8 = vmul.f32 0.0078125, %v364_v7 }
  0xeb   : > { %v2169_v9 = vsub.f32 %v2148_v0, %v368_v8 }
  0xec   : > { %v366_v10 = vpop.xlane.xlu0 %365 }
  0xed   : > { %v369_v11 = vmul.f32 0.0078125, %v366_v10  ;;  %v372_v12 = vmul.f32 %v2169_v9, %v2169_v9 }
  0xef   : > { %v2174_v13 = vsub.f32 %v2150_v1, %v369_v11  ;;  %374 = vadd.xlane.f32.xlu1 %v372_v12 }
  0xf1   : > { %v373_v14 = vmul.f32 %v2174_v13, %v2174_v13 }
  0xf3   : > { %376 = vadd.xlane.f32.xlu1 %v373_v14 }
 0x17c   : > { %v375_v36 = vpop.xlane.xlu1 %374 }
 0x17d   : > { %v378_v37 = vmul.f32 0.0078125, %v375_v36 }
 0x17f   : > { %v380_v38 = vadd.f32 1e-05, %v378_v37 }
 0x180   : > { %v377_v39 = vpop.xlane.xlu1 %376 }
 0x181   : > { %1830 = vrsqrt.f32 %v380_v38  ;;  %v379_v40 = vmul.f32 0.0078125, %v377_v39 }
 0x183   : > { %v381_v41 = vadd.f32 1e-05, %v379_v40 }
 0x185   : > { %1832 = vrsqrt.f32 %v381_v41 }
 0x18b   : > { %v1831_v42 = vpop.eup %1830 }
 0x18c   : > { %v384_v43 = vmul.f32 %v1831_v42, %v2169_v9  ;;  %v1822_v42 = vld [vmem:[#allocation4] sm:$0xff]  }
 0x18e   : > { %v393_v47 = vmul.f32 %v1540_v44, %v384_v43 }
 0x18f   : > { %v1833_v45 = vpop.eup %1832 }
 0x190   : > { %v385_v46 = vmul.f32 %v1833_v45, %v2174_v13  ;;  %v402_v50 = vadd.f32 %v1541_v48, %v393_v47 }
 0x192   : > { %v394_v49 = vmul.f32 %v1540_v44, %v385_v46 }
 0x194   : > { %v403_v51 = vadd.f32 %v1541_v48, %v394_v49 }
 0x196   : > { %v404_v52 = vpack.c.bf16 %v403_v51, %v402_v50 }
 0x198   : > { %615 = vmatmul.mubr.bf16.vlgmr.msra.gmra.mrb[0].mxu0 %v404_v52  ;;  %1646 = vmatmul.mubr.bf16.vlgmr.msra.gmra.mrb[0].mxu1 %v404_v52 }
 0x199   : > { %1651 = vmatprep.mubr.msk.bf16.mxu1 %vm1973_vm0, %v1971_v4  ;;  %1665 = vmatprep.mubr.msk.bf16.mxu0 %vm1973_vm0, %v1971_v4 }
 0x19a   : > { %1662 = vmatpush3.bf16.msra.mxu0 %v1822_v42 }
 0x19b   : > { %1663 = vmatprep.subr.bf16.mxu0 %v1971_v4 }
 0x19e   : > { %1664 = vmatpush3.bf16.msra.mxu0 %v1823_v56 }
 0x19f   : > { %1675 = vmatprep.subr.bf16.mxu0 %v1971_v4 }
 0x26b   : > { %v616_v61 = vpop.f32.mrb[0].mxu0  ;;  %v659_v62 = vpop.f32.mrb[0].mxu1 }
 0x26c   : > { %v618_v2 = vpop.f32.mrb[1].mxu0  ;;  %v1647_v3 = vpop.f32.mrb[1].mxu1  ;;  %v617_v7 = vadd.f32 %v616_v61, %v442_v59  ;;  %v660_v8 = vadd.f32 %v659_v62, %v450_v60 }
 0x26d   : > { %v620_v5 = vpop.f32.mrb[2].mxu0  ;;  %v662_v6 = vpop.f32.mrb[2].mxu1  ;;  %v619_v13 = vadd.f32 %v618_v2, %v446_v63 }
 0x26e   : > { %v621_v9 = vadd.f32 %v620_v5, %v442_v59  ;;  %v663_v10 = vadd.f32 %v662_v6, %v450_v60  ;;  %v622_v11 = vpop.f32.mrb[3].mxu0  ;;  %v1648_v12 = vpop.f32.mrb[3].mxu1 }
 0x26f   : > { %v623_v14 = vadd.f32 %v622_v11, %v446_v63 }
 0x270   : > { %v2260_v15 = vpack.c.bf16 %v621_v9, %v617_v7  ;;  %v2262_v16 = vpack.c.bf16 %v663_v10, %v660_v8 }
 0x271   : > { %v2264_v17 = vpack.c.bf16 %v623_v14, %v619_v13 }
 0x273   : > { %v699_v18 = vsel %vm694_vm1, %v2264_v17, 0 }
 0x274   : > { %1650 = vmatpush3.bf16.xpose.msra.mxu1 %v699_v18 }
 0x275   : > { %1655 = vmatprep.subr.bf16.mxu1 %v1971_v4 }
 0x27b   : > { %1652 = vmatmul.mubr.msk.bf16.vlgmr.msra.gmra.mrb[4].mxu1 %vm694_vm1, %v2260_v15 }
 0x27c   : > { %1656 = vmatpush3.bf16.msra.mxu1 %v2262_v16  ;;  %1657 = vmatprep.mubr.msk.bf16.mxu1 %vm1973_vm0, %v1971_v4 }
 0x27d   : > { %1669 = vmatprep.subr.bf16.mxu1 %v1971_v4 }
 0x34e   : > { %v735_v23 = vpop.f32.mrb[4].mxu1 }
 0x34f   : > { %v736_v25 = vadd.f32 %v735_v23, %v2279_v22  ;;  %v1653_v26 = vpop.f32.mrb[5].mxu1 }
 0x350   : > { %v738_v27 = vpop.f32.mrb[6].mxu1 }
 0x351   : > { %v739_v28 = vadd.f32 %v738_v27, %v2281_v24  ;;  %v1654_v29 = vpop.f32.mrb[7].mxu1  ;;  %v743_v30 = vsel %vm742_vm4, %v736_v25, -inf }
 0x352   : > { %744 = vmax.xlane.f32.xlu0 %v743_v30 }
 0x353   : > { %v746_v31 = vsel %vm742_vm4, %v739_v28, -inf }
 0x354   : > { %747 = vmax.xlane.f32.xlu1 %v746_v31 }
 0x3df   : > { %v745_v32 = vpop.xlane.xlu0 %744 }
 0x3e0   : > { %v749_v33 = vsub.f32 %v736_v25, %v745_v32 }
 0x3e1   : > { %v748_v34 = vpop.xlane.xlu1 %747 }
 0x3e2   : > { %v751_v35 = vmul.f32 1.442695, %v749_v33  ;;  %v750_v36 = vsub.f32 %v739_v28, %v748_v34 }
 0x3e4   : > { %1834 = vpow2.f32 %v751_v35  ;;  %v753_v37 = vmul.f32 1.442695, %v750_v36 }
 0x3e6   : > { %1836 = vpow2.f32 %v753_v37 }
 0x3ee   : > { %v1835_v38 = vpop.eup %1834 }
 0x3ef   : > { %v755_v39 = vsel %vm742_vm4, %v1835_v38, 0.0 }
 0x3f0   : > { %v1837_v40 = vpop.eup %1836  ;;  %756 = vadd.xlane.f32.xlu0 %v755_v39 }
 0x3f1   : > { %v758_v41 = vsel %vm742_vm4, %v1837_v40, 0.0 }
 0x3f2   : > { %759 = vadd.xlane.f32.xlu1 %v758_v41 }
 0x403   : > { %874 = vrot.lane.b32.xlu1 %v2260_v15, %s1974_s14 }
 0x406   : > { %877 = vrot.lane.b32.xlu0 %v2264_v17, %s1974_s14 }
 0x407   : > { %1062 = vrot.lane.b32.xlu1 %v2264_v17, %s1975_s20 }
 0x40b   : > { %1060 = vrot.lane.b32.xlu1 %v2260_v15, %s1975_s20 }
 0x47d   : > { %v757_v43 = vpop.xlane.xlu0 %756 }
 0x47e   : > { %1838 = vrcp.f32 %v757_v43 }
 0x47f   : > { %v760_v44 = vpop.xlane.xlu1 %759 }
 0x480   : > { %1840 = vrcp.f32 %v760_v44 }
 0x481   : > { %v878_v49 = vpop.permute.xlu0 %877 }
 0x482   : > { %v883_v52 = vsel %vm694_vm1, %v878_v49, 0 }
 0x483   : > { %v875_v51 = vpop.permute.xlu1 %874 }
 0x487   : > { %v1063_v53 = vpop.permute.xlu1 %1062 }
 0x488   : > { %v1839_v45 = vpop.eup %1838  ;;  %v1068_v54 = vsel %vm694_vm1, %v1063_v53, 0 }
 0x489   : > { %v762_v47 = vmul.f32 %v1839_v45, %v1835_v38 }
 0x48a   : > { %v1841_v46 = vpop.eup %1840 }
 0x48b   : > { %v764_v48 = vmul.f32 %v1841_v46, %v1837_v40  ;;  %v1061_v55 = vpop.permute.xlu1 %1060 }
 0x48d   : > { %v765_v50 = vpack.c.bf16 %v764_v48, %v762_v47 }
 0x48f   : > { %1658 = vmatmul.mubr.msk.bf16.vlgmr.msra.gmra.mrb[8].mxu1 %vm742_vm4, %v765_v50 }
 0x490   : > { %1670 = vmatpush3.bf16.xpose.msra.mxu1 %v883_v52  ;;  %1671 = vmatprep.mubr.msk.bf16.mxu1 %vm1973_vm0, %v1971_v4 }
 0x491   : > { %1689 = vmatprep.subr.bf16.mxu1 %v1971_v4 }
 0x497   : > { %1672 = vmatmul.mubr.msk.bf16.vlgmr.msra.gmra.mrb[12].mxu1 %vm694_vm1, %v875_v51 }
 0x498   : > { %1690 = vmatpush3.bf16.xpose.msra.mxu1 %v1068_v54  ;;  %1691 = vmatprep.mubr.msk.bf16.mxu1 %vm1973_vm0, %v1971_v4 }
 0x499   : > { %1695 = vmatprep.subr.bf16.mxu1 %v1971_v4 }
 0x49f   : > { %1692 = vmatmul.mubr.msk.bf16.vlgmr.msra.gmra.mrb[16].mxu1 %vm694_vm1, %v1061_v55 }
 0x4a0   : > { %1697 = vmatprep.mubr.msk.bf16.mxu1 %vm1973_vm0, %v1971_v4 }
 0x562   : > { %v803_v57 = vpop.f32.mrb[8].mxu1 }
 0x563   : > { %v1659_v58 = vpop.f32.mrb[9].mxu1 }
 0x564   : > { %v806_v59 = vpop.f32.mrb[10].mxu1 }
 0x565   : > { %v810_v60 = vpack.c.bf16 %v806_v59, %v803_v57  ;;  %v1660_v61 = vpop.f32.mrb[11].mxu1 }
 0x567   : > { %1666 = vmatmul.mubr.msk.bf16.vlgmr.msra.gmra.mrb[4].mxu0 %vm694_vm1, %v810_v60 }
 0x568   : > { %1677 = vmatprep.mubr.msk.bf16.mxu0 %vm1973_vm0, %v1971_v4 }
 0x56a   : > { %v919_v62 = vpop.f32.mrb[12].mxu1 }
 0x56b   : > { %v1673_v63 = vpop.f32.mrb[13].mxu1  ;;  %v920_v13 = vadd.f32 %v919_v62, %v2279_v22 }
 0x56c   : > { %v922_v2 = vpop.f32.mrb[14].mxu1 }
 0x56d   : > { %v1674_v3 = vpop.f32.mrb[15].mxu1  ;;  %v926_v14 = vsel %vm742_vm4, %v920_v13, -inf  ;;  %v923_v34 = vadd.f32 %v922_v2, %v2281_v24 }
 0x56f   : > { %v929_v35 = vsel %vm742_vm4, %v923_v34, -inf }
 0x572   : > { %v1104_v5 = vpop.f32.mrb[16].mxu1 }
 0x573   : > { %v1105_v6 = vadd.f32 %v1104_v5, %v2279_v22  ;;  %v1693_v7 = vpop.f32.mrb[17].mxu1 }
 0x574   : > { %v1107_v8 = vpop.f32.mrb[18].mxu1 }
 0x575   : > { %v1108_v9 = vadd.f32 %v1107_v8, %v2281_v24  ;;  %v1694_v10 = vpop.f32.mrb[19].mxu1  ;;  %v1111_v11 = vsel %vm742_vm4, %v1105_v6, -inf }
 0x576   : > { %1112 = vmax.xlane.f32.xlu0 %v1111_v11  ;;  %v1824_v10 = vld [vmem:[#allocation4 + $0x10] sm:$0xff]   ;;  %v1825_v11 = vld [vmem:[#allocation4 + $0x18] sm:$0xff]  }
 0x577   : > { %v1114_v12 = vsel %vm742_vm4, %v1108_v9, -inf }
 0x578   : > { %1115 = vmax.xlane.f32.xlu1 %v1114_v12 }
 0x589   : > { %1246 = vrot.lane.b32.xlu1 %v2264_v17, %s1976_s19 }
 0x58d   : > { %1244 = vrot.lane.b32.xlu1 %v2260_v15, %s1976_s19 }
 0x5b1   : > { %927 = vmax.xlane.f32.xlu1 %v926_v14 }
 0x5c2   : > { %950 = vrot.lane.b32.xlu1 %v2262_v16, %s1974_s14 }
 0x5c6   : > { %1318 = vrot.lane.b32.xlu1 %v2262_v16, %s1976_s19 }
 0x603   : > { %v1113_v18 = vpop.xlane.xlu0 %1112 }
 0x604   : > { %v1117_v19 = vsub.f32 %v1105_v6, %v1113_v18 }
 0x605   : > { %v1116_v20 = vpop.xlane.xlu1 %1115 }
 0x606   : > { %v1119_v21 = vmul.f32 1.442695, %v1117_v19  ;;  %v1118_v23 = vsub.f32 %v1108_v9, %v1116_v20 }
 0x608   : > { %1842 = vpow2.f32 %v1119_v21  ;;  %v1121_v25 = vmul.f32 1.442695, %v1118_v23 }
 0x609   : > { %v1247_v28 = vpop.permute.xlu1 %1246 }
 0x60a   : > { %1844 = vpow2.f32 %v1121_v25  ;;  %v1252_v45 = vsel %vm694_vm1, %v1247_v28, 0 }
 0x60d   : > { %v1245_v29 = vpop.permute.xlu1 %1244 }
 0x612   : > { %v1843_v17 = vpop.eup %1842 }
 0x613   : > { %v1123_v15 = vsel %vm742_vm4, %v1843_v17, 0.0 }
 0x614   : > { %v1845_v26 = vpop.eup %1844  ;;  %1124 = vadd.xlane.f32.xlu0 %v1123_v15 }
 0x615   : > { %v1126_v27 = vsel %vm742_vm4, %v1845_v26, 0.0 }
 0x618   : > { %1127 = vadd.xlane.f32.xlu0 %v1126_v27 }
 0x62e   : > { %1134 = vrot.lane.b32.xlu0 %v2262_v16, %s1975_s20 }
 0x63e   : > { %v928_v30 = vpop.xlane.xlu1 %927 }
 0x63f   : > { %v932_v31 = vsub.f32 %v920_v13, %v928_v30 }
 0x641   : > { %v934_v32 = vmul.f32 1.442695, %v932_v31 }
 0x642   : > { %v951_v33 = vpop.permute.xlu1 %950 }
 0x643   : > { %1846 = vpow2.f32 %v934_v32  ;;  %1676 = vmatpush3.bf16.msra.mxu0 %v951_v33 }
 0x644   : > { %1681 = vmatprep.subr.bf16.mxu0 %v1971_v4 }
 0x646   : > { %v1319_v30 = vpop.permute.xlu1 %1318 }
 0x64d   : > { %v1847_v36 = vpop.eup %1846  ;;  %930 = vmax.xlane.f32.xlu0 %v929_v35 }
 0x64e   : > { %v938_v37 = vsel %vm742_vm4, %v1847_v36, 0.0 }
 0x651   : > { %939 = vadd.xlane.f32.xlu0 %v938_v37  ;;  %v1828_v37 = vld [vmem:[#allocation4 + $0x30] sm:$0xff]  }
 0x6a1   : > { %v1125_v16 = vpop.xlane.xlu0 %1124 }
 0x6a2   : > { %1848 = vrcp.f32 %v1125_v16 }
 0x6a5   : > { %v1128_v38 = vpop.xlane.xlu0 %1127 }
 0x6a6   : > { %1850 = vrcp.f32 %v1128_v38  ;;  %v1829_v38 = vld [vmem:[#allocation4 + $0x38] sm:$0xff]  }
 0x6a9   : > { %v1135_v39 = vpop.permute.xlu0 %1134 }
 0x6aa   : > { %1696 = vmatpush3.bf16.msra.mxu1 %v1135_v39 }
 0x6ab   : > { %1709 = vmatprep.subr.bf16.mxu1 %v1971_v4 }
 0x6ac   : > { %v1849_v40 = vpop.eup %1848 }
 0x6ad   : > { %v1130_v42 = vmul.f32 %v1849_v40, %v1843_v17 }
 0x6b0   : > { %v1851_v41 = vpop.eup %1850 }
 0x6b1   : > { %v1132_v43 = vmul.f32 %v1851_v41, %v1845_v26  ;;  %v1826_v26 = vld [vmem:[#allocation4 + $0x20] sm:$0xff]  }
 0x6b3   : > { %v1133_v44 = vpack.c.bf16 %v1132_v43, %v1130_v42 }
 0x6b5   : > { %1698 = vmatmul.mubr.msk.bf16.vlgmr.msra.gmra.mrb[20].mxu1 %vm742_vm4, %v1133_v44  ;;  %v1567_v44 = vld [vmem:[#allocation6] ss:$0 sm:$0xff] }
 0x6b6   : > { %1710 = vmatpush3.bf16.xpose.msra.mxu1 %v1252_v45  ;;  %1711 = vmatprep.mubr.msk.bf16.mxu1 %vm1973_vm0, %v1971_v4  ;;  %v692_v45 = vadd.f32 %v1567_v44, %v2148_v0 }
 0x6bd   : > { %1712 = vmatmul.mubr.msk.bf16.vlgmr.msra.gmra.mrb[24].mxu1 %vm694_vm1, %v1245_v29  ;;  %v1827_v29 = vld [vmem:[#allocation4 + $0x28] sm:$0xff]  }
 0x6da   : > { %v931_v46 = vpop.xlane.xlu0 %930 }
 0x6db   : > { %v933_v47 = vsub.f32 %v923_v34, %v931_v46  ;;  %v693_v46 = vadd.f32 %v1567_v44, %v2150_v1 }
 0x6dd   : > { %v936_v48 = vmul.f32 1.442695, %v933_v47 }
 0x6de   : > { %v940_v51 = vpop.xlane.xlu0 %939 }
 0x6df   : > { %1852 = vpow2.f32 %v936_v48 }
 0x6e0   : > { %1854 = vrcp.f32 %v940_v51 }
 0x6e9   : > { %v1853_v49 = vpop.eup %1852 }
 0x6ea   : > { %v941_v50 = vsel %vm742_vm4, %v1853_v49, 0.0  ;;  %v1855_v53 = vpop.eup %1854 }
 0x6eb   : > { %942 = vadd.xlane.f32.xlu0 %v941_v50  ;;  %v945_v55 = vmul.f32 %v1855_v53, %v1847_v36 }
 0x778   : > { %v943_v52 = vpop.xlane.xlu0 %942 }
 0x779   : > { %1856 = vrcp.f32 %v943_v52 }
 0x783   : > { %v1857_v54 = vpop.eup %1856 }
 0x784   : > { %v947_v56 = vmul.f32 %v1857_v54, %v1853_v49 }
 0x786   : > { %v948_v57 = vpack.c.bf16 %v947_v56, %v945_v55 }
 0x788   : > { %1678 = vmatmul.mubr.msk.bf16.vlgmr.msra.gmra.mrb[8].mxu0 %vm742_vm4, %v948_v57  ;;  %v1174_v58 = vpop.f32.mrb[20].mxu1 }
 0x789   : > { %v1699_v59 = vpop.f32.mrb[21].mxu1  ;;  %1685 = vmatprep.mubr.msk.bf16.mxu0 %vm1973_vm0, %v1971_v4  ;;  %1682 = vmatpush3.bf16.msra.mxu0 %v1824_v10 }
 0x78a   : > { %v1177_v60 = vpop.f32.mrb[22].mxu1  ;;  %1683 = vmatprep.subr.bf16.mxu0 %v1971_v4 }
 0x78b   : > { %v1181_v61 = vpack.c.bf16 %v1177_v60, %v1174_v58  ;;  %v1700_v62 = vpop.f32.mrb[23].mxu1 }
 0x78d   : > { %1684 = vmatpush3.bf16.msra.mxu0 %v1825_v11 }
 0x78e   : > { %1701 = vmatprep.subr.bf16.mxu0 %v1971_v4 }
 0x790   : > { %v1288_v63 = vpop.f32.mrb[24].mxu1 }
 0x791   : > { %v1289_v2 = vadd.f32 %v1288_v63, %v2279_v22  ;;  %v1713_v3 = vpop.f32.mrb[25].mxu1 }
 0x792   : > { %v1291_v5 = vpop.f32.mrb[26].mxu1 }
 0x793   : > { %v1292_v6 = vadd.f32 %v1291_v5, %v2281_v24  ;;  %v1714_v7 = vpop.f32.mrb[27].mxu1  ;;  %v1295_v8 = vsel %vm742_vm4, %v1289_v2, -inf }
 0x794   : > { %1296 = vmax.xlane.f32.xlu0 %v1295_v8 }
 0x795   : > { %v1298_v9 = vsel %vm742_vm4, %v1292_v6, -inf }
 0x798   : > { %1299 = vmax.xlane.f32.xlu0 %v1298_v9 }
 0x821   : > { %v1297_v22 = vpop.xlane.xlu0 %1296 }
 0x822   : > { %v1301_v12 = vsub.f32 %v1289_v2, %v1297_v22 }
 0x824   : > { %v1303_v13 = vmul.f32 1.442695, %v1301_v12 }
 0x825   : > { %v1300_v14 = vpop.xlane.xlu0 %1299 }
 0x826   : > { %1858 = vpow2.f32 %v1303_v13  ;;  %v1302_v24 = vsub.f32 %v1292_v6, %v1300_v14 }
 0x828   : > { %v1305_v18 = vmul.f32 1.442695, %v1302_v24 }
 0x82a   : > { %1860 = vpow2.f32 %v1305_v18 }
 0x830   : > { %v1859_v19 = vpop.eup %1858 }
 0x831   : > { %v1307_v20 = vsel %vm742_vm4, %v1859_v19, 0.0 }
 0x832   : > { %1308 = vadd.xlane.f32.xlu0 %v1307_v20 }
 0x834   : > { %v1861_v21 = vpop.eup %1860 }
 0x835   : > { %v1310_v23 = vsel %vm742_vm4, %v1861_v21, 0.0 }
 0x836   : > { %1311 = vadd.xlane.f32.xlu0 %v1310_v23 }
 0x85b   : > { %v990_v25 = vpop.f32.mrb[8].mxu0 }
 0x85c   : > { %v1679_v17 = vpop.f32.mrb[9].mxu0 }
 0x85d   : > { %v993_v15 = vpop.f32.mrb[10].mxu0 }
 0x85e   : > { %v997_v27 = vpack.c.bf16 %v993_v15, %v990_v25  ;;  %v1680_v28 = vpop.f32.mrb[11].mxu0 }
 0x860   : > { %1686 = vmatmul.mubr.msk.bf16.vlgmr.msra.gmra.mrb[4].mxu0 %vm694_vm1, %v997_v27 }
 0x861   : > { %1702 = vmatpush3.bf16.msra.mxu0 %v1826_v26  ;;  %1705 = vmatprep.mubr.msk.bf16.mxu0 %vm1973_vm0, %v1971_v4 }
 0x862   : > { %1703 = vmatprep.subr.bf16.mxu0 %v1971_v4 }
 0x865   : > { %1704 = vmatpush3.bf16.msra.mxu0 %v1827_v29 }
 0x866   : > { %1715 = vmatprep.subr.bf16.mxu0 %v1971_v4 }
 0x86c   : > { %1706 = vmatmul.mubr.msk.bf16.vlgmr.msra.gmra.mrb[4].mxu0 %vm694_vm1, %v1181_v61 }
 0x86d   : > { %1716 = vmatpush3.bf16.msra.mxu0 %v1319_v30  ;;  %1717 = vmatprep.mubr.msk.bf16.mxu0 %vm1973_vm0, %v1971_v4 }
 0x86e   : > { %1721 = vmatprep.subr.bf16.mxu0 %v1971_v4 }
 0x8bf   : > { %v1309_v31 = vpop.xlane.xlu0 %1308 }
 0x8c0   : > { %1862 = vrcp.f32 %v1309_v31 }
 0x8c3   : > { %v1312_v32 = vpop.xlane.xlu0 %1311 }
 0x8c4   : > { %1864 = vrcp.f32 %v1312_v32 }
 0x8ca   : > { %v1863_v33 = vpop.eup %1862 }
 0x8cb   : > { %v1314_v35 = vmul.f32 %v1863_v33, %v1859_v19 }
 0x8ce   : > { %v1865_v34 = vpop.eup %1864 }
 0x8cf   : > { %v1316_v36 = vmul.f32 %v1865_v34, %v1861_v21 }
 0x8d1   : > { %v1317_v16 = vpack.c.bf16 %v1316_v36, %v1314_v35 }
 0x8d3   : > { %1718 = vmatmul.mubr.msk.bf16.vlgmr.msra.gmra.mrb[12].mxu0 %vm742_vm4, %v1317_v16 }
 0x8d4   : > { %1722 = vmatpush3.bf16.msra.mxu0 %v1828_v37  ;;  %1725 = vmatprep.mubr.msk.bf16.mxu0 %vm1973_vm0, %v1971_v4 }
 0x8d5   : > { %1723 = vmatprep.subr.bf16.mxu0 %v1971_v4 }
 0x8d8   : > { %1724 = vmatpush3.bf16.msra.mxu0 %v1829_v38 }
 0x9a6   : > { %v1358_v39 = vpop.f32.mrb[12].mxu0 }
 0x9a7   : > { %v1719_v40 = vpop.f32.mrb[13].mxu0 }
 0x9a8   : > { %v1361_v41 = vpop.f32.mrb[14].mxu0 }
 0x9a9   : > { %v1365_v42 = vpack.c.bf16 %v1361_v41, %v1358_v39  ;;  %v1720_v43 = vpop.f32.mrb[15].mxu0 }
 0x9ab   : > { %1726 = vmatmul.mubr.msk.bf16.vlgmr.msra.gmra.mrb[4].mxu0 %vm694_vm1, %v1365_v42 }
 0xa7e   : > { %v1419_v4 = vpop.f32.mrb[4].mxu0 }
 0xa7f   : > { %v1729_v47 = vadd.f32 %v1419_v4, %v692_v45  ;;  %v1727_v48 = vpop.f32.mrb[5].mxu0 }
 0xa80   : > { %v1422_v49 = vpop.f32.mrb[6].mxu0 }
 0xa81   : > { %1428 = vst [vmem:[%s359_s22] sm:$0xff] %v1729_v47  ;;  %v1730_v50 = vadd.f32 %v1422_v49, %v693_v46  ;;  %v1728_v51 = vpop.f32.mrb[7].mxu0 }
 0xa83   : > { %1429 = vst [vmem:[%s359_s22 + $0x8] sm:$0xff] %v1730_v50 }
 0xa84 PF: > { %s20_s27 = sadd.s32 1, %s1964_s27  }
 0xa85   : > { %p17_p2 = scmp.ge.s32.totalorder %s20_s27, 4  }
 0xa87   :  { %19 = sbr.rel (!%p17_p2) target bundleno = 2 (0x2), region = 98 }
 0xa8e   :  { %1451 = vsyncpa [#allocation3], 1 }
 0xa8f   :  { %1453 = vsyncpa [#allocation3 + $0x1], 1 }
 0xa90   :  { %1454 = vsyncpa [#allocation5], 1 }

// kernel: gpt2_forward.9
= control target key start
LH: loop header
LB: loop body
LE: loop exit
PB: predicated region body
PF: predicated region fallthrough
CT: control target
= control target key end

     0   :  { %13 = vsyncpa [#allocation7], 0  ;;  %s1313_s0 = inlined_call_operand.vmem [shape: f32[32,128], index: 0, kind: input, shape index: {}]   ;;  %s1314_s1 = inlined_call_operand.vmem [shape: f32[1,128], index: 1, kind: input, shape index: {}]   ;;  %s1315_s2 = inlined_call_operand.vmem [shape: f32[1,128], index: 2, kind: input, shape index: {}]   ;;  %s1316_s3 = inlined_call_operand.vmem [shape: bf16[256,128], index: 3, kind: input, shape index: {}]   ;;  %s1317_s4 = inlined_call_operand.vmem [shape: s32[32,1], index: 4, kind: input, shape index: {}]   ;;  %s1318_s5 = inlined_call_operand.vmem [shape: f32[32,1], index: 5, kind: input, shape index: {}]   ;;  %s1319_s6 = inlined_call_operand.hbm [shape: f32[32,256], index: 6, kind: output, shape index: {0}]   ;;  %s1320_s7 = inlined_call_operand.vmem [shape: f32[32,1], index: 7, kind: output, shape index: {1}]  }
   0x1   :  { %15 = vsyncpa [#allocation7 + $0x1], 0  ;;  %s1113_s24 = smov 0   ;;  %s1115_s25 = smov 0  }
   0x2   :  { %s1117_s26 = smov 0   ;;  %s1119_s27 = smov 0  }
   0x3   :  { %s1121_s28 = smov 0   ;;  %s1123_s29 = smov 0  }
   0x4   :  { %s1125_s30 = smov 0   ;;  %s1127_s8 = smov 0  }
   0x5 LB: > { %1328 = sst [smem:[#allocation9_spill]] %s1042_s26  ;;  %s798_s9 = sadd.s32 4294967295, %s1062_s8   ;;  %s1062_s8 = sphi %s1127_s8, %s21_s8   ;;  %s1058_s30 = sphi %s1125_s30, %s1344_s30   ;;  %s1054_s29 = sphi %s1123_s29, %s1343_s29   ;;  %s1050_s28 = sphi %s1121_s28, %s1342_s28   ;;  %s1046_s27 = sphi %s1119_s27, %s1341_s27   ;;  %s1042_s26 = sphi %s1117_s26, %s1340_s26   ;;  %s1038_s25 = sphi %s1115_s25, %s1346_s25   ;;  %s1034_s24 = sphi %s1113_s24, %s1345_s24  }
   0x6   : > { %1329 = sst [smem:[#allocation10_spill]] %s1054_s29  ;;  %s799_s10 = sadd.s32 4294967294, %s1062_s8  }
   0x7   : > { %1330 = sst [smem:[#allocation11_spill]] %s1058_s30  ;;  %s30_s11 = sadd.s32 1, %s1054_s29 }
   0x8   : > { %p31_p0 = scmp.ge.s32.totalorder %s30_s11, 2  ;;  %s33_s12 = sadd.s32 1, %s1058_s30 }
   0x9   : > { %p198_p1 = scmp.ne.s32.totalorder %s1042_s26, %s1038_s25  ;;  %p199_p2 = scmp.eq.s32.totalorder %s798_s9, 3 }
   0xa   : > { %s1348_s11 = smov (%p31_p0, %s30_s11), 0  ;;  %s1350_s12 = smov (!%p31_p0, %s33_s12), %s1058_s30 }
   0xb   : > { %1331 = sst [smem:[#allocation12_spill]] %s1348_s11  ;;  %s184_s13 = ssub.s32 %s1054_s29, %s1348_s11 }
   0xc   : > { %p1164_p3 = por %p199_p2, %p198_p1  ;;  %p35_p4 = scmp.ge.s32.totalorder %s1350_s12, 2 }
   0xd   : > { %p204_p5 = scmp.ne.s32.totalorder %s1038_s25, %s1034_s24  ;;  %p205_p6 = scmp.eq.s32.totalorder %s799_s10, 3 }
   0xe   : > { %p802_p7 = scmp.ge.s32.totalorder %s1062_s8, 1  ;;  %s1352_s12 = smov (%p35_p4, %s1350_s12), 0 }
   0xf   : > { %1333 = sst [smem:[#allocation13_spill]] %s1352_s12  ;;  %p1173_p8 = por %p205_p6, %p204_p5 }
  0x10   : > { %p291_p9 = scmp.lt.s32.totalorder %s1062_s8, 5  ;;  %s183_s16 = ssub.s32 %s1058_s30, %s1352_s12 }
  0x11   : > { %s1334_s15 = scalar_select %p1173_p8, 1, 0 }
  0x12   : > { %s188_s17 = sadd.s32 1, %s1042_s26  ;;  %s185_s18 = sor.u32 %s184_s13, %s183_s16 }
  0x13   : > { %1335 = sst [smem:[#allocation14_spill]] %s1334_s15  ;;  %p292_p10 = pnand %p802_p7, %p291_p9 }
  0x14   : > { %p186_p11 = scmp.eq.s32.totalorder %s185_s18, 0  ;;  %s1325_s20 = sand.u32 (!%p292_p10), 1, %s1038_s25  }
  0x15   : > { %295 = sbr.rel (%p292_p10) target bundleno = 1118 (0x45e), region = 44  ;;  %s804_s21 = sshll.u32 (!%p292_p10), %s1050_s28, 1 }
  0x16   : > { %s1182_s19 = scalar_select %p186_p11, %s1042_s26, %s188_s17  }
  0x17   : > { %s803_s22 = sshll.u32 (!%p292_p10), %s1325_s20, 4  ;;  %p344_p12 = scmp.lt.s32.totalorder (!%p292_p10), %s804_s21, 3 }
  0x18   : > { %1336 = sst [smem:[#allocation15_spill]] %s1182_s19  ;;  %s806_s23 = sshll.u32 (!%p292_p10), %s1046_s27, 4 }
  0x19   : > { %p350_p13 = scmp.lt.s32.totalorder (!%p292_p10), %s806_s23, 31  ;;  %s1212_s17 = scalar_lea.vmem (!%p292_p10), [#allocation6], %s803_s22 }
  0x1a   : > { %p814_p0 = scmp.ne.s32.totalorder (!%p292_p10), %s1046_s27, 0 }
  0x1c   : > { %s1354_s21 = smov (!%p344_p12, %s804_s21), 3  ;;  %s1356_s23 = smov (!%p350_p13, %s806_s23), 31 }
  0x1d   : > { %s805_s9 = sshll.u32 %s1354_s21, 3  ;;  %s807_s21 = sshll.u32 %s1356_s23, 2  ;;  %vm424_vm0 = vcmask (!%p814_p0), 7168   ;;  %v1064_v10 = vmov (!%p814_p0), 0.0   ;;  %v1065_v11 = vmov (!%p814_p0), -inf  }
  0x1e   : > { %s347_s16 = scalar_lea.vmem %s1313_s0, %s805_s9  ;;  %s1195_s12 = scalar_lea.vmem %s1317_s4, %s805_s9  ;;  %427 = vst.msk [vmem:[#allocation4] sm:$0xff] (!%p814_p0), %vm424_vm0, %v1064_v10  ;;  %428 = vst.msk [vmem:[#allocation4 + $0x8] sm:$0xff] (!%p814_p0), %vm424_vm0, %v1064_v10  ;;  %v815_v20 = vld [vmem:[%s1314_s1] ss:$0 sm:$0xff] (!%p814_p0) }
  0x1f   : > { %s1200_s29 = scalar_lea.vmem %s1318_s5, %s805_s9  ;;  %s1205_s26 = scalar_lea.vmem %s1320_s7, %s805_s9  ;;  %v379_v0 = vld [vmem:[%s347_s16] sm:$0xff] (!%p814_p0)  ;;  %v380_v1 = vld [vmem:[%s347_s16 + $0x8] sm:$0xff] (!%p814_p0)  ;;  %429 = vst.msk [vmem:[#allocation5] sm:$0xff] (!%p814_p0), %vm424_vm0, %v1064_v10  ;;  %430 = vst.msk [vmem:[#allocation5 + $0x8] sm:$0xff] (!%p814_p0), %vm424_vm0, %v1064_v10 }
  0x20   : > { %s1210_s13 = scalar_lea.vmem %s1316_s3, %s807_s21  ;;  %378 = sbr.rel (%p814_p0) target bundleno = 350 (0x15e), region = 48  ;;  %381 = vadd.xlane.f32.xlu0 (!%p814_p0), %v379_v0  ;;  %431 = vst.msk [vmem:[%s1205_s26] sm:$0xff] (!%p814_p0), %vm424_vm0, %v1064_v10  ;;  %425 = vst.msk [vmem:[#allocation3] sm:$0xff] (!%p814_p0), %vm424_vm0, %v1065_v11  ;;  %v816_v24 = vld [vmem:[%s1315_s2] ss:$0 sm:$0xff] (!%p814_p0) }
  0x21   : > { %426 = vst.msk [vmem:[#allocation3 + $0x8] sm:$0xff] (!%p814_p0), %vm424_vm0, %v1065_v11  ;;  %432 = vst.msk [vmem:[%s1205_s26 + $0x8] sm:$0xff] (!%p814_p0), %vm424_vm0, %v1064_v10 }
  0x24   : > { %383 = vadd.xlane.f32.xlu0 (!%p814_p0), %v380_v1 }
  0xad   : > { %v382_v2 = vpop.xlane.xlu0 %381 }
  0xae   : > { %v386_v3 = vmul.f32 0.0078125, %v382_v2 }
  0xb0   : > { %v388_v4 = vsub.f32 %v379_v0, %v386_v3 }
  0xb1   : > { %v384_v5 = vpop.xlane.xlu0 %383 }
  0xb2   : > { %v387_v6 = vmul.f32 0.0078125, %v384_v5  ;;  %v390_v7 = vmul.f32 %v388_v4, %v388_v4 }
  0xb4   : > { %v389_v8 = vsub.f32 %v380_v1, %v387_v6  ;;  %392 = vadd.xlane.f32.xlu1 %v390_v7 }
  0xb6   : > { %v391_v9 = vmul.f32 %v389_v8, %v389_v8 }
  0xb8   : > { %394 = vadd.xlane.f32.xlu1 %v391_v9 }
 0x141   : > { %v393_v12 = vpop.xlane.xlu1 %392 }
 0x142   : > { %v396_v13 = vmul.f32 0.0078125, %v393_v12 }
 0x144   : > { %v398_v14 = vadd.f32 1e-05, %v396_v13 }
 0x145   : > { %v395_v15 = vpop.xlane.xlu1 %394 }
 0x146   : > { %942 = vrsqrt.f32 %v398_v14  ;;  %v397_v16 = vmul.f32 0.0078125, %v395_v15 }
 0x148   : > { %v399_v17 = vadd.f32 1e-05, %v397_v16 }
 0x14a   : > { %944 = vrsqrt.f32 %v399_v17 }
 0x150   : > { %v943_v18 = vpop.eup %942 }
 0x151   : > { %v402_v19 = vmul.f32 %v943_v18, %v388_v4 }
 0x153   : > { %v411_v22 = vmul.f32 %v815_v20, %v402_v19 }
 0x154   : > { %v945_v21 = vpop.eup %944 }
 0x155   : > { %v403_v23 = vmul.f32 %v945_v21, %v389_v8  ;;  %v420_v26 = vadd.f32 %v816_v24, %v411_v22 }
 0x157   : > { %v412_v25 = vmul.f32 %v815_v20, %v403_v23 }
 0x159   : > { %v421_v27 = vadd.f32 %v816_v24, %v412_v25 }
 0x15b   : > { %v422_v28 = vpack.c.bf16 %v421_v27, %v420_v26 }
 0x15d   : > { %423 = vst [vmem:[#allocation2] sm:$0xff] %v422_v28 }
 0x15e PF: > { %v948_v29 = vld [vmem:[%s1210_s13] sm:$0xff]   ;;  %v1066_v30 = vmov 0.0   ;;  %vm1067_vm1 = vmmov 0   ;;  %v949_v31 = vld [vmem:[%s1210_s13 + $0x8] sm:$0xff]   ;;  %v950_v32 = vld [vmem:[%s1210_s13 + $0x10] sm:$0xff]   ;;  %v1068_v39 = vmov 0   ;;  %v586_v48 = vlaneseq }
 0x15f   : > { %843 = vmatprep.subr.bf16.mxu0 %v1066_v30  ;;  %859 = vmatprep.mubr.msk.bf16.mxu0 %vm1067_vm1, %v1066_v30  ;;  %v951_v33 = vld [vmem:[%s1210_s13 + $0x18] sm:$0xff]   ;;  %v952_v34 = vld [vmem:[%s1210_s13 + $0x20] sm:$0xff]   ;;  %v953_v35 = vld [vmem:[%s1210_s13 + $0x28] sm:$0xff]   ;;  %vm581_vm2 = vcmask 7168   ;;  %s825_s20 = sshll.u32 %s1046_s27, 7  ;;  %p826_p1 = scmp.ne.s32.totalorder %s1046_s27, 1 }
 0x160   : > { %844 = vmatpush3.bf16.xpose.msra.mxu0 %v948_v29  ;;  %v954_v36 = vld [vmem:[%s1210_s13 + $0x30] sm:$0xff]   ;;  %v955_v37 = vld [vmem:[%s1210_s13 + $0x38] sm:$0xff]   ;;  %947 = vset.pattern.permute.xlu0 %v1068_v39  ;;  %v593_v44 = vld [vmem:[%s1195_s12] sm:$0xff]  ;;  %v587_v53 = vand.u32 127, %v586_v48  ;;  %v589_v54 = vstv %s825_s20 }
 0x161   : > { %845 = vmatprep.subr.bf16.mxu0 %v1066_v30  ;;  %946 = vset.pattern.permute.xlu1 %v1068_v39  ;;  %v541_v45 = vld [vmem:[#allocation3] sm:$0xff]  ;;  %v542_v49 = vld [vmem:[#allocation3 + $0x8] sm:$0xff]  ;;  %v549_v12 = vld [vmem:[#allocation4] sm:$0xff] }
 0x162   : > { %v594_v56 = vld [vmem:[%s1195_s12 + $0x8] sm:$0xff]  ;;  %v590_v57 = vadd.s32 %v589_v54, %v587_v53  ;;  %v550_v16 = vld [vmem:[#allocation4 + $0x8] sm:$0xff]  ;;  %v592_v21 = vld [vmem:[#allocation5 + $0x8] sm:$0xff] }
 0x163   : > { %v591_v6 = vld [vmem:[#allocation5] sm:$0xff] }
 0x164   : > { %v433_v38 = vld [vmem:[#allocation2] sm:$0xff] }
 0x168   : > { %846 = vmatpush3.bf16.xpose.msra.mxu0 %v949_v31 }
 0x169   : > { %847 = vmatprep.subr.bf16.mxu0 %v1066_v30 }
 0x170   : > { %848 = vmatpush3.bf16.xpose.msra.mxu0 %v950_v32 }
 0x171   : > { %849 = vmatprep.subr.bf16.mxu0 %v1066_v30 }
 0x178   : > { %850 = vmatpush3.bf16.xpose.msra.mxu0 %v951_v33 }
 0x179   : > { %851 = vmatprep.subr.bf16.mxu0 %v1066_v30 }
 0x180   : > { %852 = vmatpush3.bf16.xpose.msra.mxu0 %v952_v34 }
 0x181   : > { %853 = vmatprep.subr.bf16.mxu0 %v1066_v30 }
 0x188   : > { %854 = vmatpush3.bf16.xpose.msra.mxu0 %v953_v35  ;;  %v627_v35 = vld [vmem:[%s1200_s29] sm:$0xff] (!%p826_p1) }
 0x189   : > { %855 = vmatprep.subr.bf16.mxu0 %v1066_v30 }
 0x190   : > { %856 = vmatpush3.bf16.xpose.msra.mxu0 %v954_v36 }
 0x191   : > { %857 = vmatprep.subr.bf16.mxu0 %v1066_v30 }
 0x198   : > { %858 = vmatpush3.bf16.xpose.msra.mxu0 %v955_v37 }
 0x19f   : > { %860 = vmatmul.mubr.bf16.vlgmr.msra.gmra.mrb[0].mxu0 %v433_v38  ;;  %v628_v38 = vld [vmem:[%s1200_s29 + $0x8] sm:$0xff] (!%p826_p1) }
 0x272   : > { %v532_v40 = vpop.f32.mrb[0].mxu0 }
 0x273   : > { %539 = vst [vmem:[%s1212_s17] sm:$0xff] %v532_v40  ;;  %543 = vmax.xlane.f32.xlu0 %v532_v40  ;;  %v861_v41 = vpop.f32.mrb[1].mxu0 }
 0x274   : > { %v535_v42 = vpop.f32.mrb[2].mxu0 }
 0x275   : > { %540 = vst [vmem:[%s1212_s17 + $0x8] sm:$0xff] %v535_v42  ;;  %v862_v43 = vpop.f32.mrb[3].mxu0 }
 0x277   : > { %545 = vmax.xlane.f32.xlu0 %v535_v42 }
 0x28d   : > { %596 = vperm.xlu0 %947, %v593_v44  }
 0x300   : > { %v544_v46 = vpop.xlane.xlu0 %543 }
 0x301   : > { %v547_v47 = vmax.f32 %v541_v45, %v544_v46 }
 0x303   : > { %v551_v50 = vsub.f32 %v541_v45, %v547_v47  ;;  %584 = vst.msk [vmem:[#allocation3] sm:$0xff] %vm581_vm2, %v547_v47  ;;  %561 = vperm.xlu1 %946, %v547_v47  }
 0x304   : > { %v546_v51 = vpop.xlane.xlu0 %545 }
 0x305   : > { %v548_v52 = vmax.f32 %v542_v49, %v546_v51  ;;  %v553_v9 = vmul.f32 1.442695, %v551_v50 }
 0x307   : > { %v552_v55 = vsub.f32 %v542_v49, %v548_v52  ;;  %585 = vst.msk [vmem:[#allocation3 + $0x8] sm:$0xff] %vm581_vm2, %v548_v52  ;;  %566 = vperm.xlu1 %946, %v548_v52  }
 0x309   : > { %v555_v10 = vmul.f32 1.442695, %v552_v55 }
 0x30a   : > { %v617_v27 = vld [vmem:[#allocation3] sm:$0xff] (!%p826_p1) }
 0x30b   : > { %599 = vperm.xlu1 %946, %v594_v56  }
 0x30c   : > { %v597_v58 = vpop.permute.xlu0 %596 }
 0x30d   : > { %vm601_vm3 = vcmp.eq.s32.totalorder %v590_v57, %v597_v58 }
 0x30e   : > { %v603_v59 = vsel %vm601_vm3, %v532_v40, 0.0  ;;  %v618_v30 = vld [vmem:[#allocation3 + $0x8] sm:$0xff] (!%p826_p1) }
 0x30f   : > { %605 = vadd.xlane.f32.xlu0 %v603_v59 }
 0x382   : > { %v562_v60 = vpop.permute.xlu1 %561 }
 0x383   : > { %v569_v61 = vsub.f32 %v532_v40, %v562_v60 }
 0x385   : > { %v571_v62 = vmul.f32 1.442695, %v569_v61 }
 0x386   : > { %v567_v63 = vpop.permute.xlu1 %566 }
 0x387   : > { %956 = vpow2.f32 %v571_v62  ;;  %v570_v0 = vsub.f32 %v535_v42, %v567_v63 }
 0x389   : > { %v573_v1 = vmul.f32 1.442695, %v570_v0 }
 0x38a   : > { %v600_v3 = vpop.permute.xlu1 %599 }
 0x38b   : > { %958 = vpow2.f32 %v573_v1  ;;  %vm602_vm4 = vcmp.eq.s32.totalorder %v590_v57, %v600_v3 }
 0x38c   : > { %v604_v5 = vsel %vm602_vm4, %v535_v42, 0.0  ;;  %960 = vpow2.f32 %v553_v9 }
 0x38d   : > { %962 = vpow2.f32 %v555_v10 }
 0x391   : > { %v957_v2 = vpop.eup %956 }
 0x392   : > { %575 = vadd.xlane.f32.xlu1 %v957_v2 }
 0x395   : > { %v959_v4 = vpop.eup %958 }
 0x396   : > { %577 = vadd.xlane.f32.xlu1 %v959_v4  ;;  %v961_v11 = vpop.eup %960 }
 0x397   : > { %v557_v13 = vmul.f32 %v961_v11, %v549_v12  ;;  %v963_v14 = vpop.eup %962 }
 0x398   : > { %v558_v18 = vmul.f32 %v963_v14, %v550_v16 }
 0x39a   : > { %607 = vadd.xlane.f32.xlu1 %v604_v5 }
 0x39c   : > { %v606_v7 = vpop.xlane.xlu0 %605 }
 0x39d   : > { %v609_v8 = vadd.f32 %v606_v7, %v591_v6 }
 0x39f   : > { %611 = vst.msk [vmem:[#allocation5] sm:$0xff] %vm581_vm2, %v609_v8 }
 0x3a6   : > { %v629_v31 = vld [vmem:[#allocation5] sm:$0xff] (!%p826_p1) }
 0x41f   : > { %v576_v15 = vpop.xlane.xlu1 %575 }
 0x420   : > { %v579_v17 = vadd.f32 %v576_v15, %v557_v13 }
 0x422   : > { %582 = vst.msk [vmem:[#allocation4] sm:$0xff] %vm581_vm2, %v579_v17 }
 0x423   : > { %v578_v19 = vpop.xlane.xlu1 %577 }
 0x424   : > { %v580_v20 = vadd.f32 %v578_v19, %v558_v18  ;;  %616 = sbr.rel (%p826_p1) target bundleno = 1090 (0x442), region = 52 }
 0x426   : > { %583 = vst.msk [vmem:[#allocation4 + $0x8] sm:$0xff] %vm581_vm2, %v580_v20 }
 0x427   : > { %v608_v22 = vpop.xlane.xlu1 %607 }
 0x428   : > { %v610_v23 = vadd.f32 %v608_v22, %v592_v21 }
 0x429   : > { %v619_v24 = vld [vmem:[#allocation4] sm:$0xff] (!%p826_p1) }
 0x42a   : > { %612 = vst.msk [vmem:[#allocation5 + $0x8] sm:$0xff] %vm581_vm2, %v610_v23  ;;  %964 = vlog2.f32 (!%p826_p1), %v619_v24 }
 0x42d   : > { %v620_v25 = vld [vmem:[#allocation4 + $0x8] sm:$0xff] }
 0x42e   : > { %966 = vlog2.f32 %v620_v25 }
 0x431   : > { %v630_v34 = vld [vmem:[#allocation5 + $0x8] sm:$0xff] }
 0x434   : > { %v965_v26 = vpop.eup %964 }
 0x435   : > { %v622_v29 = vmul.f32 0.6931472, %v965_v26 }
 0x437   : > { %v625_v33 = vadd.f32 %v622_v29, %v617_v27 }
 0x438   : > { %v967_v28 = vpop.eup %966 }
 0x439   : > { %v624_v32 = vmul.f32 0.6931472, %v967_v28  ;;  %v631_v37 = vsub.f32 %v625_v33, %v629_v31 }
 0x43b   : > { %v626_v36 = vadd.f32 %v624_v32, %v618_v30  ;;  %v633_v40 = vmul.f32 %v631_v37, %v627_v35 }
 0x43d   : > { %v632_v39 = vsub.f32 %v626_v36, %v630_v34  ;;  %635 = vst.msk [vmem:[%s1205_s26] sm:$0xff] %vm581_vm2, %v633_v40 }
 0x43f   : > { %v634_v41 = vmul.f32 %v632_v39, %v628_v38 }
 0x441   : > { %636 = vst.msk [vmem:[%s1205_s26 + $0x8] sm:$0xff] %vm581_vm2, %v634_v41 }
 0x442 PF: > { %s833_s12 = sshll.u32 %s1050_s28, 2  ;;  %s658_s23 = sshll.u32 %s1212_s17, 4  ;;  %s1252_s23 = int_to_ptr.vmem [resolvable:$true] %s658_s23 }
 0x443   : > { %s655_s22 = sadd.s32 %s1046_s27, %s833_s12  ;;  %s1337_s26 = sand.u32 1, %s1038_s25  }
 0x444   : > { %s830_s9 = sshll.u32 %s655_s22, 7  ;;  %s1261_s21 = scalar_lea.sflag [#allocation7], %s1337_s26 }
 0x445   : > { %s1257_s18 = scalar_lea.hbm %s1319_s6, %s830_s9  ;;  %s968_s10 = scalar_lea.vmem %s1252_s23, 256 }
 0x446   : > { %p969_p2 = scmp.ne.s32.totalorder %s1252_s23, %s968_s10  ;;  %s1069_s27 = smov [#allocation6]  }
 0x447   : > { %s972_s28 = sshll.u32 %s1069_s27, 4  ;;  %s973_s28 = int_to_ptr.vmem [resolvable:$false] %s972_s28 }
 0x448   : > { %p970_p4 = pnand %p969_p2, %p1164_p3  ;;  %s974_s13 = scalar_lea.vmem %s973_s28, 512 }
 0x449   : > { %p975_p6 = scmp.lt.s32.totalorder %s1252_s23, %s973_s28  ;;  %p976_p7 = scmp.lt.s32.totalorder %s974_s13, %s968_s10 }
 0x44a   : > { %p971_p5 = pneg %p970_p4 }
 0x44b   : > { %p977_p9 = por %p976_p7, %p975_p6 }
 0x44d   : > { %p978_p10 = pnand %p977_p9, %p971_p5 }
 0x44f   : > { %981 = shalt.err (!%p978_p10)
}
 0x450   : > { %s982_s17 = scalar_lea.hbm %s1257_s18, 256  ;;  %s986_s15 = scalar_lea.hbm %s1319_s6, 1024 }
 0x451   : > { %p983_p11 = scmp.ne.s32.totalorder %s1257_s18, %s982_s17  ;;  %p987_p0 = scmp.lt.u32.totalorder %s1257_s18, %s1319_s6 }
 0x452   : > { %p988_p1 = scmp.lt.u32.totalorder %s986_s15, %s982_s17  ;;  %p990_p4 = scmp.lt.u32.totalorder %s982_s17, %s1257_s18 }
 0x453   : > { %p984_p12 = pnand %p983_p11, %p1164_p3 }
 0x454   : > { %p989_p2 = por %p988_p1, %p987_p0 }
 0x455   : > { %p985_p13 = pneg %p984_p12 }
 0x456   : > { %p991_p5 = por %p990_p4, %p989_p2 }
 0x458   : > { %p992_p6 = pnand %p991_p5, %p985_p13 }
 0x45a   : > { %995 = shalt.err (!%p992_p6)
}
 0x45b   : > { %s1070_s12 = smov 128   ;;  %s1071_s22 = smov 256  }
 0x45c   : > { %s1072_s9 = smov 8  }
 0x45d   : > { %863 = dma.vmem_to_hbm [thread:$0]  (%p1164_p3), %s1252_s23, 256, %s1257_s18, %s1261_s21, %s1070_s12, %s1071_s22, %s1072_s9  }
 0x45e PF: > { %p869_p7 = scmp.ge.s32.totalorder %s1062_s8, 2  ;;  %s677_s16 = sand.u32 1, %s1034_s24  }
 0x45f   : > { %s678_s26 = scalar_lea.sflag [#allocation7], %s677_s16 }
 0x460   : > { %p866_p9 = pnand %p869_p7, %p1173_p8 }
 0x462   : > { %1029 = dma.done.wait (!%p866_p9), %s678_s26, 256  }
 0x463   : > { %1031 = vsyncadd (!%p866_p9), %s678_s26, 4294967040  ;;  %s21_s8 = sadd.s32 1, %s1062_s8   ;;  %s1339_s10 = sld [smem:[#allocation9_spill]] }
 0x464   : > { %p18_p10 = scmp.ge.s32.totalorder %s21_s8, 6   ;;  %s1340_s26 = sld [smem:[#allocation15_spill]] }
 0x465   : > { %s1341_s27 = sld [smem:[#allocation10_spill]]  ;;  %s1342_s28 = sld [smem:[#allocation11_spill]] }
 0x466   : > { %s1343_s29 = sld [smem:[#allocation12_spill]]  ;;  %s1344_s30 = sld [smem:[#allocation13_spill]] }
 0x467   : > { %s1345_s24 = smov %s1038_s25  ;;  %20 = sbr.rel (!%p18_p10) target bundleno = 5 (0x5), region = 108 }
 0x469   : > { %s1346_s25 = smov %s1339_s10 }
 0x46e   :  { %691 = vsyncpa [#allocation7], 1 }
 0x46f   :  { %693 = vsyncpa [#allocation7 + $0x1], 1 }

</bundles_post_ra>
